<compile_context>
chip_gen: v5e
topology: v5e:2x2
jax: 0.10.0
libtpu: 0.0.40
codegen_flags: <defaults>
</compile_context>

<pallas_src>
import jax
import jax.numpy as jnp
from jax import lax
from jax.experimental import pallas as pl
from jax.experimental.pallas import tpu as pltpu

B, C, H, W = 2, 4, 16, 16
KH = KW = 3
M = B * H * W                # 512 matmul rows
N_FLAT = C * H * W           # 1024 elements per batch item
K_RAW = KH * KW * C          # 36
K_PAD = 128                  # pad contraction dim to lane width (MXU-native)
COUT_PAD = 128               # pad output channels to lane width (MXU-native)
NOISE_STD = 0.1

CENTER_COL = ((KH // 2) * KW + (KW // 2)) * C   # columns [16:20] == original image


# --------------------------- fused Pallas kernel ---------------------------

def _sure_fused_kernel(std_ref, p_noisy_ref, p_b_ref, w_ref, bias_ref, loss_ref):
    """Everything in one kernel: eps, both convs, MSE + MC-divergence.

    p_noisy_ref : (M, K_PAD)        im2col(noisy), cols (kh,kw,cin), zero-padded
    p_b_ref     : (M, K_PAD)        im2col(b),     cols (kh,kw,cin), zero-padded
    w_ref       : (K_PAD, COUT_PAD) conv weights (zero-padded rows/cols)
    bias_ref    : (1, COUT_PAD)     conv bias    (zero-padded cols)
    """
    std = std_ref[0, 0]

    p_noisy = p_noisy_ref[...]
    p_b = p_b_ref[...]

    # Center tap of the 3x3 im2col == the (b,h,w)-ordered NHWC image itself.
    noisy = p_noisy[:, CENTER_COL:CENTER_COL + C]       # (M, C)
    b = p_b[:, CENTER_COL:CENTER_COL + C]               # (M, C)

    # epsilon = max(noisy) / 1000 over the real (unpadded) image values.
    eps = jnp.max(noisy) / 1000.0

    w = w_ref[...]
    bias = bias_ref[...]

    # model(noisy)
    my = jnp.dot(p_noisy, w, preferred_element_type=jnp.float32) + bias
    # model(noisy + eps*b): im2col is linear, so build perturbed patches in VMEM.
    p_eps = p_noisy + eps * p_b
    mye = jnp.dot(p_eps, w, preferred_element_type=jnp.float32) + bias

    my_v = my[:, :C]
    mye_v = mye[:, :C]

    # MSE over all B*C*H*W elements.
    diff = noisy - my_v
    mse = jnp.sum(diff * diff) * (1.0 / (B * N_FLAT))

    # sum_i (std^2 + 2*std^2*mc_div_i)
    #   = B*std^2 + 2*std^2 * sum_all(b*(mye - my)) / (N_FLAT * eps)
    s = jnp.sum(b * (mye_v - my_v))
    loss_ref[0, 0] = mse - (B * std * std + 2.0 * std * std * s / (N_FLAT * eps))


# --------------------------- wrappers (glue, all under jit) ---------------------------

def _im2col_pad(x):
    # x: (B, C, H, W) -> (B*H*W, K_PAD); rows ordered (b, h, w),
    # columns ordered (kh, kw, cin), zero-padded to K_PAD lanes.
    xp = jnp.pad(x, ((0, 0), (0, 0), (1, 1), (1, 1)))
    taps = [xp[:, :, kh:kh + H, kw:kw + W] for kh in range(KH) for kw in range(KW)]
    p = jnp.stack(taps, axis=1)                           # (B, 9, C, H, W)
    p = p.transpose(0, 3, 4, 1, 2).reshape(M, K_RAW)      # (M, (kh,kw,cin))
    return jnp.pad(p, ((0, 0), (0, K_PAD - K_RAW)))


@jax.jit
def sure_forward(noisy, b, w_pad, bias_pad, noise_std):
    p_noisy = _im2col_pad(noisy)
    p_b = _im2col_pad(b)
    std = jnp.reshape(jnp.asarray(noise_std, jnp.float32), (1, 1))

    flops = 2 * 2 * M * K_PAD * COUT_PAD                  # two MXU matmuls
    bytes_accessed = 4 * (p_noisy.size + p_b.size + w_pad.size + bias_pad.size) + 8

    loss = pl.pallas_call(
        _sure_fused_kernel,
        out_shape=jax.ShapeDtypeStruct((1, 1), jnp.float32),
        in_specs=[pl.BlockSpec(memory_space=pltpu.MemorySpace.SMEM)]
        + [pl.BlockSpec(memory_space=pltpu.MemorySpace.VMEM)] * 4,
        out_specs=pl.BlockSpec(memory_space=pltpu.MemorySpace.SMEM),
        cost_estimate=pl.CostEstimate(flops=flops, transcendentals=0,
                                      bytes_accessed=bytes_accessed),
    )(std, p_noisy, p_b, w_pad, bias_pad)
    return loss[0, 0]


# --------------------------- reference (pure JAX) ---------------------------

def _reference(noisy, b, weight, bias, noise_std):
    def model(x):
        y = lax.conv_general_dilated(
            x, weight, window_strides=(1, 1), padding="SAME",
            dimension_numbers=("NCHW", "OIHW", "NCHW"))
        return y + bias[None, :, None, None]
    eps = jnp.max(noisy) / 1000.0
    my = model(noisy)
    mye = model(noisy + eps * b)
    mc_div = jnp.mean(b * (mye - my) / eps, axis=(1, 2, 3))
    mse = jnp.mean((noisy - my) ** 2)
    return mse - jnp.sum(noise_std ** 2 + 2.0 * noise_std ** 2 * mc_div, axis=0)


# --------------------------- main ---------------------------

if __name__ == "__main__":
    key = jax.random.PRNGKey(0)
    k_x, k_b, k_w, k_bias = jax.random.split(key, 4)

    noisy = jax.random.normal(k_x, (B, C, H, W), jnp.float32)
    # b = torch.normal(0, 1, noisy.shape) -> deterministic normal draw
    b = jax.random.normal(k_b, (B, C, H, W), jnp.float32)

    # deterministic "model" parameters: Conv2d(C, C, 3, padding=1)
    weight = jax.random.normal(k_w, (C, C, KH, KW), jnp.float32) * 0.1
    bias = jax.random.normal(k_bias, (C,), jnp.float32) * 0.01

    # pack weights for the im2col matmul kernel (row order (kh, kw, cin))
    w_mat = weight.transpose(2, 3, 1, 0).reshape(K_RAW, C)   # (K_RAW, C)
    w_pad = jnp.zeros((K_PAD, COUT_PAD), jnp.float32).at[:K_RAW, :C].set(w_mat)
    bias_pad = jnp.zeros((1, COUT_PAD), jnp.float32).at[0, :C].set(bias)

    loss = jax.block_until_ready(sure_forward(noisy, b, w_pad, bias_pad, NOISE_STD))
    ref = jax.block_until_ready(_reference(noisy, b, weight, bias, NOISE_STD))

    assert jnp.allclose(loss, ref, atol=1e-3, rtol=1e-3), (loss, ref)
    print("KERNEL_OK")
</pallas_src>

<mosaic_0001>
module attributes {stable_mosaic.version = 11 : i64} {
  func.func @_sure_fused_kernel(%arg0: memref<1x1xf32, #tpu.memory_space<smem>>, %arg1: memref<512x128xf32, #tpu.memory_space<vmem>>, %arg2: memref<512x128xf32, #tpu.memory_space<vmem>>, %arg3: memref<128x128xf32, #tpu.memory_space<vmem>>, %arg4: memref<1x128xf32, #tpu.memory_space<vmem>>, %arg5: memref<1x1xf32, #tpu.memory_space<smem>>) attributes {dimension_semantics = [], scalar_prefetch = 0 : i64, scratch_operands = 0 : i64, tpu.core_type = #tpu.core_type<tc>} {
    %c0 = arith.constant 0 : index
    %c0_0 = arith.constant 0 : index
    %0 = memref.load %arg0[%c0, %c0_0] : memref<1x1xf32, #tpu.memory_space<smem>>
    %c0_1 = arith.constant 0 : index
    %c0_2 = arith.constant 0 : index
    %1 = vector.load %arg1[%c0_1, %c0_2] : memref<512x128xf32, #tpu.memory_space<vmem>>, vector<512x128xf32>
    %c0_3 = arith.constant 0 : index
    %c0_4 = arith.constant 0 : index
    %2 = vector.load %arg2[%c0_3, %c0_4] : memref<512x128xf32, #tpu.memory_space<vmem>>, vector<512x128xf32>
    %3 = vector.extract_strided_slice %1 {offsets = [0, 16], sizes = [512, 4], strides = [1, 1]} : vector<512x128xf32> to vector<512x4xf32>
    %4 = vector.extract_strided_slice %2 {offsets = [0, 16], sizes = [512, 4], strides = [1, 1]} : vector<512x128xf32> to vector<512x4xf32>
    %5 = vector.shape_cast %3 : vector<512x4xf32> to vector<1x512x4xf32>
    %cst = arith.constant dense<0xFF800000> : vector<1xf32>
    %6 = vector.multi_reduction <maximumf>, %5, %cst [1, 2] : vector<1x512x4xf32> to vector<1xf32>
    %7 = vector.shape_cast %6 : vector<1xf32> to vector<1x1x1xf32>
    %8 = vector.extract %7[0, 0, 0] : f32 from vector<1x1x1xf32>
    %cst_5 = arith.constant 1.000000e+03 : f32
    %9 = arith.divf %8, %cst_5 : f32
    %c0_6 = arith.constant 0 : index
    %c0_7 = arith.constant 0 : index
    %10 = vector.load %arg3[%c0_6, %c0_7] : memref<128x128xf32, #tpu.memory_space<vmem>>, vector<128x128xf32>
    %c0_8 = arith.constant 0 : index
    %c0_9 = arith.constant 0 : index
    %11 = vector.load %arg4[%c0_8, %c0_9] : memref<1x128xf32, #tpu.memory_space<vmem>>, vector<1x128xf32>
    %cst_10 = arith.constant dense<0.000000e+00> : vector<512x128xf32>
    %12 = tpu.matmul %1, %10, %cst_10 {dimension_numbers = #tpu.dot_dimension_numbers<[1], [0], [0], [1], [0, 0, 1, 1], [], []>} : vector<512x128xf32>, vector<128x128xf32>, vector<512x128xf32> -> vector<512x128xf32>
    %13 = vector.broadcast %11 : vector<1x128xf32> to vector<512x128xf32>
    %14 = arith.addf %12, %13 : vector<512x128xf32>
    %15 = vector.broadcast %9 : f32 to vector<512x128xf32>
    %16 = arith.mulf %15, %2 : vector<512x128xf32>
    %17 = arith.addf %1, %16 : vector<512x128xf32>
    %cst_11 = arith.constant dense<0.000000e+00> : vector<512x128xf32>
    %18 = tpu.matmul %17, %10, %cst_11 {dimension_numbers = #tpu.dot_dimension_numbers<[1], [0], [0], [1], [0, 0, 1, 1], [], []>} : vector<512x128xf32>, vector<128x128xf32>, vector<512x128xf32> -> vector<512x128xf32>
    %19 = vector.broadcast %11 : vector<1x128xf32> to vector<512x128xf32>
    %20 = arith.addf %18, %19 : vector<512x128xf32>
    %21 = vector.extract_strided_slice %14 {offsets = [0, 0], sizes = [512, 4], strides = [1, 1]} : vector<512x128xf32> to vector<512x4xf32>
    %22 = vector.extract_strided_slice %20 {offsets = [0, 0], sizes = [512, 4], strides = [1, 1]} : vector<512x128xf32> to vector<512x4xf32>
    %23 = arith.subf %3, %21 : vector<512x4xf32>
    %24 = arith.mulf %23, %23 : vector<512x4xf32>
    %25 = vector.shape_cast %24 : vector<512x4xf32> to vector<1x512x4xf32>
    %cst_12 = arith.constant dense<0.000000e+00> : vector<1xf32>
    %26 = vector.multi_reduction <add>, %25, %cst_12 [1, 2] : vector<1x512x4xf32> to vector<1xf32>
    %27 = vector.shape_cast %26 : vector<1xf32> to vector<1x1x1xf32>
    %28 = vector.extract %27[0, 0, 0] : f32 from vector<1x1x1xf32>
    %cst_13 = arith.constant 4.8828125E-4 : f32
    %29 = arith.mulf %28, %cst_13 : f32
    %30 = arith.subf %22, %21 : vector<512x4xf32>
    %31 = arith.mulf %4, %30 : vector<512x4xf32>
    %32 = vector.shape_cast %31 : vector<512x4xf32> to vector<1x512x4xf32>
    %cst_14 = arith.constant dense<0.000000e+00> : vector<1xf32>
    %33 = vector.multi_reduction <add>, %32, %cst_14 [1, 2] : vector<1x512x4xf32> to vector<1xf32>
    %34 = vector.shape_cast %33 : vector<1xf32> to vector<1x1x1xf32>
    %35 = vector.extract %34[0, 0, 0] : f32 from vector<1x1x1xf32>
    %cst_15 = arith.constant 2.000000e+00 : f32
    %36 = arith.mulf %cst_15, %0 : f32
    %37 = arith.mulf %36, %0 : f32
    %cst_16 = arith.constant 2.000000e+00 : f32
    %38 = arith.mulf %cst_16, %0 : f32
    %39 = arith.mulf %38, %0 : f32
    %40 = arith.mulf %39, %35 : f32
    %cst_17 = arith.constant 1.024000e+03 : f32
    %41 = arith.mulf %cst_17, %9 : f32
    %42 = arith.divf %40, %41 : f32
    %43 = arith.addf %37, %42 : f32
    %44 = arith.subf %29, %43 : f32
    %c0_18 = arith.constant 0 : index
    %c0_19 = arith.constant 0 : index
    %45 = memref.load %arg5[%c0_18, %c0_19] : memref<1x1xf32, #tpu.memory_space<smem>>
    memref.store %44, %arg5[%c0_18, %c0_19] : memref<1x1xf32, #tpu.memory_space<smem>>
    return
  }
}

</mosaic_0001>

<bundles_post_ra>
// kernel: sure_forward.1
= control target key start
LH: loop header
LB: loop body
LE: loop exit
PB: predicated region body
PF: predicated region fallthrough
CT: control target
= control target key end

     0   :  { %vm151_vm0 = vcmask 162944   ;;  %s5442_s0 = inlined_call_operand.<no memory space> [shape: f32[1,1], index: 0, kind: input, shape index: {}]   ;;  %s5443_s1 = inlined_call_operand.vmem [shape: f32[512,128], index: 1, kind: input, shape index: {}]   ;;  %s5444_s2 = inlined_call_operand.vmem [shape: f32[512,128], index: 2, kind: input, shape index: {}]   ;;  %s5445_s3 = inlined_call_operand.vmem [shape: f32[128,128], index: 3, kind: input, shape index: {}]   ;;  %s5446_s4 = inlined_call_operand.vmem [shape: f32[1,128], index: 4, kind: input, shape index: {}]   ;;  %s5447_s5 = inlined_call_operand.hbm [shape: f32[1,1], index: 5, kind: output, shape index: {}]  }
   0x1   :  { %v312_v0 = vld [vmem:[%s5445_s3 + $0x78] sm:$0xff]  ;;  %v311_v1 = vld [vmem:[%s5445_s3 + $0x70] sm:$0xff]  ;;  %v310_v2 = vld [vmem:[%s5445_s3 + $0x68] sm:$0xff] }
   0x2   :  { %317 = vmatpush.msra.mxu0 %v312_v0  ;;  %2458 = vmatpush.msra.mxu2 %v312_v0  ;;  %v309_v3 = vld [vmem:[%s5445_s3 + $0x60] sm:$0xff]  ;;  %v308_v4 = vld [vmem:[%s5445_s3 + $0x58] sm:$0xff]  ;;  %v307_v17 = vld [vmem:[%s5445_s3 + $0x50] sm:$0xff] }
   0x3   :  { %655 = vmatpush.msra.mxu1 %v312_v0  ;;  %2474 = vmatpush.msra.mxu3 %v312_v0  ;;  %v2698_v5 = vld [vmem:[%s5443_s1] sm:$0xff]  ;;  %v306_v18 = vld [vmem:[%s5445_s3 + $0x48] sm:$0xff]  ;;  %v2771_v26 = vld [vmem:[%s5443_s1 + $0x10] sm:$0xff] }
   0x4   :  { %318 = vmatpush.msra.mxu0 %v311_v1  ;;  %2459 = vmatpush.msra.mxu2 %v311_v1  ;;  %5528 = vst [vmem:[#allocation6_spill] sm:$0xff] %v2698_v5  ;;  %v2703_v6 = vld [vmem:[%s5443_s1 + $0x20] sm:$0xff]  ;;  %v152_v10 = vsel %vm151_vm0, %v2698_v5, -inf  ;;  %v2766_v25 = vld [vmem:[%s5443_s1 + $0x8] sm:$0xff]  ;;  %v2776_v27 = vld [vmem:[%s5443_s1 + $0x18] sm:$0xff]  ;;  %v154_v33 = vsel %vm151_vm0, %v2771_v26, -inf }
   0x5   :  { %656 = vmatpush.msra.mxu1 %v311_v1  ;;  %2475 = vmatpush.msra.mxu3 %v311_v1  ;;  %v2708_v7 = vld [vmem:[%s5443_s1 + $0x40] sm:$0xff]  ;;  %v156_v11 = vsel %vm151_vm0, %v2703_v6, -inf  ;;  %v2784_v29 = vld [vmem:[%s5443_s1 + $0x28] sm:$0xff]  ;;  %v2789_v30 = vld [vmem:[%s5443_s1 + $0x30] sm:$0xff]  ;;  %v153_v32 = vsel %vm151_vm0, %v2766_v25, -inf  ;;  %v155_v34 = vsel %vm151_vm0, %v2776_v27, -inf }
   0x6   :  { %319 = vmatpush.msra.mxu0 %v310_v2  ;;  %2460 = vmatpush.msra.mxu2 %v310_v2  ;;  %v2713_v8 = vld [vmem:[%s5443_s1 + $0x60] sm:$0xff]  ;;  %v157_v12 = vmax.f32 %v152_v10, %v156_v11  ;;  %v164_v13 = vsel %vm151_vm0, %v2708_v7, -inf  ;;  %v2794_v31 = vld [vmem:[%s5443_s1 + $0x38] sm:$0xff]  ;;  %v2805_v36 = vld [vmem:[%s5443_s1 + $0x48] sm:$0xff]  ;;  %v158_v39 = vsel %vm151_vm0, %v2784_v29, -inf  ;;  %v160_v40 = vsel %vm151_vm0, %v2789_v30, -inf }
   0x7   :  { %v2718_v9 = vld [vmem:[%s5443_s1 + $0x80] sm:$0xff]  ;;  %657 = vmatpush.msra.mxu1 %v310_v2  ;;  %2476 = vmatpush.msra.mxu3 %v310_v2  ;;  %v172_v19 = vsel %vm151_vm0, %v2713_v8, -inf  ;;  %v2810_v37 = vld [vmem:[%s5443_s1 + $0x50] sm:$0xff]  ;;  %v2815_v38 = vld [vmem:[%s5443_s1 + $0x58] sm:$0xff]  ;;  %v162_v41 = vsel %vm151_vm0, %v2794_v31, -inf  ;;  %v159_v46 = vmax.f32 %v153_v32, %v158_v39  ;;  %v161_v47 = vmax.f32 %v154_v33, %v160_v40 }
   0x8   :  { %320 = vmatpush.msra.mxu0 %v309_v3  ;;  %2461 = vmatpush.msra.mxu2 %v309_v3  ;;  %v2729_v14 = vld [vmem:[%s5443_s1 + $0xa0] sm:$0xff]  ;;  %v180_v20 = vsel %vm151_vm0, %v2718_v9, -inf  ;;  %v165_v21 = vmax.f32 %v157_v12, %v164_v13  ;;  %v304_v42 = vld [vmem:[%s5445_s3 + $0x38] sm:$0xff]  ;;  %v2829_v43 = vld [vmem:[%s5443_s1 + $0x68] sm:$0xff]  ;;  %v163_v48 = vmax.f32 %v155_v34, %v162_v41  ;;  %v166_v49 = vsel %vm151_vm0, %v2805_v36, -inf }
   0x9   :  { %5529 = vst [vmem:[#allocation7_spill] sm:$0xff] %v2729_v14  ;;  %v2734_v15 = vld [vmem:[%s5443_s1 + $0xc0] sm:$0xff]  ;;  %658 = vmatpush.msra.mxu1 %v309_v3  ;;  %2477 = vmatpush.msra.mxu3 %v309_v3  ;;  %v2753_v22 = vsel %vm151_vm0, %v2729_v14, -inf  ;;  %v2834_v44 = vld [vmem:[%s5443_s1 + $0x70] sm:$0xff]  ;;  %v2839_v45 = vld [vmem:[%s5443_s1 + $0x78] sm:$0xff]  ;;  %v168_v54 = vsel %vm151_vm0, %v2810_v37, -inf  ;;  %v167_v60 = vmax.f32 %v159_v46, %v166_v49 }
   0xa   :  { %5530 = vst [vmem:[#allocation8_spill] sm:$0xff] %v2734_v15  ;;  %v2739_v16 = vld [vmem:[%s5443_s1 + $0xe0] sm:$0xff]  ;;  %321 = vmatpush.msra.mxu0 %v308_v4  ;;  %2462 = vmatpush.msra.mxu2 %v308_v4  ;;  %v2757_v23 = vsel %vm151_vm0, %v2734_v15, -inf  ;;  %v173_v35 = vmax.f32 %v165_v21, %v172_v19  ;;  %v2846_v51 = vld [vmem:[%s5443_s1 + $0x88] sm:$0xff]  ;;  %v2851_v52 = vld [vmem:[%s5443_s1 + $0x90] sm:$0xff]  ;;  %v170_v55 = vsel %vm151_vm0, %v2815_v38, -inf  ;;  %v169_v61 = vmax.f32 %v161_v47, %v168_v54 }
   0xb   :  { %5531 = vst [vmem:[#allocation9_spill] sm:$0xff] %v2739_v16  ;;  %v2761_v24 = vsel %vm151_vm0, %v2739_v16, -inf  ;;  %v305_v28 = vld [vmem:[%s5445_s3 + $0x40] sm:$0xff]  ;;  %659 = vmatpush.msra.mxu1 %v308_v4  ;;  %2478 = vmatpush.msra.mxu3 %v308_v4  ;;  %v2856_v53 = vld [vmem:[%s5443_s1 + $0x98] sm:$0xff]  ;;  %v174_v56 = vsel %vm151_vm0, %v2829_v43, -inf  ;;  %v2867_v57 = vld [vmem:[%s5443_s1 + $0xa8] sm:$0xff]  ;;  %v171_v62 = vmax.f32 %v163_v48, %v170_v55 }
   0xc   :  { %322 = vmatpush.msra.mxu0 %v307_v17  ;;  %2463 = vmatpush.msra.mxu2 %v307_v17  ;;  %v181_v50 = vmax.f32 %v173_v35, %v180_v20  ;;  %5532 = vst [vmem:[#allocation10_spill] sm:$0xff] %v2856_v53  ;;  %v2872_v58 = vld [vmem:[%s5443_s1 + $0xb0] sm:$0xff]  ;;  %v2877_v59 = vld [vmem:[%s5443_s1 + $0xb8] sm:$0xff]  ;;  %v176_v63 = vsel %vm151_vm0, %v2834_v44, -inf  ;;  %v2887_v1 = vld [vmem:[%s5443_s1 + $0x100] sm:$0xff]  ;;  %v178_v3 = vsel %vm151_vm0, %v2839_v45, -inf }
   0xd   :  { %660 = vmatpush.msra.mxu1 %v307_v17  ;;  %2479 = vmatpush.msra.mxu3 %v307_v17  ;;  %5533 = vst [vmem:[#allocation11_spill] sm:$0xff] %v2867_v57  ;;  %v303_v0 = vld [vmem:[%s5445_s3 + $0x30] sm:$0xff]  ;;  %v182_v4 = vsel %vm151_vm0, %v2846_v51, -inf  ;;  %v184_v10 = vsel %vm151_vm0, %v2851_v52, -inf  ;;  %v2899_v11 = vld [vmem:[%s5443_s1 + $0xc8] sm:$0xff]  ;;  %v2909_v13 = vld [vmem:[%s5443_s1 + $0xd8] sm:$0xff]  ;;  %v175_v17 = vmax.f32 %v167_v60, %v174_v56  ;;  %v179_v19 = vmax.f32 %v171_v62, %v178_v3 }
   0xe   :  { %323 = vmatpush.msra.mxu0 %v306_v18  ;;  %2464 = vmatpush.msra.mxu2 %v306_v18  ;;  %5534 = vst [vmem:[#allocation12_spill] sm:$0xff] %v2872_v58  ;;  %v189_v2 = vmax.f32 %v181_v50, %v2753_v22  ;;  %v2904_v12 = vld [vmem:[%s5443_s1 + $0xd0] sm:$0xff]  ;;  %v186_v20 = vsel %vm151_vm0, %v2856_v53, -inf  ;;  %v302_v21 = vld [vmem:[%s5445_s3 + $0x28] sm:$0xff]  ;;  %v2919_v22 = vld [vmem:[%s5443_s1 + $0x120] sm:$0xff]  ;;  %v190_v33 = vsel %vm151_vm0, %v2867_v57, -inf }
   0xf   :  { %5535 = vst [vmem:[#allocation13_spill] sm:$0xff] %v2877_v59  ;;  %661 = vmatpush.msra.mxu1 %v306_v18  ;;  %2480 = vmatpush.msra.mxu3 %v306_v18  ;;  %v177_v18 = vmax.f32 %v169_v61, %v176_v63  ;;  %v192_v34 = vsel %vm151_vm0, %v2872_v58, -inf  ;;  %v212_v35 = vsel %vm151_vm0, %v2887_v1, -inf  ;;  %v2933_v39 = vld [vmem:[%s5443_s1 + $0xe8] sm:$0xff]  ;;  %v2943_v40 = vld [vmem:[%s5443_s1 + $0xf8] sm:$0xff]  ;;  %v183_v41 = vmax.f32 %v175_v17, %v182_v4  ;;  %v301_v48 = vld [vmem:[%s5445_s3 + $0x20] sm:$0xff] }
  0x10   :  { %324 = vmatpush.msra.mxu0 %v305_v28  ;;  %2465 = vmatpush.msra.mxu2 %v305_v28  ;;  %5536 = vst [vmem:[#allocation14_spill] sm:$0xff] %v2887_v1  ;;  %v197_v32 = vmax.f32 %v189_v2, %v2757_v23  ;;  %v2938_v23 = vld [vmem:[%s5443_s1 + $0xf0] sm:$0xff]  ;;  %v187_v47 = vmax.f32 %v179_v19, %v186_v20  ;;  %v2951_v49 = vld [vmem:[%s5443_s1 + $0x140] sm:$0xff]  ;;  %v198_v54 = vsel %vm151_vm0, %v2899_v11, -inf  ;;  %v200_v55 = vsel %vm151_vm0, %v2904_v12, -inf  ;;  %v2965_v60 = vld [vmem:[%s5443_s1 + $0x108] sm:$0xff] }
  0x11   :  { %5537 = vst [vmem:[#allocation15_spill] sm:$0xff] %v2899_v11  ;;  %662 = vmatpush.msra.mxu1 %v305_v28  ;;  %2481 = vmatpush.msra.mxu3 %v305_v28  ;;  %v194_v28 = vsel %vm151_vm0, %v2877_v59, -inf  ;;  %v185_v46 = vmax.f32 %v177_v18, %v184_v10  ;;  %v220_v56 = vsel %vm151_vm0, %v2919_v22, -inf  ;;  %v2975_v61 = vld [vmem:[%s5443_s1 + $0x118] sm:$0xff]  ;;  %v191_v62 = vmax.f32 %v183_v41, %v190_v33  ;;  %v2983_v10 = vld [vmem:[%s5443_s1 + $0x128] sm:$0xff]  ;;  %v2996_v20 = vld [vmem:[%s5443_s1 + $0x130] sm:$0xff] }
  0x12   :  { %5538 = vst [vmem:[#allocation16_spill] sm:$0xff] %v2904_v12  ;;  %325 = vmatpush.msra.mxu0 %v304_v42  ;;  %2466 = vmatpush.msra.mxu2 %v304_v42  ;;  %v205_v50 = vmax.f32 %v197_v32, %v2761_v24  ;;  %v2970_v24 = vld [vmem:[%s5443_s1 + $0x110] sm:$0xff]  ;;  %v195_v2 = vmax.f32 %v187_v47, %v194_v28  ;;  %v300_v3 = vld [vmem:[%s5445_s3 + $0x18] sm:$0xff]  ;;  %v206_v17 = vsel %vm151_vm0, %v2933_v39, -inf  ;;  %v208_v18 = vsel %vm151_vm0, %v2938_v23, -inf  ;;  %v3006_v33 = vld [vmem:[%s5443_s1 + $0x160] sm:$0xff] }
  0x13   :  { %5539 = vst [vmem:[#allocation17_spill] sm:$0xff] %v2909_v13  ;;  %663 = vmatpush.msra.mxu1 %v304_v42  ;;  %2482 = vmatpush.msra.mxu3 %v304_v42  ;;  %v202_v42 = vsel %vm151_vm0, %v2909_v13, -inf  ;;  %v193_v63 = vmax.f32 %v185_v46, %v192_v34  ;;  %v228_v19 = vsel %vm151_vm0, %v2951_v49, -inf  ;;  %v3001_v32 = vld [vmem:[%s5443_s1 + $0x138] sm:$0xff]  ;;  %v199_v34 = vmax.f32 %v191_v62, %v198_v54  ;;  %v299_v41 = vld [vmem:[%s5445_s3 + $0x10] sm:$0xff]  ;;  %v3014_v47 = vld [vmem:[%s5443_s1 + $0x148] sm:$0xff] }
  0x14   :  { %5540 = vst [vmem:[#allocation18_spill] sm:$0xff] %v2933_v39  ;;  %326 = vmatpush.msra.mxu0 %v303_v0  ;;  %2467 = vmatpush.msra.mxu2 %v303_v0  ;;  %v213_v4 = vmax.f32 %v205_v50, %v212_v35  ;;  %v203_v35 = vmax.f32 %v195_v2, %v202_v42  ;;  %v214_v50 = vsel %vm151_vm0, %v2965_v60, -inf  ;;  %v216_v54 = vsel %vm151_vm0, %v2970_v24, -inf  ;;  %v3030_v42 = vld [vmem:[%s5443_s1 + $0x158] sm:$0xff]  ;;  %v3045_v39 = vld [vmem:[%s5443_s1 + $0x168] sm:$0xff] }
  0x15   :  { %5541 = vst [vmem:[#allocation19_spill] sm:$0xff] %v2938_v23  ;;  %664 = vmatpush.msra.mxu1 %v303_v0  ;;  %2483 = vmatpush.msra.mxu3 %v303_v0  ;;  %v210_v0 = vsel %vm151_vm0, %v2943_v40, -inf  ;;  %v201_v28 = vmax.f32 %v193_v63, %v200_v55  ;;  %v3025_v55 = vld [vmem:[%s5443_s1 + $0x150] sm:$0xff]  ;;  %v207_v62 = vmax.f32 %v199_v34, %v206_v17  ;;  %v3064_v34 = vld [vmem:[%s5443_s1 + $0x178] sm:$0xff]  ;;  %v230_v13 = vsel %vm151_vm0, %v3014_v47, -inf  ;;  %v3076_v12 = vld [vmem:[%s5443_s1 + $0x188] sm:$0xff] }
  0x16   :  { %5542 = vst [vmem:[#allocation20_spill] sm:$0xff] %v2943_v40  ;;  %327 = vmatpush.msra.mxu0 %v302_v21  ;;  %2468 = vmatpush.msra.mxu2 %v302_v21  ;;  %v221_v46 = vmax.f32 %v213_v4, %v220_v56  ;;  %v3035_v56 = vld [vmem:[%s5443_s1 + $0x180] sm:$0xff]  ;;  %v211_v2 = vmax.f32 %v203_v35, %v210_v0  ;;  %v222_v4 = vsel %vm151_vm0, %v2983_v10, -inf  ;;  %v298_v40 = vld [vmem:[%s5445_s3 + $0x8] sm:$0xff]  ;;  %v3050_v17 = vld [vmem:[%s5443_s1 + $0x170] sm:$0xff]  ;;  %v236_v0 = vsel %vm151_vm0, %v3006_v33, -inf }
  0x17   :  { %665 = vmatpush.msra.mxu1 %v302_v21  ;;  %2484 = vmatpush.msra.mxu3 %v302_v21  ;;  %v218_v21 = vsel %vm151_vm0, %v2975_v61, -inf  ;;  %v209_v63 = vmax.f32 %v201_v28, %v208_v18  ;;  %v226_v18 = vsel %vm151_vm0, %v3001_v32, -inf  ;;  %v3069_v28 = vld [vmem:[%s5443_s1 + $0x1a0] sm:$0xff]  ;;  %v215_v35 = vmax.f32 %v207_v62, %v214_v50 }
  0x18   :  { %328 = vmatpush.msra.mxu0 %v301_v48  ;;  %2469 = vmatpush.msra.mxu2 %v301_v48  ;;  %v229_v23 = vmax.f32 %v221_v46, %v228_v19  ;;  %v297_v19 = vld [vmem:[%s5445_s3] sm:$0xff]  ;;  %5543 = vst [vmem:[#allocation21_spill] sm:$0xff] %v3069_v28  ;;  %v219_v16 = vmax.f32 %v211_v2, %v218_v21  ;;  %v232_v11 = vsel %vm151_vm0, %v3025_v55, -inf  ;;  %v234_v50 = vsel %vm151_vm0, %v3030_v42, -inf }
  0x19   :  { %666 = vmatpush.msra.mxu1 %v301_v48  ;;  %2485 = vmatpush.msra.mxu3 %v301_v48  ;;  %v224_v48 = vsel %vm151_vm0, %v2996_v20, -inf  ;;  %v217_v46 = vmax.f32 %v209_v63, %v216_v54  ;;  %v244_v21 = vsel %vm151_vm0, %v3035_v56, -inf }
  0x1a   :  { %329 = vmatpush.msra.mxu0 %v300_v3  ;;  %2470 = vmatpush.msra.mxu2 %v300_v3  ;;  %v237_v54 = vmax.f32 %v229_v23, %v236_v0 }
  0x1b   :  { %667 = vmatpush.msra.mxu1 %v300_v3  ;;  %2486 = vmatpush.msra.mxu3 %v300_v3 }
  0x1c   :  { %330 = vmatpush.msra.mxu0 %v299_v41  ;;  %2471 = vmatpush.msra.mxu2 %v299_v41 }
  0x1d   :  { %11 = vsyncpa [#allocation4], 0  ;;  %v3087_v3 = vld [vmem:[%s5443_s1 + $0x190] sm:$0xff]  ;;  %v3092_v62 = vld [vmem:[%s5443_s1 + $0x198] sm:$0xff]  ;;  %v223_v23 = vmax.f32 %v215_v35, %v222_v4  ;;  %v225_v2 = vmax.f32 %v217_v46, %v224_v48  ;;  %v227_v0 = vmax.f32 %v219_v16, %v226_v18  ;;  %v238_v15 = vsel %vm151_vm0, %v3045_v39, -inf  ;;  %668 = vmatpush.msra.mxu1 %v299_v41  ;;  %2487 = vmatpush.msra.mxu3 %v299_v41  ;;  %s2647_s28 = smov 16  }
  0x1e   :  { %5544 = vst [vmem:[#allocation22_spill] sm:$0xff] %v3087_v3  ;;  %v3097_v63 = vld [vmem:[%s5443_s1 + $0x1c0] sm:$0xff]  ;;  %331 = vmatpush.msra.mxu0 %v298_v40  ;;  %2472 = vmatpush.msra.mxu2 %v298_v40  ;;  %v240_v59 = vsel %vm151_vm0, %v3050_v17, -inf  ;;  %v242_v58 = vsel %vm151_vm0, %v3064_v34, -inf  ;;  %v245_v57 = vmax.f32 %v237_v54, %v244_v21  ;;  %v252_v14 = vsel %vm151_vm0, %v3069_v28, -inf  ;;  %v3110_v16 = vld [vmem:[%s5443_s1 + $0x1a8] sm:$0xff] }
  0x1f   :  { %5545 = vst [vmem:[#allocation23_spill] sm:$0xff] %v3092_v62  ;;  %v3115_v41 = vld [vmem:[%s5443_s1 + $0x1b0] sm:$0xff]  ;;  %v3120_v4 = vld [vmem:[%s5443_s1 + $0x1b8] sm:$0xff]  ;;  %v231_v48 = vmax.f32 %v223_v23, %v230_v13  ;;  %v233_v18 = vmax.f32 %v225_v2, %v232_v11  ;;  %v235_v35 = vmax.f32 %v227_v0, %v234_v50  ;;  %v246_v46 = vsel %vm151_vm0, %v3076_v12, -inf  ;;  %669 = vmatpush.msra.mxu1 %v298_v40  ;;  %v3127_v54 = vld [vmem:[%s5443_s1 + $0x1c8] sm:$0xff]  ;;  %s2648_s15 = smov 112  }
  0x20   :  { %5546 = vst [vmem:[#allocation24_spill] sm:$0xff] %v3097_v63  ;;  %2488 = vmatpush.msra.mxu3 %v298_v40  ;;  %332 = vmatpush.msra.mxu0 %v297_v19  ;;  %v248_v21 = vsel %vm151_vm0, %v3087_v3, -inf  ;;  %v250_v13 = vsel %vm151_vm0, %v3092_v62, -inf  ;;  %v253_v11 = vmax.f32 %v245_v57, %v252_v14  ;;  %v260_v50 = vsel %vm151_vm0, %v3097_v63, -inf  ;;  %v3140_v40 = vld [vmem:[%s5443_s1 + $0x1d0] sm:$0xff]  ;;  %v3145_v23 = vld [vmem:[%s5443_s1 + $0x1d8] sm:$0xff] }
  0x21   :  { %5547 = vst [vmem:[#allocation25_spill] sm:$0xff] %v3110_v16  ;;  %2473 = vmatpush.msra.mxu2 %v297_v19  ;;  %333 = vmatmul.f32.vlgmr.msra.gmra.mxu0 %v2698_v5  ;;  %v3150_v14 = vld [vmem:[%s5443_s1 + $0x1e0] sm:$0xff]  ;;  %v239_v57 = vmax.f32 %v231_v48, %v238_v15  ;;  %v241_v2 = vmax.f32 %v233_v18, %v240_v59  ;;  %v256_v5 = vsel %vm151_vm0, %v3115_v41, -inf  ;;  %v258_v63 = vsel %vm151_vm0, %v3120_v4, -inf  ;;  %v3161_v28 = vld [vmem:[%s5443_s1 + $0x1e8] sm:$0xff]  ;;  %v3166_v15 = vld [vmem:[%s5443_s1 + $0x1f0] sm:$0xff] }
  0x22   :  { %5548 = vst [vmem:[#allocation26_spill] sm:$0xff] %v3115_v41  ;;  %429 = vmatmul.f32.vlgmr.msra.gmra.mxu2 %v2887_v1  ;;  %v243_v0 = vmax.f32 %v235_v35, %v242_v58  ;;  %v254_v1 = vsel %vm151_vm0, %v3110_v16, -inf  ;;  %670 = vmatpush.msra.mxu1 %v297_v19  ;;  %v3171_v58 = vld [vmem:[%s5443_s1 + $0x1f8] sm:$0xff]  ;;  %v261_v35 = vmax.f32 %v253_v11, %v260_v50  ;;  %v266_v41 = vsel %vm151_vm0, %v3145_v23, -inf  ;;  %s2418_s24 = smul.f32 2.0, %s5442_s0  ;;  %s2448_s11 = sshll.u32 %s5447_s5, 4  ;;  %s2449_s11 = int_to_ptr.hbm [resolvable:$true] %s2448_s11 }
  0x23   :  { %5549 = vst [vmem:[#allocation27_spill] sm:$0xff] %v3120_v4  ;;  %2489 = vmatpush.msra.mxu3 %v297_v19  ;;  %v247_v59 = vmax.f32 %v239_v57, %v246_v46  ;;  %v249_v48 = vmax.f32 %v241_v2, %v248_v21  ;;  %v262_v19 = vsel %vm151_vm0, %v3127_v54, -inf  ;;  %v264_v4 = vsel %vm151_vm0, %v3140_v40, -inf  ;;  %s2649_s14 = smov [#allocation3]  }
  0x24   :  { %5550 = vst [vmem:[#allocation28_spill] sm:$0xff] %v3140_v40  ;;  %v251_v18 = vmax.f32 %v243_v0, %v250_v13  ;;  %v268_v16 = vsel %vm151_vm0, %v3150_v14, -inf  ;;  %v270_v46 = vsel %vm151_vm0, %v3161_v28, -inf  ;;  %v272_v21 = vsel %vm151_vm0, %v3166_v15, -inf  ;;  %s2419_s26 = smul.f32 %s2418_s24, %s5442_s0 }
  0x25   :  { %5551 = vst [vmem:[#allocation29_spill] sm:$0xff] %v3145_v23  ;;  %v255_v53 = vmax.f32 %v247_v59, %v254_v1  ;;  %v257_v62 = vmax.f32 %v249_v48, %v256_v5  ;;  %v274_v13 = vsel %vm151_vm0, %v3171_v58, -inf  ;;  %v269_v2 = vmax.f32 %v261_v35, %v268_v16 }
  0x26   :  { %v259_v3 = vmax.f32 %v251_v18, %v258_v63  ;;  %vm1504_vm2 = vcmask 31744  }
  0x27   :  { %v263_v11 = vmax.f32 %v255_v53, %v262_v19  ;;  %v265_v50 = vmax.f32 %v257_v62, %v264_v4 }
  0x28   :  { %v267_v57 = vmax.f32 %v259_v3, %v266_v41 }
  0x29   :  { %v271_v0 = vmax.f32 %v263_v11, %v270_v46  ;;  %v273_v23 = vmax.f32 %v265_v50, %v272_v21  ;;  %336 = vmatmul.f32.gmra.mxu0 %v2766_v25 }
  0x2a   :  { %v275_v40 = vmax.f32 %v267_v57, %v274_v13  ;;  %432 = vmatmul.f32.gmra.mxu2 %v2965_v60 }
  0x2b   :  { %v276_v5 = vmax.f32 %v269_v2, %v271_v0  ;;  %v5553_v2 = vld [vmem:[#allocation23_spill] sm:$0xff]  ;;  %v5554_v0 = vld [vmem:[#allocation10_spill] sm:$0xff] }
  0x2c   :  { %v277_v1 = vmax.f32 %v273_v23, %v275_v40 }
  0x2e   :  { %v278_v63 = vmax.f32 %v276_v5, %v277_v1 }
  0x30   :  { %279 = vmax.xlane.f32.xlu0 %v278_v63  ;;  %v5555_v63 = vld [vmem:[#allocation7_spill] sm:$0xff] }
  0x31   :  { %339 = vmatmul.f32.gmra.mxu0 %v2771_v26 }
  0x32   :  { %435 = vmatmul.f32.gmra.mxu2 %v2970_v24 }
  0x39   :  { %342 = vmatmul.f32.gmra.mxu0 %v2776_v27 }
  0x3a   :  { %438 = vmatmul.f32.gmra.mxu2 %v2975_v61 }
  0x41   :  { %345 = vmatmul.f32.gmra.mxu0 %v2703_v6 }
  0x42   :  { %441 = vmatmul.f32.gmra.mxu2 %v2919_v22 }
  0x49   :  { %348 = vmatmul.f32.gmra.mxu0 %v2784_v29 }
  0x4a   :  { %444 = vmatmul.f32.gmra.mxu2 %v2983_v10 }
  0x51   :  { %351 = vmatmul.f32.gmra.mxu0 %v2789_v30 }
  0x52   :  { %447 = vmatmul.f32.gmra.mxu2 %v2996_v20 }
  0x59   :  { %354 = vmatmul.f32.gmra.mxu0 %v2794_v31 }
  0x5a   :  { %450 = vmatmul.f32.gmra.mxu2 %v3001_v32 }
  0x61   :  { %357 = vmatmul.f32.gmra.mxu0 %v2708_v7  ;;  %v2646_v7 = vmov 1000.0  }
  0x62   :  { %453 = vmatmul.f32.gmra.mxu2 %v2951_v49  ;;  %2505 = vrcp.f32 %v2646_v7  ;;  %v5556_v7 = vld [vmem:[#allocation21_spill] sm:$0xff] }
  0x69   :  { %360 = vmatmul.f32.gmra.mxu0 %v2805_v36 }
  0x6a   :  { %456 = vmatmul.f32.gmra.mxu2 %v3014_v47 }
  0x71   :  { %363 = vmatmul.f32.gmra.mxu0 %v2810_v37  ;;  %v2506_v37 = vpop.eup %2505 }
  0x72   :  { %459 = vmatmul.f32.gmra.mxu2 %v3025_v55  ;;  %vm293_vm1 = vweird.f32 %v2506_v37 }
  0x79   :  { %366 = vmatmul.f32.gmra.mxu0 %v2815_v38  ;;  %v289_v38 = vmul.f32 1000.0, %v2506_v37 }
  0x7a   :  { %462 = vmatmul.f32.gmra.mxu2 %v3030_v42 }
  0x81   :  { %369 = vmatmul.f32.gmra.mxu0 %v2713_v8  ;;  %v3220_v8 = vld [vmem:[%s5446_s4] ss:$0 sm:$0xff] }
  0x82   :  { %465 = vmatmul.f32.gmra.mxu2 %v3006_v33 }
  0x89   :  { %372 = vmatmul.f32.gmra.mxu0 %v2829_v43 }
  0x8a   :  { %468 = vmatmul.f32.gmra.mxu2 %v3045_v39 }
  0x91   :  { %375 = vmatmul.f32.gmra.mxu0 %v2834_v44  ;;  %v290_v44 = vsub.f32 1.0, %v289_v38 }
  0x92   :  { %471 = vmatmul.f32.gmra.mxu2 %v3050_v17 }
  0x93   :  { %v291_v41 = vmul.f32 %v2506_v37, %v290_v44 }
  0x95   :  { %v292_v59 = vadd.f32 %v2506_v37, %v291_v41 }
  0x97   :  { %v294_v19 = vsel %vm293_vm1, %v2506_v37, %v292_v59  ;;  %v5560_v59 = vld [vmem:[#allocation12_spill] sm:$0xff] }
  0x99   :  { %378 = vmatmul.f32.gmra.mxu0 %v2839_v45 }
  0x9a   :  { %474 = vmatmul.f32.gmra.mxu2 %v3064_v34 }
  0x9e   :  { %v334_v43 = vpop.f32.mrf.mxu0 }
  0x9f   :  { %v3223_v53 = vadd.f32 %v3220_v8, %v334_v43 }
  0xa1   :  { %381 = vmatmul.f32.gmra.mxu0 %v2718_v9  ;;  %928 = vrot.lane.b32.xlu0 %v3223_v53, %s2647_s28 }
  0xa2   :  { %477 = vmatmul.f32.gmra.mxu2 %v3035_v56 }
  0xa3   :  { %v280_v3 = vpop.xlane.xlu0 %279 }
  0xa4   :  { %v281_v45 = vrot.slane %v280_v3, 4 }
  0xa5   :  { %v430_v62 = vpop.f32.mrf.mxu2 }
  0xa6   :  { %v282_v16 = vmax.f32 %v280_v3, %v281_v45  ;;  %v3230_v4 = vadd.f32 %v3220_v8, %v430_v62  ;;  %v337_v40 = vpop.f32.mrf.mxu0  ;;  %v5557_v45 = vld [vmem:[#allocation11_spill] sm:$0xff]  ;;  %v5558_v62 = vld [vmem:[#allocation25_spill] sm:$0xff] }
  0xa7   :  { %v3235_v56 = vadd.f32 %v3220_v8, %v337_v40 }
  0xa8   :  { %v283_v23 = vrot.slane %v282_v16, 2  ;;  %992 = vrot.lane.b32.xlu2 %v3230_v4, %s2647_s28 }
  0xa9   :  { %930 = vrot.lane.b32.xlu1 %v3235_v56, %s2647_s28  ;;  %384 = vmatmul.f32.gmra.mxu0 %v2846_v51  ;;  %v5552_v51 = vld [vmem:[#allocation22_spill] sm:$0xff] }
  0xaa   :  { %v284_v9 = vmax.f32 %v282_v16, %v283_v23  ;;  %480 = vmatmul.f32.gmra.mxu2 %v3076_v12 }
  0xac   :  { %v285_v48 = vrot.slane %v284_v9, 1 }
  0xad   :  { %v433_v18 = vpop.f32.mrf.mxu2 }
  0xae   :  { %v286_v35 = vmax.f32 %v284_v9, %v285_v48  ;;  %v3242_v46 = vadd.f32 %v3220_v8, %v433_v18  ;;  %v340_v21 = vpop.f32.mrf.mxu0  ;;  %v5559_v9 = vld [vmem:[#allocation26_spill] sm:$0xff] }
  0xaf   :  { %v3245_v13 = vadd.f32 %v3220_v8, %v340_v21  ;;  %v5561_v21 = vld [vmem:[#allocation13_spill] sm:$0xff] }
  0xb0   :  { %2490 = vpush %v286_v35  ;;  %994 = vrot.lane.b32.xlu0 %v3242_v46, %s2647_s28 }
  0xb1   :  { %2492 = vpush %v294_v19  ;;  %932 = vrot.lane.b32.xlu1 %v3245_v13, %s2647_s28  ;;  %387 = vmatmul.f32.gmra.mxu0 %v2851_v52 }
  0xb2   :  { %483 = vmatmul.f32.gmra.mxu2 %v5552_v51  ;;  %v5562_v51 = vld [vmem:[#allocation27_spill] sm:$0xff] }
  0xb5   :  { %v436_v12 = vpop.f32.mrf.mxu2 }
  0xb6   :  { %v343_v11 = vpop.f32.mrf.mxu0  ;;  %v3254_v50 = vadd.f32 %v3220_v8, %v436_v12 }
  0xb7   :  { %v3257_v57 = vadd.f32 %v3220_v8, %v343_v11 }
  0xb9   :  { %934 = vrot.lane.b32.xlu2 %v3257_v57, %s2647_s28  ;;  %996 = vrot.lane.b32.xlu1 %v3254_v50, %s2647_s28 }
  0xba   :  { %486 = vmatmul.f32.gmra.mxu2 %v5553_v2  ;;  %390 = vmatmul.f32.gmra.mxu0 %v5554_v0 }
  0xbd   :  { %v439_v52 = vpop.f32.mrf.mxu2 }
  0xbe   :  { %v346_v5 = vpop.f32.mrf.mxu0  ;;  %v3266_v1 = vadd.f32 %v3220_v8, %v439_v52  ;;  %v87_v52 = vld [vmem:[%s5444_s2] sm:$0xff] }
  0xbf   :  { %v3276_v44 = vadd.f32 %v3220_v8, %v346_v5  ;;  %v119_v5 = vld [vmem:[%s5444_s2 + $0x100] sm:$0xff] }
  0xc1   :  { %998 = vrot.lane.b32.xlu2 %v3266_v1, %s2647_s28 }
  0xc2   :  { %393 = vmatmul.f32.gmra.mxu0 %v5555_v63  ;;  %489 = vmatmul.f32.gmra.mxu2 %v5556_v7  ;;  %v5563_v63 = vld [vmem:[#allocation24_spill] sm:$0xff] }
  0xc3   :  { %v5564_v7 = vld [vmem:[#allocation8_spill] sm:$0xff] }
  0xc5   :  { %v442_v37 = vpop.f32.mrf.mxu2 }
  0xc6   :  { %v3273_v38 = vadd.f32 %v3220_v8, %v442_v37  ;;  %v349_v43 = vpop.f32.mrf.mxu0 }
  0xc7   :  { %v3279_v3 = vadd.f32 %v3220_v8, %v349_v43 }
  0xc8   :  { %1000 = vrot.lane.b32.xlu0 %v3273_v38, %s2647_s28 }
  0xc9   :  { %936 = vrot.lane.b32.xlu2 %v3276_v44, %s2647_s28  ;;  %938 = vrot.lane.b32.xlu1 %v3279_v3, %s2647_s28 }
  0xca   :  { %396 = vmatmul.f32.gmra.mxu0 %v5557_v45  ;;  %492 = vmatmul.f32.gmra.mxu2 %v5558_v62 }
  0xcd   :  { %v445_v16 = vpop.f32.mrf.mxu2 }
  0xce   :  { %v352_v41 = vpop.f32.mrf.mxu0  ;;  %v3290_v40 = vadd.f32 %v3220_v8, %v445_v16 }
  0xcf   :  { %v3293_v23 = vadd.f32 %v3220_v8, %v352_v41 }
  0xd1   :  { %940 = vrot.lane.b32.xlu2 %v3293_v23, %s2647_s28  ;;  %1002 = vrot.lane.b32.xlu1 %v3290_v40, %s2647_s28 }
  0xd2   :  { %495 = vmatmul.f32.gmra.mxu2 %v5559_v9  ;;  %399 = vmatmul.f32.gmra.mxu0 %v5560_v59  ;;  %v88_v9 = vld [vmem:[%s5444_s2 + $0x8] sm:$0xff] }
  0xd3   :  { %v120_v59 = vld [vmem:[%s5444_s2 + $0x108] sm:$0xff] }
  0xd5   :  { %v448_v48 = vpop.f32.mrf.mxu2 }
  0xd6   :  { %v355_v18 = vpop.f32.mrf.mxu0  ;;  %v3302_v35 = vadd.f32 %v3220_v8, %v448_v48  ;;  %v5565_v48 = vld [vmem:[#allocation6_spill] sm:$0xff] }
  0xd7   :  { %v3305_v19 = vadd.f32 %v3220_v8, %v355_v18 }
  0xd9   :  { %1004 = vrot.lane.b32.xlu2 %v3302_v35, %s2647_s28  ;;  %942 = vrot.lane.b32.xlu1 %v3305_v19, %s2647_s28 }
  0xda   :  { %402 = vmatmul.f32.gmra.mxu0 %v5561_v21  ;;  %498 = vmatmul.f32.gmra.mxu2 %v5562_v51  ;;  %v5566_v21 = vld [vmem:[#allocation14_spill] sm:$0xff] }
  0xdd   :  { %v451_v12 = vpop.f32.mrf.mxu2 }
  0xde   :  { %v3314_v11 = vadd.f32 %v3220_v8, %v451_v12  ;;  %v358_v2 = vpop.f32.mrf.mxu0 }
  0xdf   :  { %v3317_v0 = vadd.f32 %v3220_v8, %v358_v2 }
  0xe0   :  { %1006 = vrot.lane.b32.xlu0 %v3314_v11, %s2647_s28 }
  0xe1   :  { %s2491_s29 = spop %2490  ;;  %944 = vrot.lane.b32.xlu2 %v3317_v0, %s2647_s28 }
  0xe2   :  { %s2493_s30 = spop %2492  ;;  %501 = vmatmul.f32.gmra.mxu2 %v5563_v63  ;;  %405 = vmatmul.f32.gmra.mxu0 %v5564_v7 }
  0xe3   :  { %s3323_s6 = smul.f32 %s2493_s30, %s2491_s29 }
  0xe5   :  { %v3334_v37 = vstv %s3323_s6  ;;  %v454_v43 = vpop.f32.mrf.mxu2 }
  0xe6   :  { %v527_v45 = vmul.f32 %v3334_v37, %v87_v52  ;;  %v559_v62 = vmul.f32 %v3334_v37, %v119_v5  ;;  %v3339_v16 = vadd.f32 %v3220_v8, %v454_v43  ;;  %v361_v41 = vpop.f32.mrf.mxu0  ;;  %v528_v2 = vmul.f32 %v3334_v37, %v88_v9  ;;  %v5567_v5 = vld [vmem:[#allocation15_spill] sm:$0xff]  ;;  %v121_v9 = vld [vmem:[%s5444_s2 + $0x110] sm:$0xff] }
  0xe7   :  { %v3350_v12 = vadd.f32 %v3220_v8, %v361_v41  ;;  %v560_v52 = vmul.f32 %v3334_v37, %v120_v59  ;;  %v89_v41 = vld [vmem:[%s5444_s2 + $0x10] sm:$0xff] }
  0xe8   :  { %v591_v18 = vadd.f32 %v527_v45, %v5565_v48  ;;  %v623_v51 = vadd.f32 %v559_v62, %v5566_v21  ;;  %1008 = vrot.lane.b32.xlu1 %v3339_v16, %s2647_s28  ;;  %v592_v7 = vadd.f32 %v528_v2, %v2766_v25 }
  0xe9   :  { %946 = vrot.lane.b32.xlu0 %v3350_v12, %s2647_s28  ;;  %v624_v43 = vadd.f32 %v560_v52, %v2965_v60  ;;  %v5569_v52 = vld [vmem:[#allocation28_spill] sm:$0xff] }
  0xea   :  { %671 = vmatmul.f32.vlgmr.msra.gmra.mxu1 %v591_v18  ;;  %767 = vmatmul.f32.vlgmr.msra.gmra.mxu3 %v623_v51  ;;  %v561_v18 = vmul.f32 %v3334_v37, %v121_v9  ;;  %v5568_v51 = vld [vmem:[#allocation16_spill] sm:$0xff] }
  0xeb   :  { %408 = vmatmul.f32.gmra.mxu0 %v5567_v5  ;;  %504 = vmatmul.f32.gmra.mxu2 %v3127_v54  ;;  %v529_v54 = vmul.f32 %v3334_v37, %v89_v41  ;;  %v122_v41 = vld [vmem:[%s5444_s2 + $0x118] sm:$0xff] }
  0xed   :  { %v457_v63 = vpop.f32.mrf.mxu2  ;;  %v593_v5 = vadd.f32 %v529_v54, %v2771_v26  ;;  %v562_v54 = vmul.f32 %v3334_v37, %v122_v41 }
  0xee   :  { %v3363_v45 = vadd.f32 %v3220_v8, %v457_v63  ;;  %v364_v62 = vpop.f32.mrf.mxu0  ;;  %v625_v63 = vadd.f32 %v561_v18, %v2970_v24  ;;  %v5571_v18 = vld [vmem:[#allocation17_spill] sm:$0xff] }
  0xef   :  { %v3372_v59 = vadd.f32 %v3220_v8, %v364_v62 }
  0xf0   :  { %1010 = vrot.lane.b32.xlu2 %v3363_v45, %s2647_s28 }
  0xf1   :  { %948 = vrot.lane.b32.xlu1 %v3372_v59, %s2647_s28 }
  0xf2   :  { %674 = vmatmul.f32.gmra.mxu1 %v592_v7  ;;  %770 = vmatmul.f32.gmra.mxu3 %v624_v43  ;;  %v90_v43 = vld [vmem:[%s5444_s2 + $0x18] sm:$0xff] }
  0xf3   :  { %411 = vmatmul.f32.gmra.mxu0 %v5568_v51  ;;  %507 = vmatmul.f32.gmra.mxu2 %v5569_v52  ;;  %v530_v26 = vmul.f32 %v3334_v37, %v90_v43  ;;  %v91_v43 = vld [vmem:[%s5444_s2 + $0x20] sm:$0xff] }
  0xf4   :  { %v531_v41 = vmul.f32 %v3334_v37, %v91_v43  ;;  %v92_v43 = vld [vmem:[%s5444_s2 + $0x28] sm:$0xff] }
  0xf5   :  { %v460_v2 = vpop.f32.mrf.mxu2  ;;  %v594_v52 = vadd.f32 %v530_v26, %v2776_v27  ;;  %v123_v27 = vld [vmem:[%s5444_s2 + $0x120] sm:$0xff] }
  0xf6   :  { %v3385_v62 = vadd.f32 %v3220_v8, %v460_v2  ;;  %v367_v7 = vpop.f32.mrf.mxu0  ;;  %v5572_v2 = vld [vmem:[#allocation29_spill] sm:$0xff]  ;;  %v563_v26 = vmul.f32 %v3334_v37, %v123_v27  ;;  %v5577_v27 = vld [vmem:[#allocation18_spill] sm:$0xff] }
  0xf7   :  { %v3394_v9 = vadd.f32 %v3220_v8, %v367_v7  ;;  %v626_v7 = vadd.f32 %v562_v54, %v2975_v61  ;;  %v5575_v54 = vld [vmem:[#allocation9_spill] sm:$0xff] }
  0xf8   :  { %5570 = vst [vmem:[#allocation22_spill] sm:$0xff] %v3385_v62  ;;  %1012 = vrot.lane.b32.xlu0 %v3385_v62, %s2647_s28 }
  0xf9   :  { %950 = vrot.lane.b32.xlu2 %v3394_v9, %s2647_s28 }
  0xfa   :  { %677 = vmatmul.f32.gmra.mxu1 %v593_v5  ;;  %773 = vmatmul.f32.gmra.mxu3 %v625_v63 }
  0xfb   :  { %414 = vmatmul.f32.gmra.mxu0 %v5571_v18  ;;  %510 = vmatmul.f32.gmra.mxu2 %v5572_v2 }
  0xfd   :  { %v463_v51 = vpop.f32.mrf.mxu2 }
  0xfe   :  { %v3407_v62 = vadd.f32 %v3220_v8, %v463_v51  ;;  %v370_v5 = vpop.f32.mrf.mxu0 }
  0xff   :  { %v3410_v63 = vadd.f32 %v3220_v8, %v370_v5  ;;  %v595_v5 = vadd.f32 %v531_v41, %v2703_v6  ;;  %v532_v6 = vmul.f32 %v3334_v37, %v92_v43 }
 0x100   :  { %5573 = vst [vmem:[#allocation23_spill] sm:$0xff] %v3407_v62  ;;  %1014 = vrot.lane.b32.xlu1 %v3407_v62, %s2647_s28 }
 0x101   :  { %5574 = vst [vmem:[#allocation10_spill] sm:$0xff] %v3410_v63  ;;  %952 = vrot.lane.b32.xlu0 %v3410_v63, %s2647_s28 }
 0x102   :  { %680 = vmatmul.f32.gmra.mxu1 %v594_v52  ;;  %776 = vmatmul.f32.gmra.mxu3 %v626_v7  ;;  %v627_v52 = vadd.f32 %v563_v26, %v2919_v22 }
 0x103   :  { %417 = vmatmul.f32.gmra.mxu0 %v5575_v54  ;;  %513 = vmatmul.f32.gmra.mxu2 %v3150_v14  ;;  %v124_v14 = vld [vmem:[%s5444_s2 + $0x128] sm:$0xff] }
 0x104   :  { %v564_v22 = vmul.f32 %v3334_v37, %v124_v14 }
 0x105   :  { %v466_v18 = vpop.f32.mrf.mxu2 }
 0x106   :  { %v3427_v51 = vadd.f32 %v3220_v8, %v466_v18  ;;  %v373_v2 = vpop.f32.mrf.mxu0  ;;  %v596_v18 = vadd.f32 %v532_v6, %v2784_v29  ;;  %v993_v29 = vpop.permute.xlu2 %992  ;;  %v5580_v6 = vld [vmem:[#allocation19_spill] sm:$0xff] }
 0x107   :  { %v3432_v7 = vadd.f32 %v3220_v8, %v373_v2  ;;  %v628_v2 = vadd.f32 %v564_v22, %v2983_v10 }
 0x108   :  { %1016 = vrot.lane.b32.xlu2 %v3427_v51, %s2647_s28 }
 0x109   :  { %5576 = vst [vmem:[#allocation7_spill] sm:$0xff] %v3432_v7  ;;  %954 = vrot.lane.b32.xlu1 %v3432_v7, %s2647_s28 }
 0x10a   :  { %683 = vmatmul.f32.gmra.mxu1 %v595_v5  ;;  %779 = vmatmul.f32.gmra.mxu3 %v627_v52  ;;  %v93_v52 = vld [vmem:[%s5444_s2 + $0x30] sm:$0xff] }
 0x10b   :  { %420 = vmatmul.f32.gmra.mxu0 %v5577_v27  ;;  %516 = vmatmul.f32.gmra.mxu2 %v3161_v28  ;;  %v125_v28 = vld [vmem:[%s5444_s2 + $0x130] sm:$0xff]  ;;  %v533_v43 = vmul.f32 %v3334_v37, %v93_v52 }
 0x10c   :  { %v565_v14 = vmul.f32 %v3334_v37, %v125_v28  ;;  %v126_v28 = vld [vmem:[%s5444_s2 + $0x138] sm:$0xff] }
 0x10d   :  { %v469_v41 = vpop.f32.mrf.mxu2 }
 0x10e   :  { %v3449_v26 = vadd.f32 %v3220_v8, %v469_v41  ;;  %v376_v54 = vpop.f32.mrf.mxu0 }
 0x10f   :  { %v3454_v5 = vadd.f32 %v3220_v8, %v376_v54 }
 0x110   :  { %5578 = vst [vmem:[#allocation21_spill] sm:$0xff] %v3449_v26  ;;  %1018 = vrot.lane.b32.xlu0 %v3449_v26, %s2647_s28 }
 0x111   :  { %5579 = vst [vmem:[#allocation11_spill] sm:$0xff] %v3454_v5  ;;  %956 = vrot.lane.b32.xlu2 %v3454_v5, %s2647_s28 }
 0x112   :  { %686 = vmatmul.f32.gmra.mxu1 %v596_v18  ;;  %782 = vmatmul.f32.gmra.mxu3 %v628_v2  ;;  %v597_v18 = vadd.f32 %v533_v43, %v2789_v30  ;;  %v629_v2 = vadd.f32 %v565_v14, %v2996_v20  ;;  %v566_v43 = vmul.f32 %v3334_v37, %v126_v28 }
 0x113   :  { %423 = vmatmul.f32.gmra.mxu0 %v5580_v6  ;;  %v929_v27 = vpop.permute.xlu0 %928  ;;  %519 = vmatmul.f32.gmra.mxu2 %v3166_v15  ;;  %v94_v15 = vld [vmem:[%s5444_s2 + $0x38] sm:$0xff]  ;;  %v3489_v30 = vpop.permute.xlu2 %934  ;;  %v5583_v6 = vld [vmem:[#allocation20_spill] sm:$0xff] }
 0x114   :  { %v1120_v52 = vsub.f32 %v5565_v48, %v929_v27  ;;  %v534_v20 = vmul.f32 %v3334_v37, %v94_v15 }
 0x115   :  { %v472_v22 = vpop.f32.mrf.mxu2 }
 0x116   :  { %v3471_v41 = vadd.f32 %v3220_v8, %v472_v22  ;;  %v379_v54 = vpop.f32.mrf.mxu0  ;;  %v1184_v48 = vmul.f32 %v1120_v52, %v1120_v52  ;;  %v1152_v22 = vsub.f32 %v5566_v21, %v993_v29  ;;  %v127_v29 = vld [vmem:[%s5444_s2 + $0x140] sm:$0xff] }
 0x117   :  { %v3476_v5 = vadd.f32 %v3220_v8, %v379_v54 }
 0x118   :  { %5581 = vst [vmem:[#allocation25_spill] sm:$0xff] %v3471_v41  ;;  %1020 = vrot.lane.b32.xlu1 %v3471_v41, %s2647_s28  ;;  %v1216_v21 = vmul.f32 %v1152_v22, %v1152_v22 }
 0x119   :  { %5582 = vst [vmem:[#allocation26_spill] sm:$0xff] %v3476_v5  ;;  %958 = vrot.lane.b32.xlu0 %v3476_v5, %s2647_s28  ;;  %v630_v5 = vadd.f32 %v566_v43, %v3001_v32  ;;  %v567_v32 = vmul.f32 %v3334_v37, %v127_v29  ;;  %v2510_v29 = vld [vmem:[%s5443_s1 + $0x10] sm:$0xff] }
 0x11a   :  { %689 = vmatmul.f32.gmra.mxu1 %v597_v18  ;;  %785 = vmatmul.f32.gmra.mxu3 %v629_v2  ;;  %v598_v2 = vadd.f32 %v534_v20, %v2794_v31 }
 0x11b   :  { %v931_v14 = vpop.permute.xlu1 %930  ;;  %426 = vmatmul.f32.gmra.mxu0 %v5583_v6  ;;  %522 = vmatmul.f32.gmra.mxu2 %v3171_v58  ;;  %v95_v58 = vld [vmem:[%s5444_s2 + $0x40] sm:$0xff]  ;;  %v999_v43 = vpop.permute.xlu2 %998  ;;  %v631_v22 = vadd.f32 %v567_v32, %v2951_v49 }
 0x11c   :  { %v1121_v15 = vsub.f32 %v2766_v25, %v931_v14  ;;  %v535_v31 = vmul.f32 %v3334_v37, %v95_v58 }
 0x11d   :  { %v475_v27 = vpop.f32.mrf.mxu2 }
 0x11e   :  { %v3497_v54 = vadd.f32 %v3220_v8, %v475_v27  ;;  %v382_v18 = vpop.f32.mrf.mxu0  ;;  %v1185_v25 = vmul.f32 %v1121_v15, %v1121_v15  ;;  %v96_v27 = vld [vmem:[%s5444_s2 + $0x48] sm:$0xff] }
 0x11f   :  { %v3515_v52 = vadd.f32 %v3220_v8, %v382_v18  ;;  %v128_v18 = vld [vmem:[%s5444_s2 + $0x148] sm:$0xff]  ;;  %v536_v49 = vmul.f32 %v3334_v37, %v96_v27  ;;  %v97_v27 = vld [vmem:[%s5444_s2 + $0x50] sm:$0xff] }
 0x120   :  { %5584 = vst [vmem:[#allocation12_spill] sm:$0xff] %v3497_v54  ;;  %1022 = vrot.lane.b32.xlu2 %v3497_v54, %s2647_s28  ;;  %1312 = vrot.lane.b32.xlu1 %v1184_v48, %s2648_s15 }
 0x121   :  { %1376 = vrot.lane.b32.xlu0 %v1216_v21, %s2648_s15  ;;  %5585 = vst [vmem:[#allocation13_spill] sm:$0xff] %v3515_v52  ;;  %v568_v21 = vmul.f32 %v3334_v37, %v128_v18 }
 0x122   :  { %692 = vmatmul.f32.gmra.mxu1 %v598_v2  ;;  %788 = vmatmul.f32.gmra.mxu3 %v630_v5  ;;  %v995_v48 = vpop.permute.xlu0 %994  ;;  %v3523_v5 = vld [vmem:[%s5443_s1 + $0x40] sm:$0xff] }
 0x123   :  { %v933_v28 = vpop.permute.xlu1 %932  ;;  %v599_v6 = vadd.f32 %v3523_v5, %v535_v31  ;;  %v1153_v15 = vsub.f32 %v2965_v60, %v995_v48  ;;  %v600_v60 = vadd.f32 %v536_v49, %v2805_v36  ;;  %v632_v48 = vadd.f32 %v568_v21, %v3014_v47 }
 0x124   :  { %v537_v47 = vmul.f32 %v3334_v37, %v97_v27 }
 0x125   :  { %v478_v20 = vpop.f32.mrf.mxu2  ;;  %v1217_v31 = vmul.f32 %v1153_v15, %v1153_v15 }
 0x126   :  { %v3518_v14 = vadd.f32 %v3220_v8, %v478_v20  ;;  %v385_v2 = vpop.f32.mrf.mxu0 }
 0x127   :  { %v3542_v58 = vadd.f32 %v3220_v8, %v385_v2 }
 0x128   :  { %5586 = vst [vmem:[#allocation27_spill] sm:$0xff] %v3518_v14  ;;  %1314 = vrot.lane.b32.xlu2 %v1185_v25, %s2648_s15  ;;  %960 = vrot.lane.b32.xlu1 %v3515_v52, %s2647_s28  ;;  %v1122_v25 = vsub.f32 %v2510_v29, %v933_v28  ;;  %v129_v28 = vld [vmem:[%s5444_s2 + $0x150] sm:$0xff] }
 0x129   :  { %1024 = vrot.lane.b32.xlu0 %v3518_v14, %s2647_s28  ;;  %5587 = vst [vmem:[#allocation24_spill] sm:$0xff] %v3542_v58  ;;  %v569_v18 = vmul.f32 %v3334_v37, %v129_v28  ;;  %v3571_v29 = vld [vmem:[%s5443_s1 + $0x50] sm:$0xff] }
 0x12a   :  { %695 = vmatmul.f32.gmra.mxu1 %v599_v6  ;;  %791 = vmatmul.f32.gmra.mxu3 %v631_v22  ;;  %v937_v6 = vpop.permute.xlu2 %936  ;;  %v1186_v22 = vmul.f32 %v1122_v25, %v1122_v25 }
 0x12b   :  { %v997_v32 = vpop.permute.xlu1 %996  ;;  %v633_v25 = vadd.f32 %v569_v18, %v3025_v55 }
 0x12c   :  { %v1154_v36 = vsub.f32 %v2970_v24, %v997_v32  ;;  %v601_v24 = vadd.f32 %v3571_v29, %v537_v47  ;;  %v130_v32 = vld [vmem:[%s5444_s2 + $0x158] sm:$0xff] }
 0x12d   :  { %v481_v20 = vpop.f32.mrf.mxu2  ;;  %v570_v27 = vmul.f32 %v3334_v37, %v130_v32 }
 0x12e   :  { %v3563_v2 = vadd.f32 %v3220_v8, %v481_v20  ;;  %v388_v15 = vpop.f32.mrf.mxu0  ;;  %v1218_v49 = vmul.f32 %v1154_v36, %v1154_v36  ;;  %v1155_v36 = vsub.f32 %v2975_v61, %v999_v43  ;;  %v99_v61 = vld [vmem:[%s5444_s2 + $0x60] sm:$0xff] }
 0x12f   :  { %v3566_v21 = vadd.f32 %v3220_v8, %v388_v15  ;;  %v131_v43 = vld [vmem:[%s5444_s2 + $0x160] sm:$0xff]  ;;  %v539_v32 = vmul.f32 %v3334_v37, %v99_v61 }
 0x130   :  { %962 = vrot.lane.b32.xlu2 %v3542_v58, %s2647_s28  ;;  %1378 = vrot.lane.b32.xlu1 %v1217_v31, %s2648_s15  ;;  %5588 = vst [vmem:[#allocation8_spill] sm:$0xff] %v3563_v2  ;;  %v98_v31 = vld [vmem:[%s5444_s2 + $0x58] sm:$0xff] }
 0x131   :  { %1316 = vrot.lane.b32.xlu0 %v1186_v22, %s2648_s15  ;;  %5589 = vst [vmem:[#allocation6_spill] sm:$0xff] %v3566_v21  ;;  %v538_v22 = vmul.f32 %v3334_v37, %v98_v31 }
 0x132   :  { %698 = vmatmul.f32.gmra.mxu1 %v600_v60  ;;  %794 = vmatmul.f32.gmra.mxu3 %v632_v48  ;;  %v2512_v60 = vld [vmem:[%s5443_s1 + $0x18] sm:$0xff]  ;;  %v3588_v48 = vpop.permute.xlu2 %940 }
 0x133   :  { %v1123_v55 = vsub.f32 %v2512_v60, %v3489_v30  ;;  %v3601_v30 = vld [vmem:[%s5443_s1 + $0x58] sm:$0xff] }
 0x134   :  { %v602_v15 = vadd.f32 %v3601_v30, %v538_v22 }
 0x135   :  { %v484_v20 = vpop.f32.mrf.mxu2  ;;  %v1187_v47 = vmul.f32 %v1123_v55, %v1123_v55 }
 0x136   :  { %v3595_v28 = vadd.f32 %v3220_v8, %v484_v20  ;;  %v571_v20 = vmul.f32 %v3334_v37, %v131_v43  ;;  %v2516_v43 = vld [vmem:[%s5443_s1 + $0x120] sm:$0xff] }
 0x137   :  { %v391_v18 = vpop.f32.mrf.mxu0 }
 0x138   :  { %1380 = vrot.lane.b32.xlu2 %v1218_v49, %s2648_s15  ;;  %1026 = vrot.lane.b32.xlu1 %v3563_v2, %s2647_s28  ;;  %5590 = vst [vmem:[#allocation14_spill] sm:$0xff] %v3595_v28  ;;  %v634_v49 = vadd.f32 %v570_v27, %v3030_v42  ;;  %v3623_v60 = vadd.f32 %v3220_v8, %v391_v18  ;;  %v100_v18 = vld [vmem:[%s5444_s2 + $0x68] sm:$0xff] }
 0x139   :  { %964 = vrot.lane.b32.xlu0 %v3566_v21, %s2647_s28 }
 0x13a   :  { %701 = vmatmul.f32.gmra.mxu1 %v601_v24  ;;  %797 = vmatmul.f32.gmra.mxu3 %v633_v25  ;;  %v1219_v24 = vmul.f32 %v1155_v36, %v1155_v36  ;;  %v2514_v25 = vld [vmem:[%s5443_s1 + $0x20] sm:$0xff]  ;;  %v3618_v42 = vpop.permute.xlu2 %1004  ;;  %5591 = vst [vmem:[#allocation15_spill] sm:$0xff] %v3623_v60  ;;  %v1001_v36 = vpop.permute.xlu0 %1000 }
 0x13b   :  { %v1124_v31 = vsub.f32 %v2514_v25, %v937_v6  ;;  %v939_v22 = vpop.permute.xlu1 %938  ;;  %v3631_v6 = vld [vmem:[%s5443_s1 + $0x60] sm:$0xff]  ;;  %v1156_v25 = vsub.f32 %v2516_v43, %v1001_v36  ;;  %v3662_v43 = vld [vmem:[%s5443_s1 + $0x68] sm:$0xff] }
 0x13d   :  { %v487_v55 = vpop.f32.mrf.mxu2  ;;  %v1188_v27 = vmul.f32 %v1124_v31, %v1124_v31  ;;  %v540_v31 = vmul.f32 %v3334_v37, %v100_v18  ;;  %v1220_v36 = vmul.f32 %v1156_v25, %v1156_v25  ;;  %v133_v25 = vld [vmem:[%s5444_s2 + $0x170] sm:$0xff] }
 0x13f   :  { %v394_v61 = vpop.f32.mrf.mxu0  ;;  %v604_v18 = vadd.f32 %v3662_v43, %v540_v31  ;;  %v573_v31 = vmul.f32 %v3334_v37, %v133_v25 }
 0x140   :  { %1028 = vrot.lane.b32.xlu2 %v3595_v28, %s2647_s28  ;;  %1318 = vrot.lane.b32.xlu1 %v1187_v47, %s2648_s15  ;;  %v3626_v47 = vadd.f32 %v3220_v8, %v487_v55  ;;  %v2517_v55 = vld [vmem:[%s5443_s1 + $0x28] sm:$0xff] }
 0x141   :  { %1382 = vrot.lane.b32.xlu0 %v1219_v24, %s2648_s15  ;;  %v132_v24 = vld [vmem:[%s5444_s2 + $0x168] sm:$0xff] }
 0x142   :  { %704 = vmatmul.f32.gmra.mxu1 %v602_v15  ;;  %800 = vmatmul.f32.gmra.mxu3 %v634_v49  ;;  %5592 = vst [vmem:[#allocation16_spill] sm:$0xff] %v3626_v47  ;;  %v603_v15 = vadd.f32 %v3631_v6, %v539_v32  ;;  %v635_v49 = vadd.f32 %v571_v20, %v3006_v33  ;;  %v3649_v33 = vpop.permute.xlu2 %944 }
 0x143   :  { %v572_v32 = vmul.f32 %v3334_v37, %v132_v24  ;;  %v3654_v20 = vadd.f32 %v3220_v8, %v394_v61  ;;  %v1128_v2 = vsub.f32 %v3523_v5, %v3649_v33 }
 0x145   :  { %5593 = vst [vmem:[#allocation28_spill] sm:$0xff] %v3654_v20  ;;  %v636_v24 = vadd.f32 %v572_v32, %v3045_v39  ;;  %v1192_v33 = vmul.f32 %v1128_v2, %v1128_v2 }
 0x148   :  { %1320 = vrot.lane.b32.xlu2 %v1188_v27, %s2648_s15  ;;  %966 = vrot.lane.b32.xlu1 %v3623_v60, %s2647_s28  ;;  %v1125_v27 = vsub.f32 %v2517_v55, %v939_v22  ;;  %v101_v22 = vld [vmem:[%s5444_s2 + $0x70] sm:$0xff] }
 0x149   :  { %1030 = vrot.lane.b32.xlu0 %v3626_v47, %s2647_s28  ;;  %v541_v39 = vmul.f32 %v3334_v37, %v101_v22  ;;  %v2520_v22 = vld [vmem:[%s5443_s1 + $0x30] sm:$0xff] }
 0x14a   :  { %707 = vmatmul.f32.gmra.mxu1 %v603_v15  ;;  %803 = vmatmul.f32.gmra.mxu3 %v635_v49  ;;  %v1003_v15 = vpop.permute.xlu1 %1002  ;;  %v490_v49 = vpop.f32.mrf.mxu2  ;;  %v1189_v61 = vmul.f32 %v1125_v27, %v1125_v27 }
 0x14b   :  { %v1157_v55 = vsub.f32 %v2983_v10, %v1003_v15  ;;  %v3680_v32 = vadd.f32 %v3220_v8, %v490_v49  ;;  %v397_v27 = vpop.f32.mrf.mxu0  ;;  %v3682_v47 = vpop.permute.xlu2 %1010  ;;  %v3690_v10 = vld [vmem:[%s5443_s1 + $0x70] sm:$0xff]  ;;  %v102_v49 = vld [vmem:[%s5444_s2 + $0x78] sm:$0xff] }
 0x14c   :  { %v3685_v60 = vadd.f32 %v3220_v8, %v397_v27  ;;  %v605_v15 = vadd.f32 %v3690_v10, %v541_v39  ;;  %v2521_v27 = vld [vmem:[%s5443_s1 + $0x130] sm:$0xff] }
 0x14d   :  { %5594 = vst [vmem:[#allocation17_spill] sm:$0xff] %v3680_v32 }
 0x14e   :  { %5595 = vst [vmem:[#allocation29_spill] sm:$0xff] %v3685_v60 }
 0x150   :  { %968 = vrot.lane.b32.xlu2 %v3654_v20, %s2647_s28  ;;  %1384 = vrot.lane.b32.xlu1 %v1220_v36, %s2648_s15  ;;  %v1221_v36 = vmul.f32 %v1157_v55, %v1157_v55  ;;  %v542_v55 = vmul.f32 %v3334_v37, %v102_v49 }
 0x151   :  { %1322 = vrot.lane.b32.xlu0 %v1189_v61, %s2648_s15 }
 0x152   :  { %710 = vmatmul.f32.gmra.mxu1 %v604_v18  ;;  %806 = vmatmul.f32.gmra.mxu3 %v636_v24  ;;  %v637_v18 = vadd.f32 %v573_v31, %v3050_v17  ;;  %v134_v24 = vld [vmem:[%s5444_s2 + $0x178] sm:$0xff]  ;;  %v493_v61 = vpop.f32.mrf.mxu2  ;;  %v1126_v17 = vsub.f32 %v2520_v22, %v3588_v48  ;;  %v943_v25 = vpop.permute.xlu1 %942 }
 0x153   :  { %v574_v39 = vmul.f32 %v3334_v37, %v134_v24  ;;  %v3712_v31 = vadd.f32 %v3220_v8, %v493_v61  ;;  %v3723_v22 = vld [vmem:[%s5443_s1 + $0x78] sm:$0xff] }
 0x154   :  { %v1190_v48 = vmul.f32 %v1126_v17, %v1126_v17  ;;  %v606_v49 = vadd.f32 %v3723_v22, %v542_v55  ;;  %v103_v17 = vld [vmem:[%s5444_s2 + $0x80] sm:$0xff]  ;;  %v2523_v55 = vld [vmem:[%s5443_s1 + $0x38] sm:$0xff] }
 0x155   :  { %5596 = vst [vmem:[#allocation9_spill] sm:$0xff] %v3712_v31  ;;  %v638_v24 = vadd.f32 %v574_v39, %v3064_v34  ;;  %v1127_v34 = vsub.f32 %v2523_v55, %v943_v25  ;;  %v543_v39 = vmul.f32 %v3334_v37, %v103_v17  ;;  %v3751_v25 = vld [vmem:[%s5443_s1 + $0x80] sm:$0xff]  ;;  %v104_v17 = vld [vmem:[%s5444_s2 + $0x88] sm:$0xff] }
 0x158   :  { %1386 = vrot.lane.b32.xlu2 %v1221_v36, %s2648_s15  ;;  %1032 = vrot.lane.b32.xlu1 %v3680_v32, %s2647_s28  ;;  %v1158_v36 = vsub.f32 %v2521_v27, %v3618_v42  ;;  %v1007_v42 = vpop.permute.xlu0 %1006  ;;  %v135_v27 = vld [vmem:[%s5444_s2 + $0x180] sm:$0xff]  ;;  %v1191_v32 = vmul.f32 %v1127_v34, %v1127_v34  ;;  %v2526_v34 = vld [vmem:[%s5443_s1 + $0x138] sm:$0xff] }
 0x159   :  { %970 = vrot.lane.b32.xlu0 %v3685_v60, %s2647_s28 }
 0x15a   :  { %713 = vmatmul.f32.gmra.mxu1 %v605_v15  ;;  %809 = vmatmul.f32.gmra.mxu3 %v637_v18  ;;  %v3718_v15 = vpop.permute.xlu2 %950  ;;  %v400_v18 = vpop.f32.mrf.mxu0  ;;  %v1222_v61 = vmul.f32 %v1158_v36, %v1158_v36  ;;  %v575_v36 = vmul.f32 %v3334_v37, %v135_v27  ;;  %v136_v27 = vld [vmem:[%s5444_s2 + $0x188] sm:$0xff] }
 0x15b   :  { %v496_v60 = vpop.f32.mrf.mxu2 }
 0x15c   :  { %v3746_v21 = vadd.f32 %v3220_v8, %v496_v60 }
 0x15e   :  { %5598 = vst [vmem:[#allocation19_spill] sm:$0xff] %v3746_v21 }
 0x160   :  { %1034 = vrot.lane.b32.xlu2 %v3712_v31, %s2647_s28  ;;  %1324 = vrot.lane.b32.xlu1 %v1190_v48, %s2648_s15  ;;  %v3743_v48 = vadd.f32 %v3220_v8, %v400_v18  ;;  %v1009_v31 = vpop.permute.xlu1 %1008  ;;  %v947_v60 = vpop.permute.xlu0 %946 }
 0x161   :  { %1388 = vrot.lane.b32.xlu0 %v1222_v61, %s2648_s15 }
 0x162   :  { %716 = vmatmul.f32.gmra.mxu1 %v606_v49  ;;  %812 = vmatmul.f32.gmra.mxu3 %v638_v24  ;;  %5597 = vst [vmem:[#allocation18_spill] sm:$0xff] %v3743_v48  ;;  %v607_v49 = vadd.f32 %v3751_v25, %v543_v39  ;;  %v3757_v24 = vld [vmem:[%s5443_s1 + $0x180] sm:$0xff]  ;;  %v3760_v61 = vpop.permute.xlu2 %1016  ;;  %v403_v55 = vpop.f32.mrf.mxu0  ;;  %v1159_v39 = vsub.f32 %v2526_v34, %v1007_v42  ;;  %v3788_v42 = vld [vmem:[%s5443_s1 + $0x88] sm:$0xff] }
 0x163   :  { %v639_v18 = vadd.f32 %v3757_v24, %v575_v36  ;;  %v576_v36 = vmul.f32 %v3334_v37, %v136_v27  ;;  %v105_v27 = vld [vmem:[%s5444_s2 + $0x90] sm:$0xff]  ;;  %v499_v34 = vpop.f32.mrf.mxu2 }
 0x164   :  { %v1223_v14 = vmul.f32 %v1159_v39, %v1159_v39  ;;  %v2529_v39 = vld [vmem:[%s5443_s1 + $0x140] sm:$0xff]  ;;  %v545_v2 = vmul.f32 %v3334_v37, %v105_v27 }
 0x168   :  { %1326 = vrot.lane.b32.xlu2 %v1191_v32, %s2648_s15  ;;  %972 = vrot.lane.b32.xlu1 %v3743_v48, %s2647_s28  ;;  %v544_v32 = vmul.f32 %v3334_v37, %v104_v17  ;;  %v3779_v48 = vadd.f32 %v3220_v8, %v403_v55  ;;  %v3783_v20 = vpop.permute.xlu1 %948  ;;  %v137_v55 = vld [vmem:[%s5444_s2 + $0x190] sm:$0xff] }
 0x169   :  { %1036 = vrot.lane.b32.xlu0 %v3746_v21, %s2647_s28  ;;  %v577_v21 = vmul.f32 %v3334_v37, %v137_v55 }
 0x16a   :  { %719 = vmatmul.f32.gmra.mxu1 %v607_v49  ;;  %815 = vmatmul.f32.gmra.mxu3 %v639_v18  ;;  %5599 = vst [vmem:[#allocation20_spill] sm:$0xff] %v3779_v48  ;;  %v608_v49 = vadd.f32 %v3788_v42, %v544_v32  ;;  %v3794_v18 = vld [vmem:[%s5443_s1 + $0x188] sm:$0xff]  ;;  %v1160_v32 = vsub.f32 %v2529_v39, %v1009_v31  ;;  %v3823_v31 = vld [vmem:[%s5443_s1 + $0x90] sm:$0xff]  ;;  %v138_v39 = vld [vmem:[%s5444_s2 + $0x198] sm:$0xff] }
 0x16b   :  { %v640_v17 = vadd.f32 %v3794_v18, %v576_v36  ;;  %v3800_v5 = vpop.permute.xlu2 %956  ;;  %v672_v36 = vpop.f32.mrf.mxu1 }
 0x16c   :  { %v673_v52 = vadd.f32 %v3220_v8, %v672_v36  ;;  %v1224_v28 = vmul.f32 %v1160_v32, %v1160_v32 }
 0x16d   :  { %v768_v41 = vpop.f32.mrf.mxu3 }
 0x16e   :  { %v1642_v55 = vsub.f32 %v673_v52, %v3223_v53  ;;  %v769_v32 = vadd.f32 %v3220_v8, %v768_v41 }
 0x170   :  { %974 = vrot.lane.b32.xlu2 %v3779_v48, %s2647_s28  ;;  %1390 = vrot.lane.b32.xlu1 %v1223_v14, %s2648_s15  ;;  %v3811_v14 = vpop.permute.xlu0 %1012  ;;  %v3817_v48 = vadd.f32 %v3220_v8, %v499_v34  ;;  %v106_v34 = vld [vmem:[%s5444_s2 + $0x98] sm:$0xff]  ;;  %v1674_v41 = vsub.f32 %v769_v32, %v3230_v4 }
 0x171   :  { %1328 = vrot.lane.b32.xlu0 %v1192_v33, %s2648_s15  ;;  %v546_v52 = vmul.f32 %v3334_v37, %v106_v34  ;;  %v139_v34 = vld [vmem:[%s5444_s2 + $0x1a0] sm:$0xff] }
 0x172   :  { %722 = vmatmul.f32.gmra.mxu1 %v608_v49  ;;  %818 = vmatmul.f32.gmra.mxu3 %v640_v17  ;;  %5600 = vst [vmem:[#allocation30_spill] sm:$0xff] %v3817_v48  ;;  %v609_v49 = vadd.f32 %v3823_v31, %v545_v2  ;;  %v3829_v17 = vld [vmem:[%s5443_s1 + $0x190] sm:$0xff]  ;;  %v3832_v27 = vpop.permute.xlu1 %1014  ;;  %v578_v2 = vmul.f32 %v3334_v37, %v138_v39  ;;  %v502_v39 = vpop.f32.mrf.mxu2 }
 0x173   :  { %v641_v33 = vadd.f32 %v3829_v17, %v577_v21  ;;  %v2532_v21 = vld [vmem:[%s5443_s1 + $0x48] sm:$0xff]  ;;  %v675_v7 = vpop.f32.mrf.mxu1 }
 0x174   :  { %v676_v32 = vadd.f32 %v3220_v8, %v675_v7 }
 0x178   :  { %1392 = vrot.lane.b32.xlu2 %v1224_v28, %s2648_s15  ;;  %1038 = vrot.lane.b32.xlu1 %v3817_v48, %s2647_s28  ;;  %v1129_v28 = vsub.f32 %v2532_v21, %v947_v60  ;;  %v3851_v53 = vpop.permute.xlu0 %952  ;;  %v406_v48 = vpop.f32.mrf.mxu0  ;;  %v3862_v60 = vld [vmem:[%s5443_s1 + $0x98] sm:$0xff] }
 0x179   :  { %1770 = vrot.lane.b32.xlu0 %v1642_v55, %s2647_s28  ;;  %v3857_v58 = vadd.f32 %v3220_v8, %v406_v48  ;;  %v107_v48 = vld [vmem:[%s5444_s2 + $0xa0] sm:$0xff] }
 0x17a   :  { %725 = vmatmul.f32.gmra.mxu1 %v609_v49  ;;  %821 = vmatmul.f32.gmra.mxu3 %v641_v33  ;;  %v3848_v36 = vpop.permute.xlu2 %1022  ;;  %v1193_v26 = vmul.f32 %v1129_v28, %v1129_v28  ;;  %v610_v49 = vadd.f32 %v3862_v60, %v546_v52  ;;  %v3868_v33 = vld [vmem:[%s5443_s1 + $0x198] sm:$0xff]  ;;  %v579_v28 = vmul.f32 %v3334_v37, %v139_v34 }
 0x17b   :  { %5601 = vst [vmem:[#allocation31_spill] sm:$0xff] %v3857_v58  ;;  %v642_v55 = vadd.f32 %v3868_v33, %v578_v2  ;;  %v3873_v4 = vpop.permute.xlu1 %954  ;;  %v3889_v52 = vadd.f32 %v3220_v8, %v502_v39  ;;  %v2535_v2 = vld [vmem:[%s5443_s1 + $0x148] sm:$0xff]  ;;  %v3907_v39 = vld [vmem:[%s5443_s1 + $0x1a0] sm:$0xff] }
 0x17c   :  { %v1161_v7 = vsub.f32 %v2535_v2, %v3682_v47  ;;  %v771_v47 = vpop.f32.mrf.mxu3  ;;  %v1130_v2 = vsub.f32 %v3571_v29, %v3783_v20 }
 0x17d   :  { %5603 = vst [vmem:[#allocation33_spill] sm:$0xff] %v3889_v52  ;;  %v772_v63 = vadd.f32 %v3220_v8, %v771_v47  ;;  %v109_v47 = vld [vmem:[%s5444_s2 + $0xb0] sm:$0xff] }
 0x17e   :  { %v1194_v29 = vmul.f32 %v1130_v2, %v1130_v2  ;;  %v2540_v2 = vld [vmem:[%s5443_s1 + $0x150] sm:$0xff] }
 0x180   :  { %1834 = vrot.lane.b32.xlu2 %v1674_v41, %s2647_s28  ;;  %1330 = vrot.lane.b32.xlu1 %v1193_v26, %s2648_s15  ;;  %v547_v26 = vmul.f32 %v3334_v37, %v107_v48  ;;  %v3901_v48 = vld [vmem:[%s5443_s1 + $0xa0] sm:$0xff] }
 0x181   :  { %976 = vrot.lane.b32.xlu0 %v3857_v58, %s2647_s28  ;;  %v643_v58 = vadd.f32 %v3907_v39, %v579_v28 }
 0x182   :  { %728 = vmatmul.f32.gmra.mxu1 %v610_v49  ;;  %824 = vmatmul.f32.gmra.mxu3 %v642_v55  ;;  %v3882_v21 = vpop.permute.xlu2 %1314  ;;  %v3895_v41 = vpop.permute.xlu0 %1018  ;;  %v1643_v49 = vsub.f32 %v676_v32, %v3235_v56  ;;  %v611_v34 = vadd.f32 %v3901_v48, %v547_v26  ;;  %v1225_v56 = vmul.f32 %v1161_v7, %v1161_v7  ;;  %v108_v32 = vld [vmem:[%s5444_s2 + $0xa8] sm:$0xff] }
 0x183   :  { %5602 = vst [vmem:[#allocation32_spill] sm:$0xff] %v3882_v21  ;;  %v409_v55 = vpop.f32.mrf.mxu0  ;;  %v140_v26 = vld [vmem:[%s5444_s2 + $0x1a8] sm:$0xff]  ;;  %v548_v7 = vmul.f32 %v3334_v37, %v108_v32  ;;  %v141_v32 = vld [vmem:[%s5444_s2 + $0x1b0] sm:$0xff] }
 0x184   :  { %v3929_v21 = vadd.f32 %v3220_v8, %v409_v55  ;;  %v774_v54 = vpop.f32.mrf.mxu3 }
 0x186   :  { %5604 = vst [vmem:[#allocation34_spill] sm:$0xff] %v3929_v21 }
 0x188   :  { %1040 = vrot.lane.b32.xlu2 %v3889_v52, %s2647_s28  ;;  %1772 = vrot.lane.b32.xlu1 %v1643_v49, %s2647_s28  ;;  %v580_v49 = vmul.f32 %v3334_v37, %v140_v26 }
 0x189   :  { %1394 = vrot.lane.b32.xlu0 %v1225_v56, %s2648_s15  ;;  %v1675_v56 = vsub.f32 %v772_v63, %v3242_v46  ;;  %v549_v63 = vmul.f32 %v3334_v37, %v109_v47  ;;  %v3984_v47 = vld [vmem:[%s5443_s1 + $0x1b0] sm:$0xff] }
 0x18a   :  { %731 = vmatmul.f32.gmra.mxu1 %v611_v34  ;;  %827 = vmatmul.f32.gmra.mxu3 %v643_v58  ;;  %v3921_v28 = vpop.permute.xlu2 %962  ;;  %v3923_v52 = vpop.permute.xlu1 %1020  ;;  %v3937_v58 = vld [vmem:[%s5443_s1 + $0xa8] sm:$0xff]  ;;  %5612 = vst [vmem:[#allocation42_spill] sm:$0xff] %v3984_v47 }
 0x18b   :  { %v3932_v62 = vpop.permute.xlu0 %958  ;;  %5605 = vst [vmem:[#allocation35_spill] sm:$0xff] %v3937_v58  ;;  %v612_v20 = vadd.f32 %v3937_v58, %v548_v7  ;;  %v3943_v34 = vld [vmem:[%s5443_s1 + $0x1a8] sm:$0xff]  ;;  %v412_v26 = vpop.f32.mrf.mxu0  ;;  %v1162_v7 = vsub.f32 %v2540_v2, %v3811_v14 }
 0x18c   :  { %5606 = vst [vmem:[#allocation36_spill] sm:$0xff] %v3943_v34  ;;  %v644_v55 = vadd.f32 %v3943_v34, %v580_v49  ;;  %v505_v34 = vpop.f32.mrf.mxu2 }
 0x18d   :  { %v1226_v14 = vmul.f32 %v1162_v7, %v1162_v7  ;;  %v4003_v7 = vld [vmem:[%s5446_s4] ss:$0 sm:$0xff] }
 0x190   :  { %1332 = vrot.lane.b32.xlu2 %v1194_v29, %s2648_s15  ;;  %978 = vrot.lane.b32.xlu1 %v3929_v21, %s2647_s28  ;;  %v581_v29 = vmul.f32 %v3334_v37, %v141_v32  ;;  %v3968_v21 = vadd.f32 %v3220_v8, %v412_v26  ;;  %v2543_v26 = vld [vmem:[%s5443_s1 + $0x158] sm:$0xff] }
 0x191   :  { %1836 = vrot.lane.b32.xlu0 %v1675_v56, %s2647_s28  ;;  %v1163_v2 = vsub.f32 %v2543_v26, %v3832_v27  ;;  %v1131_v26 = vsub.f32 %v3601_v30, %v3718_v15  ;;  %v111_v15 = vld [vmem:[%s5444_s2 + $0xc0] sm:$0xff] }
 0x192   :  { %734 = vmatmul.f32.gmra.mxu1 %v612_v20  ;;  %830 = vmatmul.f32.gmra.mxu3 %v644_v55  ;;  %v3960_v49 = vpop.permute.xlu2 %1380  ;;  %v3962_v46 = vpop.permute.xlu1 %1312  ;;  %5609 = vst [vmem:[#allocation39_spill] sm:$0xff] %v3968_v21  ;;  %v3973_v20 = vadd.f32 %v3220_v8, %v505_v34  ;;  %v3978_v55 = vld [vmem:[%s5443_s1 + $0xb0] sm:$0xff]  ;;  %v645_v32 = vadd.f32 %v3984_v47, %v581_v29  ;;  %v110_v8 = vld [vmem:[%s5444_s2 + $0xb8] sm:$0xff] }
 0x193   :  { %5607 = vst [vmem:[#allocation37_spill] sm:$0xff] %v3960_v49  ;;  %v3970_v58 = vpop.permute.xlu0 %1376  ;;  %v613_v56 = vadd.f32 %v3978_v55, %v549_v63  ;;  %v142_v34 = vld [vmem:[%s5444_s2 + $0x1b8] sm:$0xff]  ;;  %v775_v63 = vadd.f32 %v4003_v7, %v774_v54  ;;  %v550_v49 = vmul.f32 %v3334_v37, %v110_v8  ;;  %v1227_v54 = vmul.f32 %v1163_v2, %v1163_v2 }
 0x194   :  { %5608 = vst [vmem:[#allocation38_spill] sm:$0xff] %v3962_v46  ;;  %v582_v27 = vmul.f32 %v3334_v37, %v142_v34  ;;  %v508_v46 = vpop.f32.mrf.mxu2  ;;  %v4022_v47 = vld [vmem:[%s5443_s1 + $0xb8] sm:$0xff] }
 0x195   :  { %5610 = vst [vmem:[#allocation40_spill] sm:$0xff] %v3970_v58  ;;  %v678_v58 = vpop.f32.mrf.mxu1  ;;  %v614_v8 = vadd.f32 %v4022_v47, %v550_v49  ;;  %v4028_v34 = vld [vmem:[%s5443_s1 + $0x1b8] sm:$0xff]  ;;  %v143_v49 = vld [vmem:[%s5444_s2 + $0x1c0] sm:$0xff] }
 0x196   :  { %5611 = vst [vmem:[#allocation41_spill] sm:$0xff] %v3973_v20  ;;  %v646_v30 = vadd.f32 %v4028_v34, %v582_v27 }
 0x197   :  { %5613 = vst [vmem:[#allocation43_spill] sm:$0xff] %v4022_v47 }
 0x198   :  { %980 = vrot.lane.b32.xlu2 %v3968_v21, %s2647_s28  ;;  %1396 = vrot.lane.b32.xlu1 %v1226_v14, %s2648_s15 }
 0x199   :  { %1042 = vrot.lane.b32.xlu0 %v3973_v20, %s2647_s28  ;;  %v679_v20 = vadd.f32 %v4003_v7, %v678_v58 }
 0x19a   :  { %737 = vmatmul.f32.gmra.mxu1 %v613_v56  ;;  %833 = vmatmul.f32.gmra.mxu3 %v645_v32  ;;  %v4006_v29 = vpop.permute.xlu2 %1028  ;;  %v4008_v14 = vpop.permute.xlu1 %960  ;;  %v1676_v56 = vsub.f32 %v775_v63, %v3254_v50  ;;  %v1195_v50 = vmul.f32 %v1131_v26, %v1131_v26  ;;  %v551_v26 = vmul.f32 %v3334_v37, %v111_v15  ;;  %v112_v15 = vld [vmem:[%s5444_s2 + $0xc8] sm:$0xff] }
 0x19b   :  { %v4016_v21 = vpop.permute.xlu0 %1024  ;;  %v777_v32 = vpop.f32.mrf.mxu3 }
 0x19c   :  { %v778_v2 = vadd.f32 %v4003_v7, %v777_v32  ;;  %v415_v32 = vpop.f32.mrf.mxu0 }
 0x1a0   :  { %1398 = vrot.lane.b32.xlu2 %v1227_v54, %s2648_s15  ;;  %1838 = vrot.lane.b32.xlu1 %v1676_v56, %s2647_s28  ;;  %v583_v54 = vmul.f32 %v3334_v37, %v143_v49  ;;  %v4048_v56 = vadd.f32 %v4003_v7, %v508_v46  ;;  %v4063_v46 = vld [vmem:[%s5443_s1 + $0x1c0] sm:$0xff]  ;;  %v144_v49 = vld [vmem:[%s5444_s2 + $0x1c8] sm:$0xff] }
 0x1a1   :  { %1334 = vrot.lane.b32.xlu0 %v1195_v50, %s2648_s15  ;;  %5619 = vst [vmem:[#allocation49_spill] sm:$0xff] %v4063_v46 }
 0x1a2   :  { %740 = vmatmul.f32.gmra.mxu1 %v614_v8  ;;  %836 = vmatmul.f32.gmra.mxu3 %v646_v30  ;;  %v4040_v63 = vpop.permute.xlu2 %1320  ;;  %v4042_v27 = vpop.permute.xlu1 %1378  ;;  %5616 = vst [vmem:[#allocation46_spill] sm:$0xff] %v4048_v56  ;;  %v1677_v8 = vsub.f32 %v778_v2, %v3266_v1  ;;  %v647_v58 = vadd.f32 %v4063_v46, %v583_v54 }
 0x1a3   :  { %5614 = vst [vmem:[#allocation44_spill] sm:$0xff] %v4040_v63  ;;  %v4051_v47 = vpop.permute.xlu0 %1316  ;;  %v681_v30 = vpop.f32.mrf.mxu1  ;;  %v1644_v1 = vsub.f32 %v679_v20, %v3245_v13  ;;  %v552_v13 = vmul.f32 %v3334_v37, %v112_v15  ;;  %v584_v20 = vmul.f32 %v3334_v37, %v144_v49 }
 0x1a4   :  { %5615 = vst [vmem:[#allocation45_spill] sm:$0xff] %v4042_v27  ;;  %v4057_v27 = vld [vmem:[%s5443_s1 + $0xc0] sm:$0xff]  ;;  %v511_v2 = vpop.f32.mrf.mxu2  ;;  %v780_v49 = vpop.f32.mrf.mxu3 }
 0x1a5   :  { %5617 = vst [vmem:[#allocation47_spill] sm:$0xff] %v4051_v47  ;;  %v615_v50 = vadd.f32 %v4057_v27, %v551_v26  ;;  %v1132_v26 = vsub.f32 %v3631_v6, %v3851_v53  ;;  %v4091_v6 = vadd.f32 %v4003_v7, %v415_v32  ;;  %v418_v53 = vpop.f32.mrf.mxu0 }
 0x1a6   :  { %5618 = vst [vmem:[#allocation48_spill] sm:$0xff] %v4057_v27 }
 0x1a7   :  { %v1196_v63 = vmul.f32 %v1132_v26, %v1132_v26  ;;  %5621 = vst [vmem:[#allocation51_spill] sm:$0xff] %v4091_v6  ;;  %v145_v26 = vld [vmem:[%s5444_s2 + $0x1d0] sm:$0xff] }
 0x1a8   :  { %1840 = vrot.lane.b32.xlu2 %v1677_v8, %s2647_s28  ;;  %1044 = vrot.lane.b32.xlu1 %v4048_v56, %s2647_s28  ;;  %v4086_v56 = vadd.f32 %v4003_v7, %v511_v2  ;;  %v113_v2 = vld [vmem:[%s5444_s2 + $0xd0] sm:$0xff]  ;;  %v585_v47 = vmul.f32 %v3334_v37, %v145_v26 }
 0x1a9   :  { %1774 = vrot.lane.b32.xlu0 %v1644_v1, %s2647_s28  ;;  %v4102_v1 = vld [vmem:[%s5443_s1 + $0x1c8] sm:$0xff]  ;;  %v4141_v26 = vld [vmem:[%s5443_s1 + $0x1d0] sm:$0xff] }
 0x1aa   :  { %743 = vmatmul.f32.gmra.mxu1 %v615_v50  ;;  %839 = vmatmul.f32.gmra.mxu3 %v647_v58  ;;  %v4078_v54 = vpop.permute.xlu2 %968  ;;  %v4080_v8 = vpop.permute.xlu1 %1026  ;;  %5620 = vst [vmem:[#allocation50_spill] sm:$0xff] %v4086_v56  ;;  %v4096_v50 = vld [vmem:[%s5443_s1 + $0xc8] sm:$0xff]  ;;  %v648_v15 = vadd.f32 %v4102_v1, %v584_v20  ;;  %v1133_v20 = vsub.f32 %v3662_v43, %v3873_v4 }
 0x1ab   :  { %v4088_v46 = vpop.permute.xlu0 %964  ;;  %5622 = vst [vmem:[#allocation52_spill] sm:$0xff] %v4096_v50  ;;  %v616_v58 = vadd.f32 %v4096_v50, %v552_v13  ;;  %v684_v32 = vpop.f32.mrf.mxu1  ;;  %v682_v13 = vadd.f32 %v4003_v7, %v681_v30  ;;  %v2551_v30 = vld [vmem:[%s5443_s1 + $0x160] sm:$0xff] }
 0x1ac   :  { %5623 = vst [vmem:[#allocation53_spill] sm:$0xff] %v4102_v1  ;;  %v553_v1 = vmul.f32 %v3334_v37, %v113_v2  ;;  %v1164_v27 = vsub.f32 %v2551_v30, %v3760_v61  ;;  %v114_v61 = vld [vmem:[%s5444_s2 + $0xd8] sm:$0xff] }
 0x1ad   :  { %v1645_v4 = vsub.f32 %v682_v13, %v3257_v57  ;;  %5628 = vst [vmem:[#allocation58_spill] sm:$0xff] %v4141_v26  ;;  %v421_v13 = vpop.f32.mrf.mxu0 }
 0x1ae   :  { %v1228_v57 = vmul.f32 %v1164_v27, %v1164_v27  ;;  %v4160_v27 = vadd.f32 %v4003_v7, %v418_v53 }
 0x1b0   :  { %1046 = vrot.lane.b32.xlu2 %v4086_v56, %s2647_s28  ;;  %1336 = vrot.lane.b32.xlu1 %v1196_v63, %s2648_s15  ;;  %5630 = vst [vmem:[#allocation60_spill] sm:$0xff] %v4160_v27 }
 0x1b1   :  { %982 = vrot.lane.b32.xlu0 %v4091_v6, %s2647_s28  ;;  %v4165_v6 = vadd.f32 %v4003_v7, %v421_v13  ;;  %v115_v13 = vld [vmem:[%s5444_s2 + $0xe0] sm:$0xff] }
 0x1b2   :  { %746 = vmatmul.f32.gmra.mxu1 %v616_v58  ;;  %842 = vmatmul.f32.gmra.mxu3 %v648_v15  ;;  %v4117_v56 = vpop.permute.xlu2 %1386  ;;  %v4119_v63 = vpop.permute.xlu1 %1318  ;;  %v1197_v58 = vmul.f32 %v1133_v20, %v1133_v20  ;;  %v4135_v15 = vld [vmem:[%s5443_s1 + $0xd0] sm:$0xff] }
 0x1b3   :  { %5624 = vst [vmem:[#allocation54_spill] sm:$0xff] %v4117_v56  ;;  %v4129_v43 = vpop.permute.xlu0 %1382  ;;  %v617_v2 = vadd.f32 %v4135_v15, %v553_v1  ;;  %v649_v56 = vadd.f32 %v4141_v26, %v585_v47  ;;  %v146_v1 = vld [vmem:[%s5444_s2 + $0x1d8] sm:$0xff]  ;;  %v687_v47 = vpop.f32.mrf.mxu1 }
 0x1b4   :  { %5625 = vst [vmem:[#allocation55_spill] sm:$0xff] %v4119_v63 }
 0x1b5   :  { %5626 = vst [vmem:[#allocation56_spill] sm:$0xff] %v4129_v43  ;;  %v586_v43 = vmul.f32 %v3334_v37, %v146_v1 }
 0x1b6   :  { %5627 = vst [vmem:[#allocation57_spill] sm:$0xff] %v4135_v15  ;;  %v514_v15 = vpop.f32.mrf.mxu2 }
 0x1b7   :  { %5631 = vst [vmem:[#allocation61_spill] sm:$0xff] %v4165_v6 }
 0x1b8   :  { %1338 = vrot.lane.b32.xlu2 %v1197_v58, %s2648_s15  ;;  %1776 = vrot.lane.b32.xlu1 %v1645_v4, %s2647_s28  ;;  %v4157_v4 = vpop.f32.mrf.mxu3  ;;  %v554_v58 = vmul.f32 %v3334_v37, %v114_v61  ;;  %v4179_v61 = vld [vmem:[%s5443_s1 + $0x1d8] sm:$0xff] }
 0x1b9   :  { %1400 = vrot.lane.b32.xlu0 %v1228_v57, %s2648_s15  ;;  %v4173_v57 = vld [vmem:[%s5443_s1 + $0xd8] sm:$0xff]  ;;  %5633 = vst [vmem:[#allocation63_spill] sm:$0xff] %v4179_v61  ;;  %v650_v1 = vadd.f32 %v4179_v61, %v586_v43  ;;  %v2556_v43 = vld [vmem:[%s5443_s1 + $0x168] sm:$0xff] }
 0x1ba   :  { %749 = vmatmul.f32.gmra.mxu1 %v617_v2  ;;  %845 = vmatmul.f32.gmra.mxu3 %v649_v56  ;;  %v4152_v20 = vpop.permute.xlu2 %1034  ;;  %v4154_v30 = vpop.permute.xlu1 %966  ;;  %v685_v56 = vadd.f32 %v4003_v7, %v684_v32  ;;  %5632 = vst [vmem:[#allocation62_spill] sm:$0xff] %v4173_v57  ;;  %v618_v53 = vadd.f32 %v4173_v57, %v554_v58  ;;  %v147_v58 = vld [vmem:[%s5444_s2 + $0x1e0] sm:$0xff] }
 0x1bb   :  { %5629 = vst [vmem:[#allocation59_spill] sm:$0xff] %v4152_v20  ;;  %v4168_v2 = vpop.permute.xlu0 %1030  ;;  %v1165_v61 = vsub.f32 %v2556_v43, %v3895_v41  ;;  %v555_v57 = vmul.f32 %v3334_v37, %v115_v13  ;;  %v587_v63 = vmul.f32 %v3334_v37, %v147_v58  ;;  %v781_v41 = vadd.f32 %v4003_v7, %v780_v49  ;;  %v4211_v50 = vpop.f32.mrf.mxu1  ;;  %v116_v13 = vld [vmem:[%s5444_s2 + $0xe8] sm:$0xff] }
 0x1bc   :  { %v1646_v32 = vsub.f32 %v685_v56, %v3276_v44  ;;  %v688_v58 = vadd.f32 %v4003_v7, %v687_v47 }
 0x1bd   :  { %v1229_v26 = vmul.f32 %v1165_v61, %v1165_v61  ;;  %v1678_v61 = vsub.f32 %v781_v41, %v3273_v38  ;;  %v556_v38 = vmul.f32 %v3334_v37, %v116_v13 }
 0x1c0   :  { %986 = vrot.lane.b32.xlu2 %v4165_v6, %s2647_s28  ;;  %984 = vrot.lane.b32.xlu1 %v4160_v27, %s2647_s28  ;;  %v2557_v27 = vld [vmem:[%s5443_s1 + $0x170] sm:$0xff] }
 0x1c1   :  { %v1166_v44 = vsub.f32 %v2557_v27, %v3923_v52  ;;  %1778 = vrot.lane.b32.xlu0 %v1646_v32, %s2647_s28  ;;  %v786_v52 = vpop.f32.mrf.mxu3  ;;  %v517_v27 = vpop.f32.mrf.mxu2  ;;  %v4222_v32 = vld [vmem:[%s5443_s1 + $0x1e0] sm:$0xff] }
 0x1c2   :  { %752 = vmatmul.f32.gmra.mxu1 %v618_v53  ;;  %848 = vmatmul.f32.gmra.mxu3 %v650_v1  ;;  %v4201_v56 = vpop.permute.xlu2 %1326  ;;  %v4203_v6 = vpop.permute.xlu1 %1384  ;;  %v4216_v53 = vld [vmem:[%s5443_s1 + $0xe0] sm:$0xff]  ;;  %v651_v49 = vadd.f32 %v4222_v32, %v587_v63 }
 0x1c3   :  { %5634 = vst [vmem:[#allocation64_spill] sm:$0xff] %v4203_v6  ;;  %v4209_v43 = vpop.permute.xlu0 %1322  ;;  %v1230_v20 = vmul.f32 %v1166_v44, %v1166_v44  ;;  %v619_v1 = vadd.f32 %v4216_v53, %v555_v57  ;;  %v148_v57 = vld [vmem:[%s5444_s2 + $0x1e8] sm:$0xff]  ;;  %v787_v44 = vadd.f32 %v4003_v7, %v786_v52  ;;  %v1647_v6 = vsub.f32 %v688_v58, %v3279_v3  ;;  %v4264_v3 = vpop.f32.mrf.mxu1 }
 0x1c4   :  { %v4248_v52 = vadd.f32 %v4003_v7, %v514_v15  ;;  %v149_v15 = vld [vmem:[%s5444_s2 + $0x1f0] sm:$0xff]  ;;  %v784_v58 = vadd.f32 %v4003_v7, %v4157_v4  ;;  %v1134_v4 = vsub.f32 %v3690_v10, %v3800_v5  ;;  %v118_v10 = vld [vmem:[%s5444_s2 + $0xf8] sm:$0xff] }
 0x1c5   :  { %v1680_v47 = vsub.f32 %v787_v44, %v3302_v35  ;;  %v117_v35 = vld [vmem:[%s5444_s2 + $0xf0] sm:$0xff]  ;;  %v150_v5 = vld [vmem:[%s5444_s2 + $0x1f8] sm:$0xff] }
 0x1c6   :  { %5635 = vst [vmem:[#allocation65_spill] sm:$0xff] %v4248_v52 }
 0x1c8   :  { %1404 = vrot.lane.b32.xlu2 %v1230_v20, %s2648_s15  ;;  %1402 = vrot.lane.b32.xlu1 %v1229_v26, %s2648_s15  ;;  %v588_v26 = vmul.f32 %v3334_v37, %v148_v57 }
 0x1c9   :  { %1842 = vrot.lane.b32.xlu0 %v1678_v61, %s2647_s28  ;;  %v4259_v61 = vld [vmem:[%s5443_s1 + $0x1e8] sm:$0xff]  ;;  %v520_v57 = vpop.f32.mrf.mxu2 }
 0x1ca   :  { %755 = vmatmul.f32.gmra.mxu1 %v619_v1  ;;  %851 = vmatmul.f32.gmra.mxu3 %v651_v49  ;;  %v4236_v63 = vpop.permute.xlu2 %974  ;;  %v4238_v20 = vpop.permute.xlu1 %1032  ;;  %v4253_v1 = vld [vmem:[%s5443_s1 + $0xe8] sm:$0xff]  ;;  %v652_v13 = vadd.f32 %v4259_v61, %v588_v26  ;;  %v557_v26 = vmul.f32 %v3334_v37, %v117_v35  ;;  %v4301_v35 = vld [vmem:[%s5443_s1 + $0x1f0] sm:$0xff] }
 0x1cb   :  { %v4243_v41 = vpop.permute.xlu0 %970  ;;  %5636 = vst [vmem:[#allocation66_spill] sm:$0xff] %v4253_v1  ;;  %v620_v49 = vadd.f32 %v4253_v1, %v556_v38  ;;  %v4285_v1 = vadd.f32 %v4003_v7, %v520_v57  ;;  %v1136_v57 = vsub.f32 %v3751_v25, %v4008_v14  ;;  %v691_v25 = vadd.f32 %v4003_v7, %v4211_v50 }
 0x1cd   :  { %5638 = vst [vmem:[#allocation68_spill] sm:$0xff] %v4285_v1  ;;  %v1648_v50 = vsub.f32 %v691_v25, %v3293_v23 }
 0x1d0   :  { %1846 = vrot.lane.b32.xlu2 %v1680_v47, %s2647_s28  ;;  %1780 = vrot.lane.b32.xlu1 %v1647_v6, %s2647_s28  ;;  %v4278_v6 = vpop.f32.mrf.mxu3  ;;  %v589_v47 = vmul.f32 %v3334_v37, %v149_v15 }
 0x1d1   :  { %1048 = vrot.lane.b32.xlu0 %v4248_v52, %s2647_s28 }
 0x1d2   :  { %758 = vmatmul.f32.gmra.mxu1 %v620_v49  ;;  %854 = vmatmul.f32.gmra.mxu3 %v652_v13  ;;  %v4274_v44 = vpop.permute.xlu2 %1392  ;;  %v4276_v38 = vpop.permute.xlu1 %1324  ;;  %v1679_v13 = vsub.f32 %v784_v58, %v3290_v40  ;;  %v653_v15 = vadd.f32 %v4301_v35, %v589_v47  ;;  %v1198_v40 = vmul.f32 %v1134_v4, %v1134_v4 }
 0x1d3   :  { %5637 = vst [vmem:[#allocation67_spill] sm:$0xff] %v4274_v44  ;;  %v4289_v49 = vpop.permute.xlu0 %1388  ;;  %v4295_v44 = vld [vmem:[%s5443_s1 + $0xf0] sm:$0xff]  ;;  %v4320_v47 = vpop.f32.mrf.mxu1  ;;  %v4323_v4 = vadd.f32 %v4003_v7, %v517_v27 }
 0x1d4   :  { %5639 = vst [vmem:[#allocation69_spill] sm:$0xff] %v4289_v49  ;;  %v621_v52 = vadd.f32 %v4295_v44, %v557_v26 }
 0x1d5   :  { %5640 = vst [vmem:[#allocation70_spill] sm:$0xff] %v4323_v4 }
 0x1d8   :  { %1052 = vrot.lane.b32.xlu2 %v4285_v1, %s2647_s28  ;;  %1844 = vrot.lane.b32.xlu1 %v1679_v13, %s2647_s28  ;;  %v558_v13 = vmul.f32 %v3334_v37, %v118_v10  ;;  %v590_v1 = vmul.f32 %v3334_v37, %v150_v5  ;;  %v4329_v14 = vpop.f32.mrf.mxu3  ;;  %v4342_v10 = vld [vmem:[%s5443_s1 + $0x1f8] sm:$0xff]  ;;  %v1135_v5 = vsub.f32 %v3723_v22, %v3932_v62 }
 0x1d9   :  { %1340 = vrot.lane.b32.xlu0 %v1198_v40, %s2648_s15  ;;  %v4336_v40 = vld [vmem:[%s5443_s1 + $0xf8] sm:$0xff]  ;;  %5641 = vst [vmem:[#allocation71_spill] sm:$0xff] %v4342_v10  ;;  %v694_v22 = vadd.f32 %v4003_v7, %v4264_v3 }
 0x1da   :  { %761 = vmatmul.f32.gmra.mxu1 %v621_v52  ;;  %857 = vmatmul.f32.gmra.mxu3 %v653_v15  ;;  %v4315_v58 = vpop.permute.xlu2 %1834  ;;  %v4317_v26 = vpop.permute.xlu1 %972  ;;  %v1200_v15 = vmul.f32 %v1136_v57, %v1136_v57  ;;  %v622_v27 = vadd.f32 %v4336_v40, %v558_v13  ;;  %v654_v37 = vadd.f32 %v4342_v10, %v590_v1 }
 0x1db   :  { %v4331_v52 = vpop.permute.xlu0 %1036  ;;  %v1169_v57 = vsub.f32 %v3794_v18, %v4080_v8  ;;  %v424_v1 = vpop.f32.mrf.mxu0 }
 0x1dc   :  { %v4360_v23 = vpop.f32.mrf.mxu1  ;;  %v4363_v62 = vadd.f32 %v4003_v7, %v424_v1 }
 0x1dd   :  { %v1233_v10 = vmul.f32 %v1169_v57, %v1169_v57 }
 0x1de   :  { %5643 = vst [vmem:[#allocation73_spill] sm:$0xff] %v4363_v62 }
 0x1e0   :  { %1344 = vrot.lane.b32.xlu2 %v1200_v15, %s2648_s15  ;;  %1050 = vrot.lane.b32.xlu1 %v4323_v4, %s2647_s28  ;;  %v1199_v4 = vmul.f32 %v1135_v5, %v1135_v5  ;;  %v795_v25 = vpop.f32.mrf.mxu3 }
 0x1e1   :  { %1782 = vrot.lane.b32.xlu0 %v1648_v50, %s2647_s28  ;;  %v796_v18 = vadd.f32 %v4003_v7, %v795_v25  ;;  %v1139_v25 = vsub.f32 %v3862_v60, %v4154_v30  ;;  %v1168_v30 = vsub.f32 %v3757_v24, %v4016_v21  ;;  %v793_v21 = vadd.f32 %v4003_v7, %v4329_v14 }
 0x1e2   :  { %764 = vmatmul.f32.gmra.mxu1 %v622_v27  ;;  %860 = vmatmul.f32.gmra.mxu3 %v654_v37  ;;  %v4353_v13 = vpop.permute.xlu2 %1040  ;;  %v4355_v49 = vpop.permute.xlu1 %1390  ;;  %v2566_v37 = vld [vmem:[%s5443_s1 + $0x178] sm:$0xff] }
 0x1e3   :  { %5642 = vst [vmem:[#allocation72_spill] sm:$0xff] %v4355_v49  ;;  %v4358_v15 = vpop.permute.xlu0 %1328  ;;  %v1683_v3 = vsub.f32 %v796_v18, %v3363_v45  ;;  %v427_v1 = vpop.f32.mrf.mxu0  ;;  %v790_v45 = vadd.f32 %v4003_v7, %v4278_v6  ;;  %v1203_v18 = vmul.f32 %v1139_v25, %v1139_v25  ;;  %v1232_v25 = vmul.f32 %v1168_v30, %v1168_v30 }
 0x1e4   :  { %v702_v57 = vpop.f32.mrf.mxu1 }
 0x1e5   :  { %v1681_v60 = vsub.f32 %v790_v45, %v3314_v11 }
 0x1e8   :  { %1410 = vrot.lane.b32.xlu2 %v1233_v10, %s2648_s15  ;;  %1342 = vrot.lane.b32.xlu1 %v1199_v4, %s2648_s15  ;;  %v1167_v10 = vsub.f32 %v2566_v37, %v3848_v36  ;;  %v1649_v4 = vsub.f32 %v694_v22, %v3305_v19  ;;  %v4392_v36 = vpop.f32.mrf.mxu3  ;;  %v4396_v19 = vadd.f32 %v4003_v7, %v427_v1 }
 0x1e9   :  { %988 = vrot.lane.b32.xlu0 %v4363_v62, %s2647_s28  ;;  %v703_v37 = vadd.f32 %v4003_v7, %v702_v57  ;;  %v1172_v57 = vsub.f32 %v3907_v39, %v4238_v20  ;;  %v1138_v20 = vsub.f32 %v3823_v31, %v4088_v46  ;;  %v700_v46 = vadd.f32 %v4003_v7, %v4360_v23 }
 0x1ea   :  { %v4370_v8 = vpop.permute.xlu2 %1332  ;;  %v4372_v27 = vpop.permute.xlu1 %1038  ;;  %v1231_v5 = vmul.f32 %v1167_v10, %v1167_v10  ;;  %v1171_v23 = vsub.f32 %v3868_v33, %v4168_v2 }
 0x1eb   :  { %v4380_v50 = vpop.permute.xlu0 %1770  ;;  %v1652_v11 = vsub.f32 %v703_v37, %v3372_v59  ;;  %v1137_v59 = vsub.f32 %v3788_v42, %v3921_v28  ;;  %v1682_v37 = vsub.f32 %v793_v21, %v3339_v16  ;;  %v1236_v14 = vmul.f32 %v1172_v57, %v1172_v57 }
 0x1ec   :  { %v4413_v6 = vpop.f32.mrf.mxu1  ;;  %v697_v16 = vadd.f32 %v4003_v7, %v4320_v47  ;;  %v1202_v21 = vmul.f32 %v1138_v20, %v1138_v20 }
 0x1ed   :  { %v1201_v39 = vmul.f32 %v1137_v59, %v1137_v59 }
 0x1ee   :  { %v1650_v31 = vsub.f32 %v697_v16, %v3317_v0  ;;  %v1651_v0 = vsub.f32 %v700_v46, %v3350_v12  ;;  %v1140_v12 = vsub.f32 %v3901_v48, %v4078_v54  ;;  %v1175_v48 = vsub.f32 %v4028_v34, %v4372_v27  ;;  %v5648_v27 = vld [vmem:[#allocation35_spill] sm:$0xff] }
 0x1f0   :  { %1852 = vrot.lane.b32.xlu2 %v1683_v3, %s2647_s28  ;;  %1784 = vrot.lane.b32.xlu1 %v1649_v4, %s2647_s28  ;;  %v523_v3 = vpop.f32.mrf.mxu2  ;;  %v1204_v2 = vmul.f32 %v1140_v12, %v1140_v12 }
 0x1f1   :  { %1406 = vrot.lane.b32.xlu0 %v1231_v5, %s2648_s15  ;;  %v4416_v5 = vpop.f32.mrf.mxu3  ;;  %v4422_v24 = vadd.f32 %v4003_v7, %v523_v3 }
 0x1f2   :  { %v4388_v49 = vpop.permute.xlu2 %980  ;;  %v4390_v62 = vpop.permute.xlu1 %1330 }
 0x1f3   :  { %v4400_v22 = vpop.permute.xlu0 %976  ;;  %5645 = vst [vmem:[#allocation75_spill] sm:$0xff] %v4422_v24 }
 0x1f8   :  { %1350 = vrot.lane.b32.xlu2 %v1203_v18, %s2648_s15  ;;  %990 = vrot.lane.b32.xlu1 %v4396_v19, %s2647_s28 }
 0x1f9   :  { %1848 = vrot.lane.b32.xlu0 %v1681_v60, %s2647_s28  ;;  %v4438_v60 = vpop.f32.mrf.mxu1  ;;  %v804_v3 = vpop.f32.mrf.mxu3 }
 0x1fa   :  { %v4409_v10 = vpop.permute.xlu2 %1398  ;;  %v4411_v4 = vpop.permute.xlu1 %1772 }
 0x1fb   :  { %5644 = vst [vmem:[#allocation74_spill] sm:$0xff] %v4409_v10  ;;  %v4418_v1 = vpop.permute.xlu0 %1394 }
 0x200   :  { %1790 = vrot.lane.b32.xlu2 %v1652_v11, %s2647_s28  ;;  %1408 = vrot.lane.b32.xlu1 %v1232_v25, %s2648_s15  ;;  %v805_v25 = vadd.f32 %v4003_v7, %v804_v3 }
 0x201   :  { %1054 = vrot.lane.b32.xlu0 %v4422_v24, %s2647_s28  ;;  %v4458_v59 = vpop.f32.mrf.mxu1  ;;  %v4471_v3 = vpop.f32.mrf.mxu3 }
 0x202   :  { %v4430_v45 = vpop.permute.xlu2 %1840  ;;  %v4432_v18 = vpop.permute.xlu1 %978  ;;  %v1686_v57 = vsub.f32 %v805_v25, %v3427_v51  ;;  %v1170_v51 = vsub.f32 %v3829_v17, %v4006_v29 }
 0x203   :  { %v4440_v30 = vpop.permute.xlu0 %1836 }
 0x208   :  { %1416 = vrot.lane.b32.xlu2 %v1236_v14, %s2648_s15  ;;  %1850 = vrot.lane.b32.xlu1 %v1682_v37, %s2647_s28  ;;  %v1142_v37 = vsub.f32 %v3978_v55, %v4317_v26  ;;  %v1234_v55 = vmul.f32 %v1170_v51, %v1170_v51 }
 0x209   :  { %1346 = vrot.lane.b32.xlu0 %v1201_v39, %s2648_s15  ;;  %v4481_v26 = vpop.f32.mrf.mxu1  ;;  %v4492_v17 = vpop.f32.mrf.mxu3 }
 0x20a   :  { %v4448_v11 = vpop.permute.xlu2 %1046  ;;  %v4450_v42 = vpop.permute.xlu1 %1396  ;;  %v1206_v20 = vmul.f32 %v1142_v37, %v1142_v37 }
 0x20b   :  { %v4455_v28 = vpop.permute.xlu0 %1042 }
 0x210   :  { %1858 = vrot.lane.b32.xlu2 %v1686_v57, %s2647_s28  ;;  %1348 = vrot.lane.b32.xlu1 %v1202_v21, %s2648_s15  ;;  %v1235_v21 = vmul.f32 %v1171_v23, %v1171_v23  ;;  %v2567_v57 = vld [vmem:[%s5444_s2] sm:$0xff]  ;;  %v1141_v23 = vsub.f32 %v5648_v27, %v4243_v41  ;;  %v5651_v41 = vld [vmem:[#allocation23_spill] sm:$0xff]  ;;  %v5654_v27 = vld [vmem:[#allocation36_spill] sm:$0xff] }
 0x211   :  { %1786 = vrot.lane.b32.xlu0 %v1650_v31, %s2647_s28  ;;  %v1962_v33 = vmul.f32 %v2567_v57, %v4380_v50  ;;  %v799_v31 = vadd.f32 %v4003_v7, %v4392_v36  ;;  %v4510_v37 = vpop.f32.mrf.mxu1  ;;  %v706_v50 = vadd.f32 %v4003_v7, %v4413_v6  ;;  %v813_v36 = vpop.f32.mrf.mxu3  ;;  %v802_v57 = vadd.f32 %v4003_v7, %v4416_v5 }
 0x212   :  { %v4467_v47 = vpop.permute.xlu2 %1338  ;;  %v4469_v14 = vpop.permute.xlu1 %1838  ;;  %v814_v12 = vadd.f32 %v4003_v7, %v813_v36 }
 0x213   :  { %v4476_v39 = vpop.permute.xlu0 %1334  ;;  %v1653_v34 = vsub.f32 %v706_v50, %v3394_v9  ;;  %v1685_v50 = vsub.f32 %v802_v57, %v5651_v41 }
 0x218   :  { %1356 = vrot.lane.b32.xlu2 %v1206_v20, %s2648_s15  ;;  %1788 = vrot.lane.b32.xlu1 %v1651_v0, %s2647_s28  ;;  %v5647_v0 = vld [vmem:[#allocation22_spill] sm:$0xff] }
 0x219   :  { %1412 = vrot.lane.b32.xlu0 %v1234_v55, %s2648_s15  ;;  %v1684_v20 = vsub.f32 %v799_v31, %v5647_v0  ;;  %v1239_v55 = vmul.f32 %v1175_v48, %v1175_v48  ;;  %v1205_v31 = vmul.f32 %v1141_v23, %v1141_v23  ;;  %v5650_v48 = vld [vmem:[#allocation12_spill] sm:$0xff]  ;;  %v709_v0 = vadd.f32 %v4003_v7, %v4438_v60  ;;  %v5656_v60 = vld [vmem:[#allocation42_spill] sm:$0xff] }
 0x21a   :  { %v4485_v25 = vpop.permute.xlu2 %986  ;;  %v4487_v16 = vpop.permute.xlu1 %1044  ;;  %v1689_v9 = vsub.f32 %v814_v12, %v5650_v48  ;;  %v1174_v41 = vsub.f32 %v5656_v60, %v4331_v52  ;;  %v5659_v52 = vld [vmem:[#allocation7_spill] sm:$0xff] }
 0x21b   :  { %v4494_v29 = vpop.permute.xlu0 %1774 }
 0x220   :  { %1414 = vrot.lane.b32.xlu1 %v1235_v21, %s2648_s15  ;;  %2090 = vrot.lane.b32.xlu2 %v1962_v33, %s2648_s15  ;;  %v4529_v33 = vpop.f32.mrf.mxu1 }
 0x221   :  { %1352 = vrot.lane.b32.xlu0 %v1204_v2, %s2648_s15 }
 0x222   :  { %v4506_v54 = vpop.permute.xlu2 %1404  ;;  %v4508_v46 = vpop.permute.xlu1 %1336 }
 0x223   :  { %5646 = vst [vmem:[#allocation76_spill] sm:$0xff] %v4506_v54  ;;  %v4515_v51 = vpop.permute.xlu0 %982 }
 0x228   :  { %1854 = vrot.lane.b32.xlu1 %v1684_v20, %s2647_s28  ;;  %1422 = vrot.lane.b32.xlu2 %v1239_v55, %s2648_s15  ;;  %v5652_v20 = vld [vmem:[#allocation52_spill] sm:$0xff] }
 0x229   :  { %1792 = vrot.lane.b32.xlu0 %v1653_v34, %s2647_s28  ;;  %v1145_v55 = vsub.f32 %v5652_v20, %v4432_v18  ;;  %v5653_v34 = vld [vmem:[#allocation59_spill] sm:$0xff] }
 0x22a   :  { %v4524_v21 = vpop.permute.xlu2 %1846  ;;  %v1777_v6 = vpop.permute.xlu1 %1776  ;;  %v1173_v23 = vsub.f32 %v5654_v27, %v5653_v34  ;;  %v1238_v34 = vmul.f32 %v1174_v41, %v1174_v41  ;;  %v5658_v27 = vld [vmem:[#allocation24_spill] sm:$0xff] }
 0x22b   :  { %v4531_v2 = vpop.permute.xlu0 %1400  ;;  %v1209_v57 = vmul.f32 %v1145_v55, %v1145_v55 }
 0x22c   :  { %5649 = vst [vmem:[#allocation22_spill] sm:$0xff] %v4531_v2  ;;  %v1237_v18 = vmul.f32 %v1173_v23, %v1173_v23 }
 0x230   :  { %1354 = vrot.lane.b32.xlu1 %v1205_v31, %s2648_s15  ;;  %1864 = vrot.lane.b32.xlu2 %v1689_v9, %s2647_s28  ;;  %v5655_v31 = vld [vmem:[#allocation10_spill] sm:$0xff]  ;;  %v723_v9 = vpop.f32.mrf.mxu1 }
 0x231   :  { %1856 = vrot.lane.b32.xlu0 %v1685_v50, %s2647_s28  ;;  %v1654_v48 = vsub.f32 %v709_v0, %v5655_v31  ;;  %v724_v20 = vadd.f32 %v4003_v7, %v723_v9  ;;  %v712_v0 = vadd.f32 %v4003_v7, %v4458_v59  ;;  %v5661_v59 = vld [vmem:[#allocation43_spill] sm:$0xff] }
 0x232   :  { %v4541_v5 = vpop.permute.xlu2 %1052  ;;  %v4543_v36 = vpop.permute.xlu1 %984  ;;  %v1143_v60 = vsub.f32 %v5661_v59, %v4236_v63  ;;  %v5664_v59 = vld [vmem:[#allocation11_spill] sm:$0xff] }
 0x233   :  { %v4548_v12 = vpop.permute.xlu0 %1778  ;;  %v1659_v31 = vsub.f32 %v724_v20, %v5658_v27  ;;  %v1655_v23 = vsub.f32 %v712_v0, %v5659_v52  ;;  %v5662_v20 = vld [vmem:[#allocation21_spill] sm:$0xff]  ;;  %v2568_v0 = vld [vmem:[%s5444_s2 + $0x110] sm:$0xff] }
 0x234   :  { %v1207_v27 = vmul.f32 %v1143_v60, %v1143_v60  ;;  %v2569_v60 = vld [vmem:[%s5444_s2 + $0x18] sm:$0xff] }
 0x238   :  { %1794 = vrot.lane.b32.xlu1 %v1654_v48, %s2647_s28  ;;  %1362 = vrot.lane.b32.xlu2 %v1209_v57, %s2648_s15  ;;  %v808_v48 = vadd.f32 %v4003_v7, %v4471_v3  ;;  %v1996_v3 = vmul.f32 %v2568_v0, %v4469_v14 }
 0x239   :  { %1418 = vrot.lane.b32.xlu0 %v1237_v18, %s2648_s15  ;;  %v4575_v18 = vpop.f32.mrf.mxu3 }
 0x23a   :  { %v4556_v50 = vpop.permute.xlu2 %1344  ;;  %v4558_v24 = vpop.permute.xlu1 %1402 }
 0x23b   :  { %5657 = vst [vmem:[#allocation35_spill] sm:$0xff] %v4558_v24  ;;  %v4563_v55 = vpop.permute.xlu0 %1842 }
 0x240   :  { %1420 = vrot.lane.b32.xlu1 %v1238_v34, %s2648_s15  ;;  %1804 = vrot.lane.b32.xlu2 %v1659_v31, %s2647_s28  ;;  %v1687_v34 = vsub.f32 %v808_v48, %v5662_v20  ;;  %v715_v31 = vadd.f32 %v4003_v7, %v4481_v26  ;;  %v1965_v26 = vmul.f32 %v2569_v60, %v1777_v6  ;;  %v4619_v6 = vpop.f32.mrf.mxu1  ;;  %v5670_v60 = vld [vmem:[#allocation47_spill] sm:$0xff] }
 0x241   :  { %1796 = vrot.lane.b32.xlu0 %v1655_v23, %s2647_s28  ;;  %v811_v23 = vadd.f32 %v4003_v7, %v4492_v17  ;;  %v4598_v48 = vpop.f32.mrf.mxu3 }
 0x242   :  { %v4571_v57 = vpop.permute.xlu2 %1410  ;;  %v4573_v9 = vpop.permute.xlu1 %1780  ;;  %v1656_v20 = vsub.f32 %v715_v31, %v5664_v59  ;;  %v5668_v31 = vld [vmem:[#allocation58_spill] sm:$0xff] }
 0x243   :  { %5660 = vst [vmem:[#allocation12_spill] sm:$0xff] %v4571_v57  ;;  %v4580_v41 = vpop.permute.xlu0 %1048  ;;  %v1178_v59 = vsub.f32 %v5668_v31, %v4487_v16  ;;  %v5671_v16 = vld [vmem:[#allocation55_spill] sm:$0xff] }
 0x245   :  { %v1242_v2 = vmul.f32 %v1178_v59, %v1178_v59  ;;  %v1514_v59 = vsel %vm1504_vm2, %v4209_v43, 0.0 }
 0x248   :  { %1860 = vrot.lane.b32.xlu1 %v1687_v34, %s2647_s28  ;;  %2158 = vrot.lane.b32.xlu2 %v1996_v3, %s2648_s15  ;;  %v5665_v34 = vld [vmem:[#allocation25_spill] sm:$0xff]  ;;  %v5666_v3 = vld [vmem:[#allocation38_spill] sm:$0xff] }
 0x249   :  { %1358 = vrot.lane.b32.xlu0 %v1207_v27, %s2648_s15  ;;  %v1688_v0 = vsub.f32 %v811_v23, %v5665_v34  ;;  %v1505_v17 = vsel %vm1504_vm2, %v5666_v3, 0.0  ;;  %v5667_v27 = vld [vmem:[#allocation48_spill] sm:$0xff]  ;;  %v822_v10 = vpop.f32.mrf.mxu3 }
 0x24a   :  { %v4591_v52 = vpop.permute.xlu2 %1852  ;;  %v4593_v63 = vpop.permute.xlu1 %1844  ;;  %v1144_v57 = vsub.f32 %v5667_v27, %v4400_v22  ;;  %v718_v22 = vadd.f32 %v4003_v7, %v4510_v37  ;;  %v1510_v27 = vsel %vm1504_vm2, %v5671_v16, 0.0  ;;  %v5673_v16 = vld [vmem:[#allocation44_spill] sm:$0xff] }
 0x24b   :  { %5663 = vst [vmem:[#allocation23_spill] sm:$0xff] %v4591_v52  ;;  %v4600_v14 = vpop.permute.xlu0 %1340 }
 0x24c   :  { %v1208_v31 = vmul.f32 %v1144_v57, %v1144_v57  ;;  %v1512_v57 = vsel %vm1504_vm2, %v5673_v16, 0.0 }
 0x250   :  { %1798 = vrot.lane.b32.xlu1 %v1656_v20, %s2647_s28  ;;  %2096 = vrot.lane.b32.xlu2 %v1965_v26, %s2648_s15  ;;  %v5669_v20 = vld [vmem:[#allocation32_spill] sm:$0xff]  ;;  %v1508_v26 = vsel %vm1504_vm2, %v5670_v60, 0.0 }
 0x251   :  { %1862 = vrot.lane.b32.xlu0 %v1688_v0, %s2647_s28  ;;  %v1506_v23 = vsel %vm1504_vm2, %v5669_v20, 0.0  ;;  %v5672_v20 = vld [vmem:[#allocation26_spill] sm:$0xff] }
 0x252   :  { %v4615_v54 = vpop.permute.xlu2 %1350  ;;  %v4617_v24 = vpop.permute.xlu1 %1050  ;;  %v1507_v34 = vadd.f32 %v1506_v23, %v1505_v17  ;;  %v1657_v60 = vsub.f32 %v718_v22, %v5672_v20  ;;  %v823_v17 = vadd.f32 %v4003_v7, %v822_v10  ;;  %v1516_v10 = vsel %vm1504_vm2, %v4276_v38, 0.0 }
 0x253   :  { %v4628_v3 = vpop.permute.xlu0 %1782 }
 0x254   :  { %v1509_v52 = vadd.f32 %v1508_v26, %v1507_v34  ;;  %v4645_v26 = vpop.f32.mrf.mxu1  ;;  %v2570_v34 = vld [vmem:[%s5444_s2 + $0x100] sm:$0xff] }
 0x255   :  { %v1994_v22 = vmul.f32 %v2570_v34, %v4315_v58  ;;  %v1148_v58 = vsub.f32 %v4216_v53, %v4543_v36  ;;  %v5676_v34 = vld [vmem:[#allocation13_spill] sm:$0xff]  ;;  %v1522_v36 = vsel %vm1504_vm2, %v4390_v62, 0.0  ;;  %v1524_v62 = vsel %vm1504_vm2, %v4370_v8, 0.0 }
 0x256   :  { %v1511_v0 = vadd.f32 %v1510_v27, %v1509_v52  ;;  %v5674_v27 = vld [vmem:[#allocation14_spill] sm:$0xff] }
 0x258   :  { %1428 = vrot.lane.b32.xlu2 %v1242_v2, %s2648_s15  ;;  %1360 = vrot.lane.b32.xlu1 %v1208_v31, %s2648_s15  ;;  %v1513_v2 = vadd.f32 %v1512_v57, %v1511_v0  ;;  %v1692_v31 = vsub.f32 %v823_v17, %v5674_v27  ;;  %v2571_v0 = vld [vmem:[%s5444_s2 + $0x8] sm:$0xff]  ;;  %v1518_v57 = vsel %vm1504_vm2, %v4201_v56, 0.0 }
 0x259   :  { %1800 = vrot.lane.b32.xlu0 %v1657_v60, %s2647_s28  ;;  %v1963_v38 = vmul.f32 %v2571_v0, %v4411_v4  ;;  %v721_v60 = vadd.f32 %v4003_v7, %v4529_v33  ;;  %v5675_v4 = vld [vmem:[#allocation49_spill] sm:$0xff]  ;;  %v1526_v0 = vsel %vm1504_vm2, %v4476_v39, 0.0  ;;  %v2573_v39 = vld [vmem:[%s5444_s2 + $0x108] sm:$0xff] }
 0x25a   :  { %v4636_v23 = vpop.permute.xlu2 %1790  ;;  %v4638_v37 = vpop.permute.xlu1 %1342  ;;  %v1515_v20 = vadd.f32 %v1514_v59, %v1513_v2  ;;  %v1520_v59 = vsel %vm1504_vm2, %v4358_v15, 0.0  ;;  %v1176_v2 = vsub.f32 %v5675_v4, %v4353_v13 }
 0x25b   :  { %v4647_v52 = vpop.permute.xlu0 %988  ;;  %v1658_v53 = vsub.f32 %v721_v60, %v5676_v34  ;;  %v1995_v34 = vmul.f32 %v2573_v39, %v4440_v30 }
 0x25c   :  { %v1517_v43 = vadd.f32 %v1516_v10, %v1515_v20  ;;  %v1240_v56 = vmul.f32 %v1176_v2, %v1176_v2  ;;  %v1528_v2 = vsel %vm1504_vm2, %v4508_v46, 0.0 }
 0x25e   :  { %v1519_v10 = vadd.f32 %v1518_v57, %v1517_v43 }
 0x260   :  { %1870 = vrot.lane.b32.xlu2 %v1692_v31, %s2647_s28  ;;  %2154 = vrot.lane.b32.xlu1 %v1994_v22, %s2648_s15  ;;  %v1212_v22 = vmul.f32 %v1148_v58, %v1148_v58  ;;  %v1521_v27 = vadd.f32 %v1520_v59, %v1519_v10  ;;  %v732_v31 = vpop.f32.mrf.mxu1  ;;  %v5677_v58 = vld [vmem:[#allocation28_spill] sm:$0xff]  ;;  %v4703_v10 = vpop.f32.mrf.mxu3 }
 0x261   :  { %2092 = vrot.lane.b32.xlu0 %v1963_v38, %s2648_s15  ;;  %v733_v20 = vadd.f32 %v4003_v7, %v732_v31  ;;  %v2572_v59 = vld [vmem:[%s5444_s2 + $0x10] sm:$0xff]  ;;  %v1532_v31 = vsel %vm1504_vm2, %v4600_v14, 0.0 }
 0x262   :  { %v4666_v16 = vpop.permute.xlu2 %1416  ;;  %v4668_v17 = vpop.permute.xlu1 %1784  ;;  %v1523_v15 = vadd.f32 %v1522_v36, %v1521_v27  ;;  %v1964_v4 = vmul.f32 %v2572_v59, %v4494_v29  ;;  %v5678_v36 = vld [vmem:[#allocation53_spill] sm:$0xff]  ;;  %v1530_v27 = vsel %vm1504_vm2, %v4467_v47, 0.0 }
 0x263   :  { %v4677_v33 = vpop.permute.xlu0 %1406  ;;  %v1662_v57 = vsub.f32 %v733_v20, %v5677_v58  ;;  %v1177_v29 = vsub.f32 %v5678_v36, %v4455_v28  ;;  %v2574_v28 = vld [vmem:[%s5444_s2 + $0x128] sm:$0xff] }
 0x264   :  { %v1525_v38 = vadd.f32 %v1524_v62, %v1523_v15 }
 0x265   :  { %v1241_v62 = vmul.f32 %v1177_v29, %v1177_v29 }
 0x266   :  { %v1527_v8 = vadd.f32 %v1526_v0, %v1525_v38  ;;  %v1999_v0 = vmul.f32 %v2574_v28, %v4593_v63  ;;  %v1534_v38 = vsel %vm1504_vm2, %v4638_v37, 0.0  ;;  %v1536_v63 = vsel %vm1504_vm2, %v4556_v50, 0.0  ;;  %v5681_v50 = vld [vmem:[#allocation8_spill] sm:$0xff] }
 0x267   :  { %v820_v37 = vadd.f32 %v4003_v7, %v4598_v48 }
 0x268   :  { %1368 = vrot.lane.b32.xlu2 %v1212_v22, %s2648_s15  ;;  %1802 = vrot.lane.b32.xlu1 %v1658_v53, %s2647_s28  ;;  %v1529_v53 = vadd.f32 %v1528_v2, %v1527_v8  ;;  %v4747_v2 = vpop.f32.mrf.mxu1 }
 0x269   :  { %1424 = vrot.lane.b32.xlu0 %v1240_v56, %s2648_s15  ;;  %v5679_v56 = vld [vmem:[#allocation57_spill] sm:$0xff]  ;;  %v1691_v48 = vsub.f32 %v820_v37, %v5681_v50  ;;  %v4799_v50 = vld [vmem:[%s5446_s4] ss:$0 sm:$0xff] }
 0x26a   :  { %v4685_v13 = vpop.permute.xlu2 %1858  ;;  %v4687_v43 = vpop.permute.xlu1 %990  ;;  %v1146_v15 = vsub.f32 %v5679_v56, %v4388_v49  ;;  %v1531_v30 = vadd.f32 %v1530_v27, %v1529_v53 }
 0x26b   :  { %v4694_v60 = vpop.permute.xlu0 %1848  ;;  %v4734_v49 = vpop.f32.mrf.mxu3 }
 0x26c   :  { %v1533_v47 = vadd.f32 %v1532_v31, %v1531_v30  ;;  %v1210_v14 = vmul.f32 %v1146_v15, %v1146_v15  ;;  %v5682_v31 = vld [vmem:[#allocation62_spill] sm:$0xff]  ;;  %v1181_v15 = vsub.f32 %v4259_v61, %v4617_v24 }
 0x26d   :  { %v1147_v56 = vsub.f32 %v5682_v31, %v4515_v51 }
 0x26e   :  { %v1535_v58 = vadd.f32 %v1534_v38, %v1533_v47  ;;  %v727_v38 = vadd.f32 %v4003_v7, %v4619_v6  ;;  %v1542_v47 = vsel %vm1504_vm2, %v4615_v54, 0.0 }
 0x26f   :  { %v1211_v51 = vmul.f32 %v1147_v56, %v1147_v56 }
 0x270   :  { %1810 = vrot.lane.b32.xlu2 %v1662_v57, %s2647_s28  ;;  %2094 = vrot.lane.b32.xlu1 %v1964_v4, %s2648_s15  ;;  %v817_v57 = vadd.f32 %v4003_v7, %v4575_v18  ;;  %v1537_v8 = vadd.f32 %v1536_v63, %v1535_v58  ;;  %v2575_v18 = vld [vmem:[%s5444_s2 + $0x30] sm:$0xff]  ;;  %v1245_v58 = vmul.f32 %v1181_v15, %v1181_v15  ;;  %v4772_v24 = vpop.f32.mrf.mxu1  ;;  %v5685_v15 = vld [vmem:[#allocation63_spill] sm:$0xff] }
 0x271   :  { %2156 = vrot.lane.b32.xlu0 %v1995_v34, %s2648_s15  ;;  %v5680_v34 = vld [vmem:[#allocation27_spill] sm:$0xff]  ;;  %v1968_v36 = vmul.f32 %v2575_v18, %v4628_v3  ;;  %v5684_v18 = vld [vmem:[#allocation9_spill] sm:$0xff] }
 0x272   :  { %v4713_v22 = vpop.permute.xlu2 %1356  ;;  %v4715_v46 = vpop.permute.xlu1 %1408  ;;  %v1690_v53 = vsub.f32 %v817_v57, %v5680_v34  ;;  %v5683_v57 = vld [vmem:[#allocation6_spill] sm:$0xff]  ;;  %v2576_v34 = vld [vmem:[%s5444_s2 + $0x118] sm:$0xff] }
 0x273   :  { %v4724_v20 = vpop.permute.xlu0 %1054  ;;  %v831_v28 = vpop.f32.mrf.mxu3  ;;  %v1660_v63 = vsub.f32 %v727_v38, %v5683_v57 }
 0x274   :  { %v832_v37 = vadd.f32 %v4003_v7, %v831_v28  ;;  %v5686_v28 = vld [vmem:[#allocation15_spill] sm:$0xff] }
 0x278   :  { %2164 = vrot.lane.b32.xlu2 %v1999_v0, %s2648_s15  ;;  %1426 = vrot.lane.b32.xlu1 %v1241_v62, %s2648_s15  ;;  %v741_v7 = vpop.f32.mrf.mxu1 }
 0x279   :  { %1364 = vrot.lane.b32.xlu0 %v1210_v14, %s2648_s15 }
 0x27a   :  { %v4738_v59 = vpop.permute.xlu1 %1850  ;;  %v4740_v4 = vpop.permute.xlu2 %2090 }
 0x27b   :  { %v1347_v39 = vpop.permute.xlu0 %1346  ;;  %v4781_v54 = vpop.f32.mrf.mxu3 }
 0x27c   :  { %v1538_v29 = vsel %vm1504_vm2, %v1347_v39, 0.0 }
 0x27d   :  { %v1539_v27 = vadd.f32 %v1538_v29, %v1537_v8  ;;  %v2577_v29 = vld [vmem:[%s5444_s2 + $0x20] sm:$0xff] }
 0x280   :  { %1866 = vrot.lane.b32.xlu1 %v1690_v53, %s2647_s28  ;;  %2102 = vrot.lane.b32.xlu2 %v1968_v36, %s2648_s15  ;;  %v1997_v53 = vmul.f32 %v2576_v34, %v4430_v45  ;;  %v1695_v36 = vsub.f32 %v832_v37, %v5684_v18  ;;  %v730_v45 = vadd.f32 %v4799_v50, %v4645_v26  ;;  %v2580_v18 = vld [vmem:[%s5444_s2 + $0x120] sm:$0xff] }
 0x281   :  { %1868 = vrot.lane.b32.xlu0 %v1691_v48, %s2647_s28  ;;  %v1151_v48 = vsub.f32 %v4336_v40, %v4687_v43  ;;  %v742_v43 = vadd.f32 %v4799_v50, %v741_v7  ;;  %v1180_v7 = vsub.f32 %v4222_v32, %v4580_v41  ;;  %v2581_v32 = vld [vmem:[%s5444_s2 + $0x48] sm:$0xff] }
 0x282   :  { %v1349_v30 = vpop.permute.xlu1 %1348  ;;  %v4762_v62 = vpop.permute.xlu2 %1422 }
 0x283   :  { %v1540_v3 = vsel %vm1504_vm2, %v1349_v30, 0.0  ;;  %v4770_v14 = vpop.permute.xlu0 %1786 }
 0x284   :  { %v1541_v0 = vadd.f32 %v1540_v3, %v1539_v27  ;;  %v1966_v27 = vmul.f32 %v2577_v29, %v4548_v12  ;;  %v1179_v12 = vsub.f32 %v5685_v15, %v4448_v11  ;;  %v1661_v3 = vsub.f32 %v730_v45, %v5686_v28  ;;  %v4823_v11 = vpop.f32.mrf.mxu1 }
 0x285   :  { %v1244_v28 = vmul.f32 %v1180_v7, %v1180_v7  ;;  %v1150_v7 = vsub.f32 %v4295_v44, %v4647_v52  ;;  %v5693_v44 = vld [vmem:[#allocation29_spill] sm:$0xff] }
 0x286   :  { %v1543_v61 = vadd.f32 %v1542_v47, %v1541_v0  ;;  %v1215_v0 = vmul.f32 %v1151_v48, %v1151_v48  ;;  %v4814_v47 = vpop.f32.mrf.mxu3  ;;  %v1243_v40 = vmul.f32 %v1179_v12, %v1179_v12  ;;  %v5688_v48 = vld [vmem:[#allocation66_spill] sm:$0xff] }
 0x287   :  { %v1149_v15 = vsub.f32 %v5688_v48, %v4485_v25  ;;  %v826_v25 = vadd.f32 %v4799_v50, %v4703_v10  ;;  %v5691_v10 = vld [vmem:[#allocation17_spill] sm:$0xff] }
 0x288   :  { %1366 = vrot.lane.b32.xlu1 %v1211_v51, %s2648_s15  ;;  %1434 = vrot.lane.b32.xlu2 %v1245_v58, %s2648_s15 }
 0x289   :  { %1806 = vrot.lane.b32.xlu0 %v1660_v63, %s2647_s28  ;;  %v5687_v63 = vld [vmem:[#allocation20_spill] sm:$0xff] }
 0x28a   :  { %v1789_v8 = vpop.permute.xlu1 %1788  ;;  %v4778_v6 = vpop.permute.xlu2 %1864  ;;  %v1665_v37 = vsub.f32 %v742_v43, %v5687_v63  ;;  %v5689_v63 = vld [vmem:[#allocation16_spill] sm:$0xff] }
 0x28b   :  { %v4783_v39 = vpop.permute.xlu0 %1412  ;;  %v1971_v41 = vmul.f32 %v2581_v32, %v1789_v8  ;;  %v829_v8 = vadd.f32 %v4799_v50, %v4734_v49  ;;  %v739_v32 = vadd.f32 %v4799_v50, %v4772_v24 }
 0x28c   :  { %v4847_v12 = vpop.f32.mrf.mxu1 }
 0x290   :  { %2160 = vrot.lane.b32.xlu1 %v1997_v53, %s2648_s15  ;;  %1876 = vrot.lane.b32.xlu2 %v1695_v36, %s2647_s28  ;;  %v840_v53 = vpop.f32.mrf.mxu3  ;;  %v1998_v36 = vmul.f32 %v2580_v18, %v4563_v55 }
 0x291   :  { %2098 = vrot.lane.b32.xlu0 %v1966_v27, %s2648_s15 }
 0x292   :  { %v4805_v31 = vpop.permute.xlu1 %1414  ;;  %v4807_v56 = vpop.permute.xlu2 %1362 }
 0x293   :  { %v1353_v30 = vpop.permute.xlu0 %1352 }
 0x294   :  { %v1544_v38 = vsel %vm1504_vm2, %v1353_v30, 0.0  ;;  %v1548_v30 = vsel %vm1504_vm2, %v4713_v22, 0.0  ;;  %v750_v18 = vpop.f32.mrf.mxu1 }
 0x295   :  { %v1545_v26 = vadd.f32 %v1544_v38, %v1543_v61  ;;  %v2579_v61 = vld [vmem:[%s5444_s2 + $0x28] sm:$0xff]  ;;  %v841_v38 = vadd.f32 %v4799_v50, %v840_v53  ;;  %v1694_v53 = vsub.f32 %v829_v8, %v5691_v10 }
 0x296   :  { %v1967_v34 = vmul.f32 %v2579_v61, %v4573_v9  ;;  %v5690_v61 = vld [vmem:[#allocation33_spill] sm:$0xff] }
 0x298   :  { %1808 = vrot.lane.b32.xlu1 %v1661_v3, %s2647_s28  ;;  %1374 = vrot.lane.b32.xlu2 %v1215_v0, %s2648_s15  ;;  %v1213_v0 = vmul.f32 %v1149_v15, %v1149_v15  ;;  %v5692_v15 = vld [vmem:[#allocation39_spill] sm:$0xff] }
 0x299   :  { %1430 = vrot.lane.b32.xlu0 %v1243_v40, %s2648_s15  ;;  %v4863_v40 = vpop.f32.mrf.mxu3 }
 0x29a   :  { %v4819_v51 = vpop.permute.xlu1 %1854  ;;  %v4821_v58 = vpop.permute.xlu2 %1804 }
 0x29b   :  { %v4826_v57 = vpop.permute.xlu0 %1792 }
 0x2a0   :  { %2100 = vrot.lane.b32.xlu1 %v1967_v34, %s2648_s15  ;;  %1816 = vrot.lane.b32.xlu2 %v1665_v37, %s2647_s28  ;;  %v1693_v37 = vsub.f32 %v826_v25, %v5689_v63  ;;  %v1698_v34 = vsub.f32 %v841_v38, %v5690_v61  ;;  %v5694_v38 = vld [vmem:[#allocation18_spill] sm:$0xff] }
 0x2a1   :  { %2162 = vrot.lane.b32.xlu0 %v1998_v36, %s2648_s15  ;;  %v751_v36 = vadd.f32 %v4799_v50, %v750_v18  ;;  %v1664_v8 = vsub.f32 %v739_v32, %v5694_v38  ;;  %v2582_v63 = vld [vmem:[%s5444_s2 + $0x60] sm:$0xff]  ;;  %v2583_v18 = vld [vmem:[%s5444_s2 + $0x38] sm:$0xff] }
 0x2a2   :  { %v1355_v29 = vpop.permute.xlu1 %1354  ;;  %v4841_v27 = vpop.permute.xlu2 %2158  ;;  %v1969_v10 = vmul.f32 %v2583_v18, %v4668_v17  ;;  %v2584_v17 = vld [vmem:[%s5444_s2 + $0x40] sm:$0xff] }
 0x2a3   :  { %v1546_v45 = vsel %vm1504_vm2, %v1355_v29, 0.0  ;;  %v4851_v55 = vpop.permute.xlu0 %1856 }
 0x2a4   :  { %v1547_v9 = vadd.f32 %v1546_v45, %v1545_v26  ;;  %v736_v45 = vadd.f32 %v4799_v50, %v4747_v2  ;;  %v4899_v2 = vpop.f32.mrf.mxu1 }
 0x2a6   :  { %v1549_v3 = vadd.f32 %v1548_v30, %v1547_v9  ;;  %v4885_v9 = vpop.f32.mrf.mxu3  ;;  %v1668_v30 = vsub.f32 %v751_v36, %v5692_v15  ;;  %v1663_v52 = vsub.f32 %v736_v45, %v5693_v44  ;;  %v5695_v15 = vld [vmem:[#allocation50_spill] sm:$0xff] }
 0x2a8   :  { %1432 = vrot.lane.b32.xlu1 %v1244_v28, %s2648_s15  ;;  %2108 = vrot.lane.b32.xlu2 %v1971_v41, %s2648_s15  ;;  %v1214_v28 = vmul.f32 %v1150_v7, %v1150_v7 }
 0x2a9   :  { %1370 = vrot.lane.b32.xlu0 %v1213_v0, %s2648_s15 }
 0x2aa   :  { %v1795_v22 = vpop.permute.xlu1 %1794  ;;  %v4861_v26 = vpop.permute.xlu2 %2096 }
 0x2ab   :  { %v4868_v43 = vpop.permute.xlu0 %1418 }
 0x2b0   :  { %1872 = vrot.lane.b32.xlu1 %v1693_v37, %s2647_s28  ;;  %1882 = vrot.lane.b32.xlu2 %v1698_v34, %s2647_s28  ;;  %v1974_v37 = vmul.f32 %v2582_v63, %v1795_v22  ;;  %v849_v34 = vpop.f32.mrf.mxu3  ;;  %v4921_v22 = vpop.f32.mrf.mxu1 }
 0x2b1   :  { %1874 = vrot.lane.b32.xlu0 %v1694_v53, %s2647_s28  ;;  %v850_v53 = vadd.f32 %v4799_v50, %v849_v34 }
 0x2b2   :  { %v4878_v29 = vpop.permute.xlu1 %1420  ;;  %v4880_v49 = vpop.permute.xlu2 %1428 }
 0x2b3   :  { %v4887_v48 = vpop.permute.xlu0 %1796 }
 0x2b8   :  { %1822 = vrot.lane.b32.xlu2 %v1668_v30, %s2647_s28  ;;  %1372 = vrot.lane.b32.xlu1 %v1214_v28, %s2648_s15  ;;  %v1701_v30 = vsub.f32 %v850_v53, %v5695_v15  ;;  %v1970_v28 = vmul.f32 %v2584_v17, %v4770_v14  ;;  %v1554_v14 = vsel %vm1504_vm2, %v4807_v56, 0.0  ;;  %v759_v18 = vpop.f32.mrf.mxu1 }
 0x2b9   :  { %1812 = vrot.lane.b32.xlu0 %v1663_v52, %s2647_s28  ;;  %v5696_v52 = vld [vmem:[#allocation71_spill] sm:$0xff]  ;;  %v760_v56 = vadd.f32 %v4799_v50, %v759_v18 }
 0x2ba   :  { %v4895_v41 = vpop.permute.xlu1 %1860  ;;  %v4897_v0 = vpop.permute.xlu2 %1870 }
 0x2bb   :  { %v1359_v25 = vpop.permute.xlu0 %1358 }
 0x2bc   :  { %v1550_v61 = vsel %vm1504_vm2, %v1359_v25, 0.0 }
 0x2bd   :  { %v1551_v24 = vadd.f32 %v1550_v61, %v1549_v3  ;;  %v1182_v3 = vsub.f32 %v4301_v35, %v4541_v5  ;;  %v1183_v35 = vsub.f32 %v5696_v52, %v4724_v20  ;;  %v2585_v20 = vld [vmem:[%s5444_s2 + $0x140] sm:$0xff]  ;;  %v2282_v52 = vsel %vm1504_vm2, %v4740_v4, 0.0 }
 0x2be   :  { %v2002_v61 = vmul.f32 %v2585_v20, %v4738_v59  ;;  %v745_v59 = vadd.f32 %v4799_v50, %v4823_v11  ;;  %v748_v11 = vadd.f32 %v4799_v50, %v4847_v12  ;;  %v5701_v4 = vld [vmem:[#allocation34_spill] sm:$0xff]  ;;  %v2586_v20 = vld [vmem:[%s5444_s2 + $0x78] sm:$0xff]  ;;  %v2587_v12 = vld [vmem:[%s5444_s2 + $0x50] sm:$0xff] }
 0x2bf   :  { %v1246_v44 = vmul.f32 %v1182_v3, %v1182_v3  ;;  %v1972_v18 = vmul.f32 %v2587_v12, %v4636_v23  ;;  %v852_v12 = vpop.f32.mrf.mxu3 }
 0x2c0   :  { %2114 = vrot.lane.b32.xlu2 %v1974_v37, %s2648_s15  ;;  %1814 = vrot.lane.b32.xlu1 %v1664_v8, %s2647_s28  ;;  %v838_v8 = vadd.f32 %v4799_v50, %v4814_v47  ;;  %v1247_v37 = vmul.f32 %v1183_v35, %v1183_v35  ;;  %v835_v47 = vadd.f32 %v4799_v50, %v4781_v54 }
 0x2c1   :  { %2104 = vrot.lane.b32.xlu0 %v1969_v10, %s2648_s15 }
 0x2c2   :  { %v4914_v36 = vpop.permute.xlu1 %1798  ;;  %v4916_v7 = vpop.permute.xlu2 %1368 }
 0x2c3   :  { %v4923_v45 = vpop.permute.xlu0 %1862 }
 0x2c8   :  { %1888 = vrot.lane.b32.xlu2 %v1701_v30, %s2647_s28  ;;  %2106 = vrot.lane.b32.xlu1 %v1970_v28, %s2648_s15  ;;  %v5698_v30 = vld [vmem:[#allocation19_spill] sm:$0xff]  ;;  %v5699_v28 = vld [vmem:[#allocation61_spill] sm:$0xff] }
 0x2c9   :  { %1436 = vrot.lane.b32.xlu0 %v1246_v44, %s2648_s15  ;;  %v1696_v17 = vsub.f32 %v835_v47, %v5698_v30  ;;  %v1671_v44 = vsub.f32 %v760_v56, %v5699_v28 }
 0x2ca   :  { %v4934_v5 = vpop.permute.xlu2 %1810  ;;  %v1361_v32 = vpop.permute.xlu1 %1360 }
 0x2cb   :  { %v1552_v25 = vsel %vm1504_vm2, %v1361_v32, 0.0  ;;  %v1801_v63 = vpop.permute.xlu0 %1800  ;;  %v5700_v32 = vld [vmem:[#allocation31_spill] sm:$0xff] }
 0x2cc   :  { %v1553_v38 = vadd.f32 %v1552_v25, %v1551_v24  ;;  %v5697_v24 = vld [vmem:[#allocation30_spill] sm:$0xff]  ;;  %v1666_v25 = vsub.f32 %v745_v59, %v5700_v32 }
 0x2cd   :  { %v1697_v10 = vsub.f32 %v838_v8, %v5697_v24 }
 0x2ce   :  { %v1555_v34 = vadd.f32 %v1554_v14, %v1553_v38 }
 0x2d0   :  { %2170 = vrot.lane.b32.xlu2 %v2002_v61, %s2648_s15  ;;  %1438 = vrot.lane.b32.xlu1 %v1247_v37, %s2648_s15  ;;  %v1667_v37 = vsub.f32 %v748_v11, %v5701_v4  ;;  %v1977_v61 = vmul.f32 %v2586_v20, %v1801_v63  ;;  %v2287_v63 = vsel %vm1504_vm2, %v4861_v26, 0.0  ;;  %v844_v26 = vadd.f32 %v4799_v50, %v4863_v40 }
 0x2d1   :  { %1880 = vrot.lane.b32.xlu0 %v1697_v10, %s2647_s28  ;;  %v754_v20 = vadd.f32 %v4799_v50, %v4899_v2 }
 0x2d2   :  { %v4952_v53 = vpop.permute.xlu2 %2164  ;;  %v4954_v3 = vpop.permute.xlu1 %2154 }
 0x2d3   :  { %v2093_v15 = vpop.permute.xlu0 %2092 }
 0x2d4   :  { %v2283_v54 = vsel %vm1504_vm2, %v2093_v15, 0.0  ;;  %v2588_v15 = vld [vmem:[%s5444_s2 + $0x58] sm:$0xff] }
 0x2d5   :  { %v2284_v35 = vadd.f32 %v2283_v54, %v2282_v52  ;;  %v1973_v30 = vmul.f32 %v2588_v15, %v4826_v57  ;;  %v847_v57 = vadd.f32 %v4799_v50, %v4885_v9 }
 0x2d8   :  { %1828 = vrot.lane.b32.xlu2 %v1671_v44, %s2647_s28  ;;  %1878 = vrot.lane.b32.xlu1 %v1696_v17, %s2647_s28  ;;  %v2589_v17 = vld [vmem:[%s5444_s2 + $0x138] sm:$0xff] }
 0x2d9   :  { %1818 = vrot.lane.b32.xlu0 %v1666_v25, %s2647_s28  ;;  %v2001_v28 = vmul.f32 %v2589_v17, %v4694_v60  ;;  %v5703_v60 = vld [vmem:[#allocation46_spill] sm:$0xff]  ;;  %v5705_v17 = vld [vmem:[#allocation60_spill] sm:$0xff] }
 0x2da   :  { %v4969_v38 = vpop.permute.xlu1 %1802  ;;  %v4971_v8 = vpop.permute.xlu2 %2102  ;;  %v1700_v4 = vsub.f32 %v847_v57, %v5703_v60 }
 0x2db   :  { %v4974_v14 = vpop.permute.xlu0 %1424  ;;  %v762_v60 = vpop.f32.mrf.mxu1 }
 0x2e0   :  { %1820 = vrot.lane.b32.xlu1 %v1667_v37, %s2647_s28  ;;  %2120 = vrot.lane.b32.xlu2 %v1977_v61, %s2648_s15  ;;  %v2590_v61 = vld [vmem:[%s5444_s2 + $0x130] sm:$0xff] }
 0x2e1   :  { %2110 = vrot.lane.b32.xlu0 %v1972_v18, %s2648_s15  ;;  %v5704_v18 = vld [vmem:[#allocation51_spill] sm:$0xff] }
 0x2e2   :  { %v2095_v24 = vpop.permute.xlu1 %2094  ;;  %v4986_v10 = vpop.permute.xlu2 %1434 }
 0x2e3   :  { %v2285_v47 = vsel %vm1504_vm2, %v2095_v24, 0.0  ;;  %v4992_v59 = vpop.permute.xlu0 %2156  ;;  %v1669_v24 = vsub.f32 %v754_v20, %v5704_v18  ;;  %v2593_v20 = vld [vmem:[%s5444_s2 + $0x70] sm:$0xff] }
 0x2e4   :  { %v2286_v56 = vadd.f32 %v2285_v47, %v2284_v35  ;;  %v5702_v35 = vld [vmem:[#allocation41_spill] sm:$0xff]  ;;  %v757_v47 = vadd.f32 %v4799_v50, %v4921_v22 }
 0x2e5   :  { %v1699_v32 = vsub.f32 %v844_v26, %v5702_v35  ;;  %v2591_v26 = vld [vmem:[%s5444_s2 + $0x90] sm:$0xff]  ;;  %v2592_v35 = vld [vmem:[%s5444_s2 + $0x68] sm:$0xff] }
 0x2e6   :  { %v2288_v23 = vadd.f32 %v2287_v63, %v2286_v56 }
 0x2e8   :  { %2112 = vrot.lane.b32.xlu1 %v1973_v30, %s2648_s15  ;;  %v1560_v30 = vsel %vm1504_vm2, %v4916_v7, 0.0  ;;  %v1975_v7 = vmul.f32 %v2592_v35, %v4887_v48  ;;  %v5706_v48 = vld [vmem:[#allocation70_spill] sm:$0xff] }
 0x2e9   :  { %2168 = vrot.lane.b32.xlu0 %v2001_v28, %s2648_s15  ;;  %v1670_v28 = vsub.f32 %v757_v47, %v5705_v17  ;;  %v853_v47 = vadd.f32 %v4799_v50, %v852_v12  ;;  %v765_v17 = vpop.f32.mrf.mxu1 }
 0x2ea   :  { %v5005_v44 = vpop.permute.xlu1 %1426  ;;  %v5007_v52 = vpop.permute.xlu2 %1876 }
 0x2eb   :  { %v1365_v54 = vpop.permute.xlu0 %1364 }
 0x2ec   :  { %v1556_v25 = vsel %vm1504_vm2, %v1365_v54, 0.0  ;;  %v855_v54 = vpop.f32.mrf.mxu3 }
 0x2ed   :  { %v1557_v11 = vadd.f32 %v1556_v25, %v1555_v34  ;;  %v2000_v34 = vmul.f32 %v2590_v61, %v4524_v21  ;;  %v1976_v61 = vmul.f32 %v2593_v20, %v4914_v36  ;;  %v2594_v20 = vld [vmem:[%s5444_s2 + $0x80] sm:$0xff] }
 0x2f0   :  { %1884 = vrot.lane.b32.xlu1 %v1699_v32, %s2647_s28 }
 0x2f1   :  { %1886 = vrot.lane.b32.xlu0 %v1700_v4, %s2647_s28 }
 0x2f2   :  { %v5016_v40 = vpop.permute.xlu1 %1866  ;;  %v5018_v37 = vpop.permute.xlu2 %1374 }
 0x2f3   :  { %v5023_v9 = vpop.permute.xlu0 %1868 }
 0x2f8   :  { %2166 = vrot.lane.b32.xlu1 %v2000_v34, %s2648_s15 }
 0x2f9   :  { %1824 = vrot.lane.b32.xlu0 %v1669_v24, %s2647_s28 }
 0x2fa   :  { %v1367_v56 = vpop.permute.xlu1 %1366  ;;  %v5033_v63 = vpop.permute.xlu2 %1816 }
 0x2fb   :  { %v1558_v2 = vsel %vm1504_vm2, %v1367_v56, 0.0  ;;  %v1807_v21 = vpop.permute.xlu0 %1806 }
 0x2fc   :  { %v1559_v15 = vadd.f32 %v1558_v2, %v1557_v11  ;;  %v1980_v57 = vmul.f32 %v2591_v26, %v1807_v21  ;;  %v856_v11 = vadd.f32 %v4799_v50, %v855_v54  ;;  %v5707_v21 = vld [vmem:[#allocation65_spill] sm:$0xff]  ;;  %v766_v26 = vadd.f32 %v4799_v50, %v765_v17 }
 0x2fd   :  { %v1702_v36 = vsub.f32 %v853_v47, %v5707_v21  ;;  %v2597_v21 = vld [vmem:[%s5444_s2 + $0xa0] sm:$0xff] }
 0x2fe   :  { %v1561_v22 = vadd.f32 %v1560_v30, %v1559_v15  ;;  %2126 = vrot.lane.b32.xlu2 %v1980_v57, %s2648_s15  ;;  %v1703_v24 = vsub.f32 %v856_v11, %v5706_v48  ;;  %v763_v15 = vadd.f32 %v4799_v50, %v762_v60  ;;  %v1673_v60 = vsub.f32 %v766_v26, %v4396_v19  ;;  %v2595_v19 = vld [vmem:[%s5444_s2 + $0x88] sm:$0xff] }
 0x2ff   :  { %v1979_v48 = vmul.f32 %v2595_v19, %v4821_v58 }
 0x300   :  { %1826 = vrot.lane.b32.xlu1 %v1670_v28, %s2647_s28 }
 0x301   :  { %2116 = vrot.lane.b32.xlu0 %v1975_v7, %s2648_s15  ;;  %v2293_v7 = vsel %vm1504_vm2, %v4971_v8, 0.0 }
 0x302   :  { %v5049_v32 = vpop.permute.xlu1 %2160  ;;  %v5051_v25 = vpop.permute.xlu2 %2108 }
 0x303   :  { %v2099_v4 = vpop.permute.xlu0 %2098 }
 0x304   :  { %v2289_v34 = vsel %vm1504_vm2, %v2099_v4, 0.0 }
 0x305   :  { %v2290_v18 = vadd.f32 %v2289_v34, %v2288_v23  ;;  %v5708_v23 = vld [vmem:[#allocation73_spill] sm:$0xff] }
 0x306   :  { %v1672_v28 = vsub.f32 %v763_v15, %v5708_v23 }
 0x308   :  { %2118 = vrot.lane.b32.xlu1 %v1976_v61, %s2648_s15  ;;  %v1978_v61 = vmul.f32 %v2594_v20, %v4969_v38  ;;  %v5709_v20 = vld [vmem:[#allocation40_spill] sm:$0xff] }
 0x309   :  { %1892 = vrot.lane.b32.xlu0 %v1703_v24, %s2647_s28  ;;  %v2596_v24 = vld [vmem:[%s5444_s2 + $0x98] sm:$0xff] }
 0x30a   :  { %v1809_v56 = vpop.permute.xlu1 %1808  ;;  %v5063_v2 = vpop.permute.xlu2 %1882 }
 0x30b   :  { %v5067_v30 = vpop.permute.xlu0 %1430  ;;  %v1981_v38 = vmul.f32 %v2596_v24, %v1809_v56 }
 0x310   :  { %1890 = vrot.lane.b32.xlu1 %v1702_v36, %s2647_s28  ;;  %v1982_v36 = vmul.f32 %v2597_v21, %v4934_v5 }
 0x311   :  { %1830 = vrot.lane.b32.xlu0 %v1672_v28, %s2647_s28 }
 0x312   :  { %v2101_v57 = vpop.permute.xlu1 %2100  ;;  %v1823_v54 = vpop.permute.xlu2 %1822 }
 0x313   :  { %v2291_v12 = vsel %vm1504_vm2, %v2101_v57, 0.0  ;;  %v5077_v11 = vpop.permute.xlu0 %2162  ;;  %v1566_v57 = vsel %vm1504_vm2, %v5018_v37, 0.0  ;;  %v5710_v37 = vld [vmem:[#allocation45_spill] sm:$0xff] }
 0x314   :  { %v2292_v35 = vadd.f32 %v2291_v12, %v2290_v18  ;;  %v1570_v19 = vsel %vm1504_vm2, %v5710_v37, 0.0 }
 0x316   :  { %v2294_v4 = vadd.f32 %v2293_v7, %v2292_v35  ;;  %v2598_v35 = vld [vmem:[%s5444_s2 + $0xb8] sm:$0xff] }
 0x317   :  { %v1985_v5 = vmul.f32 %v2598_v35, %v5033_v63 }
 0x318   :  { %1832 = vrot.lane.b32.xlu1 %v1673_v60, %s2647_s28  ;;  %v2599_v60 = vld [vmem:[%s5444_s2 + $0xa8] sm:$0xff] }
 0x319   :  { %2122 = vrot.lane.b32.xlu0 %v1978_v61, %s2648_s15  ;;  %v1568_v61 = vsel %vm1504_vm2, %v5709_v20, 0.0 }
 0x31a   :  { %v5085_v34 = vpop.permute.xlu1 %1432  ;;  %v5088_v18 = vpop.permute.xlu2 %2114 }
 0x31b   :  { %v1371_v8 = vpop.permute.xlu0 %1370 }
 0x31c   :  { %v1562_v58 = vsel %vm1504_vm2, %v1371_v8, 0.0 }
 0x31d   :  { %v1563_v23 = vadd.f32 %v1562_v58, %v1561_v22 }
 0x320   :  { %2124 = vrot.lane.b32.xlu1 %v1979_v48, %s2648_s15 }
 0x321   :  { %2128 = vrot.lane.b32.xlu0 %v1981_v38, %s2648_s15  ;;  %v5711_v38 = vld [vmem:[#allocation37_spill] sm:$0xff] }
 0x322   :  { %v5098_v47 = vpop.permute.xlu1 %1872  ;;  %v5108_v17 = vpop.permute.xlu2 %1888  ;;  %v1572_v21 = vsel %vm1504_vm2, %v5711_v38, 0.0 }
 0x323   :  { %v5101_v15 = vpop.permute.xlu0 %1874 }
 0x328   :  { %2130 = vrot.lane.b32.xlu1 %v1982_v36, %s2648_s15  ;;  %v2600_v36 = vld [vmem:[%s5444_s2 + $0xb0] sm:$0xff] }
 0x32a   :  { %v1373_v56 = vpop.permute.xlu1 %1372  ;;  %v5127_v48 = vpop.permute.xlu2 %2170 }
 0x32b   :  { %v1564_v28 = vsel %vm1504_vm2, %v1373_v56, 0.0  ;;  %v1813_v12 = vpop.permute.xlu0 %1812  ;;  %v5712_v56 = vld [vmem:[#allocation56_spill] sm:$0xff] }
 0x32c   :  { %v1565_v26 = vadd.f32 %v1564_v28, %v1563_v23  ;;  %v1983_v22 = vmul.f32 %v2599_v60, %v1813_v12  ;;  %v1574_v28 = vsel %vm1504_vm2, %v5712_v56, 0.0  ;;  %v2299_v56 = vsel %vm1504_vm2, %v5051_v25, 0.0 }
 0x32e   :  { %v1567_v7 = vadd.f32 %v1566_v57, %v1565_v26  ;;  %2132 = vrot.lane.b32.xlu0 %v1983_v22, %s2648_s15  ;;  %v2601_v57 = vld [vmem:[%s5444_s2 + $0xd0] sm:$0xff] }
 0x32f   :  { %v1988_v12 = vmul.f32 %v2601_v57, %v1823_v54  ;;  %v2602_v57 = vld [vmem:[%s5444_s2 + $0xe8] sm:$0xff] }
 0x330   :  { %v1569_v8 = vadd.f32 %v1568_v61, %v1567_v7  ;;  %2136 = vrot.lane.b32.xlu1 %v1985_v5, %s2648_s15  ;;  %v5713_v7 = vld [vmem:[#allocation64_spill] sm:$0xff]  ;;  %v5714_v61 = vld [vmem:[#allocation54_spill] sm:$0xff] }
 0x331   :  { %v1576_v60 = vsel %vm1504_vm2, %v5713_v7, 0.0 }
 0x332   :  { %v1571_v63 = vadd.f32 %v1570_v19, %v1569_v8  ;;  %v1815_v24 = vpop.permute.xlu1 %1814  ;;  %v1578_v8 = vsel %vm1504_vm2, %v5714_v61, 0.0  ;;  %v1829_v38 = vpop.permute.xlu2 %1828  ;;  %v1588_v61 = vsel %vm1504_vm2, %v4450_v42, 0.0  ;;  %v5721_v42 = vld [vmem:[#allocation35_spill] sm:$0xff] }
 0x333   :  { %v1984_v58 = vmul.f32 %v2600_v36, %v1815_v24  ;;  %v2105_v26 = vpop.permute.xlu0 %2104 }
 0x334   :  { %v1573_v23 = vadd.f32 %v1572_v21, %v1571_v63  ;;  %v2295_v5 = vsel %vm1504_vm2, %v2105_v26, 0.0  ;;  %v5715_v63 = vld [vmem:[#allocation69_spill] sm:$0xff] }
 0x335   :  { %2134 = vrot.lane.b32.xlu2 %v1984_v58, %s2648_s15  ;;  %v2296_v22 = vadd.f32 %v2295_v5, %v2294_v4  ;;  %v1580_v24 = vsel %vm1504_vm2, %v5715_v63, 0.0  ;;  %v5716_v58 = vld [vmem:[#allocation72_spill] sm:$0xff]  ;;  %v5151_v4 = vpop.f32.mrf.mxu3  ;;  %v5717_v5 = vld [vmem:[#allocation67_spill] sm:$0xff] }
 0x336   :  { %v1575_v35 = vadd.f32 %v1574_v28, %v1573_v23  ;;  %v1582_v23 = vsel %vm1504_vm2, %v5716_v58, 0.0  ;;  %v1584_v7 = vsel %vm1504_vm2, %v5717_v5, 0.0  ;;  %v5722_v5 = vld [vmem:[#allocation76_spill] sm:$0xff] }
 0x338   :  { %v1577_v20 = vadd.f32 %v1576_v60, %v1575_v35  ;;  %2142 = vrot.lane.b32.xlu1 %v1988_v12, %s2648_s15  ;;  %v1991_v12 = vmul.f32 %v2602_v57, %v1829_v38  ;;  %v5719_v38 = vld [vmem:[#allocation23_spill] sm:$0xff] }
 0x33a   :  { %v1579_v37 = vadd.f32 %v1578_v8, %v1577_v20  ;;  %v2107_v19 = vpop.permute.xlu1 %2106 }
 0x33b   :  { %v2297_v54 = vsel %vm1504_vm2, %v2107_v19, 0.0  ;;  %v5155_v28 = vpop.permute.xlu0 %1436 }
 0x33c   :  { %v1581_v21 = vadd.f32 %v1580_v24, %v1579_v37  ;;  %v2298_v36 = vadd.f32 %v2297_v54, %v2296_v22  ;;  %v1586_v22 = vsel %vm1504_vm2, %v4418_v1, 0.0  ;;  %v5718_v37 = vld [vmem:[#allocation74_spill] sm:$0xff]  ;;  %v2603_v24 = vld [vmem:[%s5444_s2 + $0x148] sm:$0xff] }
 0x33d   :  { %v1590_v19 = vsel %vm1504_vm2, %v5718_v37, 0.0  ;;  %v2003_v54 = vmul.f32 %v2603_v24, %v5719_v38  ;;  %v5720_v1 = vld [vmem:[#allocation22_spill] sm:$0xff]  ;;  %v861_v58 = vpop.f32.mrf.mxu3  ;;  %v1600_v38 = vsel %vm1504_vm2, %v4715_v46, 0.0  ;;  %v1606_v46 = vsel %vm1504_vm2, %v4805_v31, 0.0 }
 0x33e   :  { %v1583_v26 = vadd.f32 %v1582_v23, %v1581_v21  ;;  %v2300_v35 = vadd.f32 %v2299_v56, %v2298_v36  ;;  %v1592_v36 = vsel %vm1504_vm2, %v5720_v1, 0.0  ;;  %v1594_v56 = vsel %vm1504_vm2, %v5721_v42, 0.0 }
 0x33f   :  { %v1610_v31 = vsel %vm1504_vm2, %v4868_v43, 0.0  ;;  %v2607_v43 = vld [vmem:[%s5444_s2 + $0x180] sm:$0xff] }
 0x340   :  { %v1585_v60 = vadd.f32 %v1584_v7, %v1583_v26  ;;  %2148 = vrot.lane.b32.xlu1 %v1991_v12, %s2648_s15  ;;  %v862_v26 = vadd.f32 %v4799_v50, %v861_v58  ;;  %v1596_v7 = vsel %vm1504_vm2, %v5722_v5, 0.0  ;;  %v1604_v58 = vsel %vm1504_vm2, %v4783_v39, 0.0 }
 0x342   :  { %v1587_v20 = vadd.f32 %v1586_v22, %v1585_v60  ;;  %v5165_v25 = vpop.permute.xlu1 %1438  ;;  %v1598_v22 = vsel %vm1504_vm2, %v4677_v33, 0.0 }
 0x343   :  { %v5171_v63 = vpop.permute.xlu0 %1880 }
 0x344   :  { %v1589_v8 = vadd.f32 %v1588_v61, %v1587_v20  ;;  %v5723_v61 = vld [vmem:[#allocation75_spill] sm:$0xff] }
 0x346   :  { %v1591_v21 = vadd.f32 %v1590_v19, %v1589_v8  ;;  %v1705_v8 = vsub.f32 %v862_v26, %v5723_v61  ;;  %v2604_v19 = vld [vmem:[%s5444_s2 + $0xc0] sm:$0xff] }
 0x348   :  { %v1593_v23 = vadd.f32 %v1592_v36, %v1591_v21  ;;  %2172 = vrot.lane.b32.xlu1 %v2003_v54, %s2648_s15  ;;  %v5724_v21 = vld [vmem:[#allocation12_spill] sm:$0xff] }
 0x349   :  { %v1602_v33 = vsel %vm1504_vm2, %v5724_v21, 0.0 }
 0x34a   :  { %v1595_v57 = vadd.f32 %v1594_v56, %v1593_v23  ;;  %v5183_v12 = vpop.permute.xlu1 %1878  ;;  %v2605_v23 = vld [vmem:[%s5444_s2 + $0xc8] sm:$0xff] }
 0x34b   :  { %v1819_v20 = vpop.permute.xlu0 %1818 }
 0x34c   :  { %v1597_v60 = vadd.f32 %v1596_v7, %v1595_v57  ;;  %v1986_v24 = vmul.f32 %v2604_v19, %v1819_v20  ;;  %v2606_v57 = vld [vmem:[%s5444_s2 + $0x168] sm:$0xff] }
 0x34d   :  { %v2007_v5 = vmul.f32 %v2606_v57, %v4895_v41 }
 0x34e   :  { %v1599_v37 = vadd.f32 %v1598_v22, %v1597_v60  ;;  %2138 = vrot.lane.b32.xlu0 %v1986_v24, %s2648_s15  ;;  %v1608_v60 = vsel %vm1504_vm2, %v4666_v16, 0.0  ;;  %v2305_v16 = vsel %vm1504_vm2, %v5088_v18, 0.0 }
 0x350   :  { %v1601_v54 = vadd.f32 %v1600_v38, %v1599_v37  ;;  %1896 = vrot.lane.b32.xlu1 %v1705_v8, %s2647_s28  ;;  %v1612_v37 = vsel %vm1504_vm2, %v4878_v29, 0.0  ;;  %v1614_v38 = vsel %vm1504_vm2, %v4762_v62, 0.0  ;;  %v1618_v62 = vsel %vm1504_vm2, %v5005_v44, 0.0 }
 0x351   :  { %v1624_v44 = vsel %vm1504_vm2, %v5085_v34, 0.0  ;;  %v2609_v34 = vld [vmem:[%s5444_s2 + $0x1b0] sm:$0xff] }
 0x352   :  { %v1603_v1 = vadd.f32 %v1602_v33, %v1601_v54  ;;  %v1821_v36 = vpop.permute.xlu1 %1820  ;;  %v2010_v54 = vmul.f32 %v2607_v43, %v5016_v40  ;;  %v1616_v33 = vsel %vm1504_vm2, %v4974_v14, 0.0  ;;  %v1622_v40 = vsel %vm1504_vm2, %v5067_v30, 0.0  ;;  %v2608_v14 = vld [vmem:[%s5444_s2 + $0x198] sm:$0xff] }
 0x353   :  { %v1987_v42 = vmul.f32 %v2605_v23, %v1821_v36  ;;  %v2111_v26 = vpop.permute.xlu0 %2110 }
 0x354   :  { %v1605_v56 = vadd.f32 %v1604_v58, %v1603_v1  ;;  %v2301_v39 = vsel %vm1504_vm2, %v2111_v26, 0.0  ;;  %v1620_v58 = vsel %vm1504_vm2, %v4880_v49, 0.0  ;;  %v1626_v49 = vsel %vm1504_vm2, %v4986_v10, 0.0  ;;  %v2610_v10 = vld [vmem:[%s5444_s2 + $0xd8] sm:$0xff] }
 0x355   :  { %2140 = vrot.lane.b32.xlu2 %v1987_v42, %s2648_s15  ;;  %v2302_v22 = vadd.f32 %v2301_v39, %v2300_v35 }
 0x356   :  { %v1607_v7 = vadd.f32 %v1606_v46, %v1605_v56  ;;  %v2013_v56 = vmul.f32 %v2608_v14, %v5098_v47  ;;  %v1630_v47 = vsel %vm1504_vm2, %v5165_v25, 0.0  ;;  %v2611_v25 = vld [vmem:[%s5444_s2 + $0xe0] sm:$0xff] }
 0x358   :  { %v1609_v20 = vadd.f32 %v1608_v60, %v1607_v7  ;;  %2180 = vrot.lane.b32.xlu1 %v2007_v5, %s2648_s15  ;;  %v1628_v5 = vsel %vm1504_vm2, %v5155_v28, 0.0 }
 0x35a   :  { %v1611_v61 = vadd.f32 %v1610_v31, %v1609_v20  ;;  %v2113_v8 = vpop.permute.xlu1 %2112 }
 0x35b   :  { %v2303_v41 = vsel %vm1504_vm2, %v2113_v8, 0.0  ;;  %v5224_v35 = vpop.permute.xlu0 %2168 }
 0x35c   :  { %v1613_v19 = vadd.f32 %v1612_v37, %v1611_v61  ;;  %v2304_v24 = vadd.f32 %v2303_v41, %v2302_v22  ;;  %v2016_v22 = vmul.f32 %v2609_v34, %v5183_v12  ;;  %v2612_v12 = vld [vmem:[%s5444_s2 + $0x1c8] sm:$0xff] }
 0x35e   :  { %v1615_v21 = vadd.f32 %v1614_v38, %v1613_v19  ;;  %v2306_v29 = vadd.f32 %v2305_v16, %v2304_v24  ;;  %v2121_v19 = vpop.permute.xlu2 %2120 }
 0x35f   :  { %v2311_v43 = vsel %vm1504_vm2, %v2121_v19, 0.0  ;;  %v2618_v19 = vld [vmem:[%s5444_s2 + $0x190] sm:$0xff] }
 0x360   :  { %v1617_v1 = vadd.f32 %v1616_v33, %v1615_v21  ;;  %2186 = vrot.lane.b32.xlu1 %v2010_v54, %s2648_s15 }
 0x362   :  { %v1619_v18 = vadd.f32 %v1618_v62, %v1617_v1  ;;  %v1885_v36 = vpop.permute.xlu1 %1884  ;;  %v2613_v1 = vld [vmem:[%s5444_s2 + $0x1e0] sm:$0xff] }
 0x363   :  { %v5239_v42 = vpop.permute.xlu0 %1886  ;;  %v2019_v8 = vmul.f32 %v2612_v12, %v1885_v36 }
 0x364   :  { %v1621_v23 = vadd.f32 %v1620_v58, %v1619_v18 }
 0x366   :  { %v1623_v46 = vadd.f32 %v1622_v40, %v1621_v23  ;;  %v2615_v40 = vld [vmem:[%s5444_s2 + $0x150] sm:$0xff] }
 0x367   :  { %v2004_v14 = vmul.f32 %v2615_v40, %v4819_v51 }
 0x368   :  { %v1625_v26 = vadd.f32 %v1624_v44, %v1623_v46  ;;  %2192 = vrot.lane.b32.xlu1 %v2013_v56, %s2648_s15  ;;  %v2127_v46 = vpop.permute.xlu2 %2126 }
 0x36a   :  { %v1627_v57 = vadd.f32 %v1626_v49, %v1625_v26  ;;  %v5250_v30 = vpop.permute.xlu1 %2166 }
 0x36b   :  { %v1825_v39 = vpop.permute.xlu0 %1824 }
 0x36c   :  { %v1629_v7 = vadd.f32 %v1628_v5, %v1627_v57  ;;  %v1989_v20 = vmul.f32 %v2610_v10, %v1825_v39  ;;  %v2317_v5 = vsel %vm1504_vm2, %v2127_v46, 0.0 }
 0x36e   :  { %v1631_v60 = vadd.f32 %v1630_v47, %v1629_v7  ;;  %2144 = vrot.lane.b32.xlu0 %v1989_v20, %s2648_s15  ;;  %v2616_v7 = vld [vmem:[%s5444_s2 + $0x160] sm:$0xff] }
 0x36f   :  { %v2006_v47 = vmul.f32 %v2616_v7, %v4685_v13 }
 0x370   :  { %2198 = vrot.lane.b32.xlu1 %v2016_v22, %s2648_s15 }
 0x372   :  { %v1827_v28 = vpop.permute.xlu1 %1826 }
 0x373   :  { %v1990_v31 = vmul.f32 %v2611_v25, %v1827_v28  ;;  %v2117_v61 = vpop.permute.xlu0 %2116  ;;  %v2617_v25 = vld [vmem:[%s5444_s2 + $0x178] sm:$0xff] }
 0x374   :  { %v2307_v37 = vsel %vm1504_vm2, %v2117_v61, 0.0 }
 0x375   :  { %2146 = vrot.lane.b32.xlu2 %v1990_v31, %s2648_s15  ;;  %v2308_v41 = vadd.f32 %v2307_v37, %v2306_v29  ;;  %v2614_v29 = vld [vmem:[%s5444_s2 + $0xf0] sm:$0xff]  ;;  %v2009_v31 = vmul.f32 %v2617_v25, %v4778_v6 }
 0x378   :  { %2204 = vrot.lane.b32.xlu1 %v2019_v8, %s2648_s15 }
 0x37a   :  { %v2119_v24 = vpop.permute.xlu1 %2118 }
 0x37b   :  { %v2309_v38 = vsel %vm1504_vm2, %v2119_v24, 0.0  ;;  %v5276_v54 = vpop.permute.xlu0 %1892  ;;  %v2012_v24 = vmul.f32 %v2618_v19, %v4897_v0  ;;  %v2620_v0 = vld [vmem:[%s5444_s2 + $0xf8] sm:$0xff] }
 0x37c   :  { %v2310_v16 = vadd.f32 %v2309_v38, %v2308_v41 }
 0x37e   :  { %v2312_v21 = vadd.f32 %v2311_v43, %v2310_v16  ;;  %v2619_v43 = vld [vmem:[%s5444_s2 + $0x1a8] sm:$0xff] }
 0x382   :  { %v1891_v33 = vpop.permute.xlu1 %1890 }
 0x383   :  { %v2022_v62 = vmul.f32 %v2613_v1, %v1891_v33  ;;  %v1831_v18 = vpop.permute.xlu0 %1830 }
 0x384   :  { %v1992_v36 = vmul.f32 %v2614_v29, %v1831_v18  ;;  %v859_v29 = vadd.f32 %v4799_v50, %v5151_v4  ;;  %v2623_v4 = vld [vmem:[%s5444_s2 + $0x1f8] sm:$0xff] }
 0x385   :  { %2210 = vrot.lane.b32.xlu1 %v2022_v62, %s2648_s15  ;;  %v2621_v62 = vld [vmem:[%s5444_s2 + $0x1c0] sm:$0xff] }
 0x386   :  { %2150 = vrot.lane.b32.xlu0 %v1992_v36, %s2648_s15  ;;  %v2018_v18 = vmul.f32 %v2621_v62, %v5063_v2  ;;  %v5725_v36 = vld [vmem:[#allocation68_spill] sm:$0xff] }
 0x38a   :  { %v1833_v58 = vpop.permute.xlu1 %1832 }
 0x38b   :  { %v2123_v23 = vpop.permute.xlu0 %2122  ;;  %v1993_v1 = vmul.f32 %v2620_v0, %v1833_v58  ;;  %v2622_v58 = vld [vmem:[%s5444_s2 + $0x1d8] sm:$0xff] }
 0x38c   :  { %v2313_v56 = vsel %vm1504_vm2, %v2123_v23, 0.0  ;;  %v1704_v23 = vsub.f32 %v859_v29, %v5725_v36  ;;  %v2021_v40 = vmul.f32 %v2622_v58, %v5108_v17  ;;  %v2349_v36 = vsel %vm1504_vm2, %v4841_v27, 0.0 }
 0x38d   :  { %v2314_v44 = vadd.f32 %v2313_v56, %v2312_v21  ;;  %v2015_v21 = vmul.f32 %v2619_v43, %v5007_v52  ;;  %v2355_v27 = vsel %vm1504_vm2, %v4952_v53, 0.0 }
 0x38e   :  { %2174 = vrot.lane.b32.xlu0 %v2004_v14, %s2648_s15 }
 0x38f   :  { %v2135_v13 = vpop.permute.xlu2 %2134 }
 0x390   :  { %v2325_v41 = vsel %vm1504_vm2, %v2135_v13, 0.0 }
 0x392   :  { %v2125_v26 = vpop.permute.xlu1 %2124 }
 0x393   :  { %v2315_v49 = vsel %vm1504_vm2, %v2125_v26, 0.0  ;;  %v2129_v51 = vpop.permute.xlu0 %2128 }
 0x394   :  { %v2316_v57 = vadd.f32 %v2315_v49, %v2314_v44  ;;  %v2319_v34 = vsel %vm1504_vm2, %v2129_v51, 0.0  ;;  %v2624_v44 = vld [vmem:[%s5444_s2 + $0x158] sm:$0xff] }
 0x395   :  { %v2005_v17 = vmul.f32 %v2624_v44, %v4851_v55  ;;  %v2626_v55 = vld [vmem:[%s5444_s2 + $0x188] sm:$0xff] }
 0x396   :  { %v2318_v39 = vadd.f32 %v2317_v5, %v2316_v57  ;;  %2178 = vrot.lane.b32.xlu0 %v2006_v47, %s2648_s15  ;;  %v2625_v47 = vld [vmem:[%s5444_s2 + $0x170] sm:$0xff]  ;;  %v2011_v51 = vmul.f32 %v2626_v55, %v5023_v9 }
 0x398   :  { %v2320_v22 = vadd.f32 %v2319_v34, %v2318_v39  ;;  %v2008_v39 = vmul.f32 %v2625_v47, %v4923_v45  ;;  %v2627_v34 = vld [vmem:[%s5444_s2 + $0x1a0] sm:$0xff] }
 0x39a   :  { %v2131_v10 = vpop.permute.xlu1 %2130 }
 0x39b   :  { %v2321_v20 = vsel %vm1504_vm2, %v2131_v10, 0.0 }
 0x39c   :  { %v2322_v28 = vadd.f32 %v2321_v20, %v2320_v22  ;;  %v2014_v22 = vmul.f32 %v2627_v34, %v5101_v15 }
 0x39e   :  { %1632 = vadd.xlane.f32.xlu2 %v1631_v60  ;;  %2184 = vrot.lane.b32.xlu0 %v2009_v31, %s2648_s15 }
 0x3a0   :  { %v2133_v61 = vpop.permute.xlu0 %2132 }
 0x3a1   :  { %v2323_v8 = vsel %vm1504_vm2, %v2133_v61, 0.0 }
 0x3a2   :  { %v2137_v12 = vpop.permute.xlu1 %2136  ;;  %v2324_v37 = vadd.f32 %v2323_v8, %v2322_v28  ;;  %v2628_v28 = vld [vmem:[%s5444_s2 + $0x1b8] sm:$0xff] }
 0x3a3   :  { %v2327_v6 = vsel %vm1504_vm2, %v2137_v12, 0.0  ;;  %v2017_v9 = vmul.f32 %v2628_v28, %v5171_v63  ;;  %v2629_v12 = vld [vmem:[%s5444_s2 + $0x1d0] sm:$0xff]  ;;  %v2630_v63 = vld [vmem:[%s5444_s2 + $0x1e8] sm:$0xff] }
 0x3a4   :  { %v2326_v38 = vadd.f32 %v2325_v41, %v2324_v37  ;;  %v2020_v8 = vmul.f32 %v2629_v12, %v5239_v42  ;;  %v2023_v37 = vmul.f32 %v2630_v63, %v5276_v54 }
 0x3a6   :  { %v2328_v60 = vadd.f32 %v2327_v6, %v2326_v38  ;;  %2190 = vrot.lane.b32.xlu0 %v2012_v24, %s2648_s15 }
 0x3aa   :  { %v2143_v16 = vpop.permute.xlu1 %2142 }
 0x3ab   :  { %v2333_v5 = vsel %vm1504_vm2, %v2143_v16, 0.0 }
 0x3ae   :  { %2196 = vrot.lane.b32.xlu0 %v2015_v21, %s2648_s15 }
 0x3af   :  { %v2141_v2 = vpop.permute.xlu2 %2140 }
 0x3b0   :  { %v2331_v49 = vsel %vm1504_vm2, %v2141_v2, 0.0  ;;  %v2631_v2 = vld [vmem:[%s5444_s2 + $0x1f0] sm:$0xff]  ;;  %s2421_s2 = smul.f32 1024.0, %s3323_s6 }
 0x3b2   :  { %v2149_v33 = vpop.permute.xlu1 %2148 }
 0x3b3   :  { %v2339_v15 = vsel %vm1504_vm2, %v2149_v33, 0.0 }
 0x3b6   :  { %2152 = vrot.lane.b32.xlu2 %v1993_v1, %s2648_s15  ;;  %2202 = vrot.lane.b32.xlu0 %v2018_v18, %s2648_s15  ;;  %v2345_v1 = vsel %vm1504_vm2, %v4954_v3, 0.0  ;;  %v2347_v18 = vsel %vm1504_vm2, %v4992_v59, 0.0 }
 0x3ba   :  { %v5330_v52 = vpop.permute.xlu1 %2172 }
 0x3be   :  { %1894 = vrot.lane.b32.xlu2 %v1704_v23, %s2647_s28  ;;  %2208 = vrot.lane.b32.xlu0 %v2021_v40, %s2648_s15  ;;  %v2351_v40 = vsel %vm1504_vm2, %v5049_v32, 0.0 }
 0x3c0   :  { %v2139_v14 = vpop.permute.xlu0 %2138 }
 0x3c1   :  { %v2329_v50 = vsel %vm1504_vm2, %v2139_v14, 0.0 }
 0x3c2   :  { %v1897_v56 = vpop.permute.xlu1 %1896  ;;  %v2330_v26 = vadd.f32 %v2329_v50, %v2328_v60 }
 0x3c3   :  { %v2025_v46 = vmul.f32 %v2623_v4, %v1897_v56  ;;  %v2353_v56 = vsel %vm1504_vm2, %v5077_v11, 0.0  ;;  %v2357_v4 = vsel %vm1504_vm2, %v5250_v30, 0.0  ;;  %v2363_v11 = vsel %vm1504_vm2, %v5330_v52, 0.0 }
 0x3c4   :  { %v2332_v57 = vadd.f32 %v2331_v49, %v2330_v26 }
 0x3c5   :  { %2216 = vrot.lane.b32.xlu1 %v2025_v46, %s2648_s15  ;;  %v2359_v46 = vsel %vm1504_vm2, %v5224_v35, 0.0 }
 0x3c6   :  { %2176 = vrot.lane.b32.xlu2 %v2005_v17, %s2648_s15  ;;  %v2334_v7 = vadd.f32 %v2333_v5, %v2332_v57  ;;  %v2361_v17 = vsel %vm1504_vm2, %v5127_v48, 0.0 }
 0x3ca   :  { %v2181_v55 = vpop.permute.xlu1 %2180 }
 0x3cb   :  { %v2371_v48 = vsel %vm1504_vm2, %v2181_v55, 0.0 }
 0x3ce   :  { %2182 = vrot.lane.b32.xlu2 %v2008_v39, %s2648_s15 }
 0x3cf   :  { %v2147_v10 = vpop.permute.xlu2 %2146 }
 0x3d0   :  { %v2337_v31 = vsel %vm1504_vm2, %v2147_v10, 0.0 }
 0x3d2   :  { %v2187_v28 = vpop.permute.xlu1 %2186 }
 0x3d6   :  { %2188 = vrot.lane.b32.xlu2 %v2011_v51, %s2648_s15 }
 0x3da   :  { %v2193_v63 = vpop.permute.xlu1 %2192 }
 0x3de   :  { %2194 = vrot.lane.b32.xlu2 %v2014_v22, %s2648_s15 }
 0x3e0   :  { %v2145_v45 = vpop.permute.xlu0 %2144 }
 0x3e1   :  { %v2335_v20 = vsel %vm1504_vm2, %v2145_v45, 0.0 }
 0x3e2   :  { %v2336_v25 = vadd.f32 %v2335_v20, %v2334_v7 }
 0x3e4   :  { %v2338_v13 = vadd.f32 %v2337_v31, %v2336_v25  ;;  %v2377_v25 = vsel %vm1504_vm2, %v2187_v28, 0.0 }
 0x3e6   :  { %2200 = vrot.lane.b32.xlu2 %v2017_v9, %s2648_s15  ;;  %v2340_v61 = vadd.f32 %v2339_v15, %v2338_v13 }
 0x3ee   :  { %2206 = vrot.lane.b32.xlu2 %v2020_v8, %s2648_s15 }
 0x3f6   :  { %2212 = vrot.lane.b32.xlu2 %v2023_v37, %s2648_s15 }
 0x3f8   :  { %v2151_v24 = vpop.permute.xlu0 %2150 }
 0x3f9   :  { %v2341_v6 = vsel %vm1504_vm2, %v2151_v24, 0.0 }
 0x3fa   :  { %v2342_v43 = vadd.f32 %v2341_v6, %v2340_v61 }
 0x400   :  { %v2175_v57 = vpop.permute.xlu0 %2174 }
 0x401   :  { %v2365_v53 = vsel %vm1504_vm2, %v2175_v57, 0.0 }
 0x408   :  { %v2179_v47 = vpop.permute.xlu0 %2178 }
 0x409   :  { %v2369_v35 = vsel %vm1504_vm2, %v2179_v47, 0.0 }
 0x410   :  { %v2185_v10 = vpop.permute.xlu0 %2184 }
 0x411   :  { %v1633_v41 = vpop.xlane.xlu2 %1632  ;;  %v2375_v20 = vsel %vm1504_vm2, %v2185_v10, 0.0 }
 0x412   :  { %v1634_v19 = vrot.slane %v1633_v41, 4 }
 0x414   :  { %v1635_v38 = vadd.f32 %v1634_v19, %v1633_v41  ;;  %v2383_v41 = vsel %vm1504_vm2, %v2193_v63, 0.0 }
 0x416   :  { %v1636_v60 = vrot.slane %v1635_v38, 2 }
 0x418   :  { %v1637_v16 = vadd.f32 %v1636_v60, %v1635_v38  ;;  %v2191_v61 = vpop.permute.xlu0 %2190 }
 0x419   :  { %v2153_v42 = vpop.permute.xlu2 %2152  ;;  %v2381_v8 = vsel %vm1504_vm2, %v2191_v61, 0.0 }
 0x41a   :  { %v2343_v21 = vsel %vm1504_vm2, %v2153_v42, 0.0  ;;  %v1638_v33 = vrot.slane %v1637_v16, 1 }
 0x41b   :  { %v2344_v0 = vadd.f32 %v2343_v21, %v2342_v43  ;;  %v2199_v43 = vpop.permute.xlu1 %2198 }
 0x41c   :  { %v1639_v54 = vadd.f32 %v1638_v33, %v1637_v16  ;;  %v2389_v33 = vsel %vm1504_vm2, %v2199_v43, 0.0 }
 0x41d   :  { %v2346_v62 = vadd.f32 %v2345_v1, %v2344_v0 }
 0x41e   :  { %2494 = vpush %v1639_v54 }
 0x41f   :  { %v2348_v29 = vadd.f32 %v2347_v18, %v2346_v62 }
 0x420   :  { %v2197_v6 = vpop.permute.xlu0 %2196 }
 0x421   :  { %v2350_v23 = vadd.f32 %v2349_v36, %v2348_v29  ;;  %v1895_v58 = vpop.permute.xlu2 %1894  ;;  %v2387_v16 = vsel %vm1504_vm2, %v2197_v6, 0.0 }
 0x422   :  { %v2024_v3 = vmul.f32 %v2631_v2, %v1895_v58 }
 0x423   :  { %v2352_v14 = vadd.f32 %v2351_v40, %v2350_v23  ;;  %v2205_v29 = vpop.permute.xlu1 %2204 }
 0x424   :  { %2214 = vrot.lane.b32.xlu0 %v2024_v3, %s2648_s15  ;;  %v2395_v58 = vsel %vm1504_vm2, %v2205_v29, 0.0 }
 0x425   :  { %v2354_v59 = vadd.f32 %v2353_v56, %v2352_v14 }
 0x427   :  { %v2356_v50 = vadd.f32 %v2355_v27, %v2354_v59 }
 0x428   :  { %v2203_v54 = vpop.permute.xlu0 %2202 }
 0x429   :  { %v2358_v32 = vadd.f32 %v2357_v4, %v2356_v50  ;;  %v2177_v5 = vpop.permute.xlu2 %2176  ;;  %v2393_v18 = vsel %vm1504_vm2, %v2203_v54, 0.0 }
 0x42a   :  { %v2367_v30 = vsel %vm1504_vm2, %v2177_v5, 0.0  ;;  %v2422_v5 = vstv %s2421_s2 }
 0x42b   :  { %v2360_v44 = vadd.f32 %v2359_v46, %v2358_v32  ;;  %v2211_v56 = vpop.permute.xlu1 %2210  ;;  %2507 = vrcp.f32 %v2422_v5  ;;  %vm2428_vm3 = vweird.f32 %v2422_v5 }
 0x42c   :  { %v2401_v4 = vsel %vm1504_vm2, %v2211_v56, 0.0 }
 0x42d   :  { %v2362_v26 = vadd.f32 %v2361_v17, %v2360_v44 }
 0x42f   :  { %v2364_v49 = vadd.f32 %v2363_v11, %v2362_v26 }
 0x430   :  { %v2209_v3 = vpop.permute.xlu0 %2208 }
 0x431   :  { %v2366_v7 = vadd.f32 %v2365_v53, %v2364_v49  ;;  %v2183_v34 = vpop.permute.xlu2 %2182  ;;  %v2399_v59 = vsel %vm1504_vm2, %v2209_v3, 0.0 }
 0x432   :  { %v2373_v52 = vsel %vm1504_vm2, %v2183_v34, 0.0  ;;  %v2434_v34 = vand.u32 2147483648, %v2422_v5 }
 0x433   :  { %v2368_v39 = vadd.f32 %v2367_v30, %v2366_v7  ;;  %v2508_v7 = vpop.eup %2507 }
 0x434   :  { %v2424_v30 = vmul.f32 %v2508_v7, %v2422_v5  ;;  %vm2429_vm4 = vweird.f32 %v2508_v7 }
 0x435   :  { %v2370_v51 = vadd.f32 %v2369_v35, %v2368_v39  ;;  %vm2430_vm5 = vmor %vm2428_vm3, %vm2429_vm4 }
 0x436   :  { %v2425_v47 = vsub.f32 1.0, %v2424_v30 }
 0x437   :  { %v2372_v22 = vadd.f32 %v2371_v48, %v2370_v51  ;;  %v2217_v44 = vpop.permute.xlu1 %2216 }
 0x438   :  { %v2407_v57 = vsel %vm1504_vm2, %v2217_v44, 0.0  ;;  %v2426_v55 = vmul.f32 %v2508_v7, %v2425_v47 }
 0x439   :  { %v2374_v45 = vadd.f32 %v2373_v52, %v2372_v22  ;;  %v2189_v31 = vpop.permute.xlu2 %2188  ;;  %v2432_v52 = vand.u32 2147483647, %v2422_v5 }
 0x43a   :  { %v2379_v15 = vsel %vm1504_vm2, %v2189_v31, 0.0  ;;  %v2427_v22 = vadd.f32 %v2508_v7, %v2426_v55 }
 0x43b   :  { %v2376_v9 = vadd.f32 %v2375_v20, %v2374_v45  ;;  %v2435_v20 = vor.u32 1.1754944e-38, %v2434_v34  ;;  %vm2433_vm6 = vcmp.eq.f32.partialorder %v2432_v52, 8.507059e+37 }
 0x43c   :  { %v2431_v28 = vsel %vm2430_vm5, %v2508_v7, %v2427_v22 }
 0x43d   :  { %v2378_v13 = vadd.f32 %v2377_v25, %v2376_v9  ;;  %v2436_v25 = vsel %vm2433_vm6, %v2435_v20, %v2431_v28 }
 0x43f   :  { %v2380_v12 = vadd.f32 %v2379_v15, %v2378_v13 }
 0x441   :  { %v2382_v37 = vadd.f32 %v2381_v8, %v2380_v12  ;;  %v2195_v19 = vpop.permute.xlu2 %2194 }
 0x442   :  { %v2385_v38 = vsel %vm1504_vm2, %v2195_v19, 0.0 }
 0x443   :  { %v2384_v24 = vadd.f32 %v2383_v41, %v2382_v37 }
 0x445   :  { %v2386_v60 = vadd.f32 %v2385_v38, %v2384_v24 }
 0x447   :  { %v2388_v42 = vadd.f32 %v2387_v16, %v2386_v60 }
 0x449   :  { %v2201_v21 = vpop.permute.xlu2 %2200  ;;  %v2390_v0 = vadd.f32 %v2389_v33, %v2388_v42 }
 0x44a   :  { %v2391_v1 = vsel %vm1504_vm2, %v2201_v21, 0.0 }
 0x44b   :  { %v2392_v62 = vadd.f32 %v2391_v1, %v2390_v0 }
 0x44d   :  { %v2394_v36 = vadd.f32 %v2393_v18, %v2392_v62 }
 0x44f   :  { %v2396_v2 = vadd.f32 %v2395_v58, %v2394_v36  ;;  %s2495_s27 = spop %2494 }
 0x450   :  { %s1641_s28 = smul.f32 0.00048828125, %s2495_s27 }
 0x451   :  { %v2207_v23 = vpop.permute.xlu2 %2206 }
 0x452   :  { %v2397_v40 = vsel %vm1504_vm2, %v2207_v23, 0.0 }
 0x453   :  { %v2398_v14 = vadd.f32 %v2397_v40, %v2396_v2 }
 0x455   :  { %v2400_v27 = vadd.f32 %v2399_v59, %v2398_v14 }
 0x457   :  { %v2402_v46 = vadd.f32 %v2401_v4, %v2400_v27 }
 0x459   :  { %v2213_v50 = vpop.permute.xlu2 %2212 }
 0x45a   :  { %v2403_v32 = vsel %vm1504_vm2, %v2213_v50, 0.0 }
 0x45b   :  { %v2404_v17 = vadd.f32 %v2403_v32, %v2402_v46 }
 0x496   :  { %v2215_v26 = vpop.permute.xlu0 %2214 }
 0x497   :  { %v2405_v11 = vsel %vm1504_vm2, %v2215_v26, 0.0 }
 0x498   :  { %v2406_v49 = vadd.f32 %v2405_v11, %v2404_v17 }
 0x49a   :  { %v2408_v53 = vadd.f32 %v2407_v57, %v2406_v49 }
 0x49c   :  { %2409 = vadd.xlane.f32.xlu2 %v2408_v53 }
 0x50f   :  { %v2410_v39 = vpop.xlane.xlu2 %2409 }
 0x510   :  { %v2411_v35 = vrot.slane %v2410_v39, 4 }
 0x512   :  { %v2412_v51 = vadd.f32 %v2411_v35, %v2410_v39 }
 0x514   :  { %v2413_v48 = vrot.slane %v2412_v51, 2 }
 0x516   :  { %v2414_v10 = vadd.f32 %v2413_v48, %v2412_v51 }
 0x518   :  { %v2415_v45 = vrot.slane %v2414_v10, 1 }
 0x51a   :  { %v2416_v9 = vadd.f32 %v2415_v45, %v2414_v10 }
 0x51c   :  { %2496 = vpush %v2416_v9 }
 0x51d   :  { %2498 = vpush %v2436_v25 }
 0x54d   :  { %s2497_s29 = spop %2496 }
 0x54e   :  { %s2420_s30 = smul.f32 %s2497_s29, %s2419_s26  ;;  %s2499_s7 = spop %2498 }
 0x550   :  { %s2438_s8 = smul.f32 %s2499_s7, %s2420_s30 }
 0x552   :  { %s2439_s12 = sadd.f32 %s2438_s8, %s2419_s26 }
 0x554   :  { %s2440_s13 = ssub.f32 %s1641_s28, %s2439_s12 }
 0x556   :  { %2442 = sst [smem:[#allocation3]] %s2440_s13 }
 0x557   :  { %2451 = dma.smem_to_hbm %s2649_s14, 16, %s2449_s11, [#allocation4]  }
 0x558   :  { %2644 = dma.done.wait [#allocation4], 16  }
 0x559   :  { %2645 = vsyncadd [#allocation4], 4294967280 }
 0x55a   :  { %2456 = sfence }
 0x55b   :  { %2457 = vsyncpa [#allocation4], 1 }

</bundles_post_ra>
